<compile_context>
chip_gen: v5e
topology: v5e:2x2
jax: 0.10.0
libtpu: 0.0.40
codegen_flags: <defaults>
</compile_context>

<pallas_src>
import numpy as np
import jax
import jax.numpy as jnp
from jax.experimental import pallas as pl
from jax.experimental.pallas import tpu as pltpu


def _elu(z):
    # ELU(alpha=1); clamp before exp so the EUP never sees the positive half (no inf).
    return jnp.where(z > 0, z, jnp.exp(jnp.minimum(z, 0.0)) - 1.0)


# ---------------------------------------------------------------------------
# Pass 1: per-type projection + ELU + tanh(fc1) row-sums, accumulated into a
# per-type (1, Mmax*A) output block that stays resident in VMEM while the grid
# walks that type's row tiles (types are contiguous along the grid).
# ---------------------------------------------------------------------------
def _make_stats_kernel(mmax, hd, a):
    def kernel(tid_ref, first_ref, x_ref, wmp_ref, fc1w_ref, fc1b_ref, acc_ref):
        # zero the per-type accumulator on that type's first tile
        @pl.when(first_ref[pl.program_id(0)] == 1)
        def _():
            acc_ref[...] = jnp.zeros_like(acc_ref)

        z = jnp.dot(x_ref[...], wmp_ref[...],
                    preferred_element_type=jnp.float32)         # (TR, Mmax*HD) f32
        out = _elu(z).astype(jnp.bfloat16)
        fc1w = fc1w_ref[...]                                    # (HD, A)  bf16 (shared per type)
        fc1b = fc1b_ref[...]                                    # (1, A)   f32
        parts = []
        for m in range(mmax):                                   # 128-lane-aligned slices,
            s = jnp.tanh(                                       # shared fc1 weight: no
                jnp.dot(out[:, m * hd:(m + 1) * hd], fc1w,      # block-diag structural zeros
                        preferred_element_type=jnp.float32) + fc1b)   # (TR, A) f32
            parts.append(jnp.sum(s, axis=0, keepdims=True))     # (1, A)
        acc_ref[...] += jnp.concatenate(parts, axis=-1)         # (1, Mmax*A)
    return kernel


def metapath_stats(x_all, wmp_all, fc1w_all, fc1b_all, tile_type, tile_first,
                   tile_rows, mmax, hd, a):
    np_total, k = x_all.shape
    num_types = wmp_all.shape[0]
    t = np_total // tile_rows
    return pl.pallas_call(
        _make_stats_kernel(mmax, hd, a),
        out_shape=jax.ShapeDtypeStruct((num_types, 1, mmax * a), jnp.float32),
        grid_spec=pltpu.PrefetchScalarGridSpec(
            num_scalar_prefetch=2,
            grid=(t,),
            in_specs=[
                pl.BlockSpec((tile_rows, k), lambda i, tid, first: (i, 0)),
                pl.BlockSpec((None, k, mmax * hd), lambda i, tid, first: (tid[i], 0, 0)),
                pl.BlockSpec((None, hd, a), lambda i, tid, first: (tid[i], 0, 0)),
                pl.BlockSpec((None, 1, a), lambda i, tid, first: (tid[i], 0, 0)),
            ],
            out_specs=pl.BlockSpec((None, 1, mmax * a),
                                   lambda i, tid, first: (tid[i], 0, 0)),
        ),
        compiler_params=pltpu.CompilerParams(dimension_semantics=("arbitrary",)),
    )(tile_type, tile_first, x_all, wmp_all, fc1w_all, fc1b_all)


# ---------------------------------------------------------------------------
# Pass 2: projection + ELU (recomputed) + beta-weighted metapath sum on the VPU
# (beta stays f32, pre-expanded per type to a (1, Mmax*HD) broadcast row).
# Independent row tiles -> "parallel". h is stored as a lane-dense (TR, HD) slab.
# ---------------------------------------------------------------------------
def _make_combine_kernel(mmax, hd):
    def kernel(tid_ref, x_ref, wmp_ref, beta_ref, h_ref):
        del tid_ref  # used only by the index_maps
        z = jnp.dot(x_ref[...], wmp_ref[...],
                    preferred_element_type=jnp.float32)         # (TR, Mmax*HD) f32
        out = _elu(z)
        wout = out * beta_ref[...]                              # broadcast (1, Mmax*HD), f32 VPU
        h = wout[:, :hd]
        for m in range(1, mmax):
            h = h + wout[:, m * hd:(m + 1) * hd]
        h_ref[...] = h
    return kernel


def metapath_combine(x_all, wmp_all, beta_exp, tile_type, tile_rows, mmax, hd):
    np_total, k = x_all.shape
    t = np_total // tile_rows
    return pl.pallas_call(
        _make_combine_kernel(mmax, hd),
        out_shape=jax.ShapeDtypeStruct((np_total, hd), jnp.float32),
        grid_spec=pltpu.PrefetchScalarGridSpec(
            num_scalar_prefetch=1,
            grid=(t,),
            in_specs=[
                pl.BlockSpec((tile_rows, k), lambda i, tid: (i, 0)),
                pl.BlockSpec((None, k, mmax * hd), lambda i, tid: (tid[i], 0, 0)),
                pl.BlockSpec((None, 1, mmax * hd), lambda i, tid: (tid[i], 0, 0)),
            ],
            out_specs=pl.BlockSpec((tile_rows, hd), lambda i, tid: (i, 0)),
        ),
        compiler_params=pltpu.CompilerParams(dimension_semantics=("parallel",)),
    )(tile_type, x_all, wmp_all, beta_exp)


# ---------------------------------------------------------------------------
# MAGNN_nc_layer forward (all node types fused into one launch per pass)
# ---------------------------------------------------------------------------
def magnn_nc_layer_forward(features, type_mask_np, params, in_dim, num_heads,
                           tile_rows=1024):
    n = int(type_mask_np.shape[0])
    hd = in_dim * num_heads
    ctr = params["ctr_ntype"]
    num_types = len(ctr)
    a = ctr[0]["fc1_w_t"].shape[1]
    m_list = [p["W_mp"].shape[1] // hd for p in ctr]
    mmax = max(m_list)

    # host-side per-type indices, mirroring `np.where(type_mask == i)` in PyTorch
    idx_list = [np.where(type_mask_np == i)[0] for i in range(num_types)]
    ni_list = [int(ix.size) for ix in idx_list]

    h = jnp.zeros((n, hd), jnp.float32)                         # torch.zeros(...)
    if max(ni_list, default=0) == 0:
        return h @ params["fc_w_t"] + params["fc_b"], h

    # effective row tile: large (amortize ~0.35us per grid step) but no bigger than needed
    tr = min(int(tile_rows), ((max(ni_list) + 7) // 8) * 8)
    tr = max(8, (tr // 8) * 8)

    # group rows by type, pad each type to a tile multiple, build the per-tile schedule
    x_parts, tile_type, tile_first, offs, pads = [], [], [], [], []
    off = 0
    for i in range(num_types):
        ni = ni_list[i]
        offs.append(off)
        if ni == 0:
            pads.append(0)
            continue
        nt = -(-ni // tr)
        npi = nt * tr
        pads.append(npi - ni)
        x_parts.append(jnp.pad(features[idx_list[i]], ((0, npi - ni), (0, 0))))
        tile_type += [i] * nt
        tile_first += [1] + [0] * (nt - 1)
        off += npi

    x_all = jnp.concatenate(x_parts, axis=0).astype(jnp.bfloat16)
    tile_type = jnp.asarray(tile_type, jnp.int32)
    tile_first = jnp.asarray(tile_first, jnp.int32)

    # stacked, metapath-padded per-type weights (padded W_mp columns are zero -> out == 0 there)
    wmp_all = jnp.zeros((num_types, in_dim, mmax * hd), jnp.float32)
    fc1w_all = jnp.zeros((num_types, hd, a), jnp.float32)
    fc1b_all = jnp.zeros((num_types, 1, a), jnp.float32)
    for i, p in enumerate(ctr):
        wmp_all = wmp_all.at[i, :, : m_list[i] * hd].set(p["W_mp"])
        fc1w_all = fc1w_all.at[i].set(p["fc1_w_t"])
        fc1b_all = fc1b_all.at[i].set(p["fc1_b"])
    wmp_bf16 = wmp_all.astype(jnp.bfloat16)

    # pass 1: one launch over all types
    sums = metapath_stats(x_all, wmp_bf16, fc1w_all.astype(jnp.bfloat16), fc1b_all,
                          tile_type, tile_first, tr, mmax, hd, a)   # (num_types, 1, Mmax*A)

    # tiny host math: pad-row correction -> mean -> fc2 -> softmax -> beta (kept f32)
    # (zero-padded rows contribute exactly tanh(fc1_b) per metapath, so this correction is exact)
    beta_exp = jnp.zeros((num_types, 1, mmax * hd), jnp.float32)
    for i, p in enumerate(ctr):
        if ni_list[i] == 0:
            continue
        mi = m_list[i]
        si = sums[i, 0].reshape(mmax, a)[:mi]
        si = si - pads[i] * jnp.tanh(p["fc1_b"])
        s_mean = si / ni_list[i]                                 # (mi, A)
        logits = (s_mean @ p["fc2_w"])[:, 0]                     # (mi,)
        beta = jax.nn.softmax(logits)                            # (mi,) f32
        beta_exp = beta_exp.at[i, 0, : mi * hd].set(jnp.repeat(beta, hd))

    # pass 2: one launch over all types; VPU beta-sum; lane-dense (TR, HD) f32 stores
    h_all = metapath_combine(x_all, wmp_bf16, beta_exp, tile_type, tr, mmax, hd)

    for i in range(num_types):
        ni = ni_list[i]
        if ni == 0:
            continue
        h = h.at[idx_list[i]].set(h_all[offs[i]: offs[i] + ni])

    # final fc: out_dim << 128 lanes, so keep it out of the kernel (single f32 XLA matmul);
    # rows of types with no ctr-ntype layer keep h == 0 -> h_fc row == fc bias, as in PyTorch.
    h_fc = h @ params["fc_w_t"] + params["fc_b"]
    return h_fc, h


# ---------------------------------------------------------------------------
# Pure-JAX f32 reference (documents the semantics; loose sanity check vs bf16 MXU)
# ---------------------------------------------------------------------------
def reference_forward(features, type_mask_np, params):
    n = type_mask_np.shape[0]
    hd, out_dim = params["fc_w_t"].shape
    h = jnp.zeros((n, hd), jnp.float32)
    for i, p in enumerate(params["ctr_ntype"]):
        idx = np.where(type_mask_np == i)[0]
        if idx.size == 0:
            continue
        x_i = features[idx]
        hdp, a = p["fc1_w_t"].shape
        m = p["W_mp"].shape[1] // hdp
        outs = []
        for mm in range(m):
            z = x_i @ p["W_mp"][:, mm * hdp:(mm + 1) * hdp]
            outs.append(jnp.where(z > 0, z, jnp.exp(jnp.minimum(z, 0.0)) - 1.0))
        logits = [jnp.mean(jnp.tanh(o @ p["fc1_w_t"] + p["fc1_b"]), axis=0) @ p["fc2_w"]
                  for o in outs]
        beta = jax.nn.softmax(jnp.concatenate(logits, axis=0), axis=0)     # (M,)
        h_i = sum(beta[mm] * outs[mm] for mm in range(m))
        h = h.at[idx].set(h_i)
    h_fc = h @ params["fc_w_t"] + params["fc_b"]
    return h_fc, h


def xavier_normal(key, shape, fan_in, fan_out, gain=1.414):
    std = gain * np.sqrt(2.0 / (fan_in + fan_out))
    return std * jax.random.normal(key, shape, dtype=jnp.float32)


if __name__ == "__main__":
    # small shapes consistent with the module (MAGNN defaults: 8 heads, attn_vec_dim 128)
    N = 1024
    in_dim = 16
    num_heads = 8
    out_dim = 8
    attn_vec_dim = 128
    num_metapaths_list = [2, 3]          # two node types
    HD = in_dim * num_heads              # 128 -> lane-dense h
    TILE_ROWS = 1024                     # clamped to the largest node-type count inside

    key = jax.random.PRNGKey(0)
    k_feat, k_fc, k_rest = jax.random.split(key, 3)

    features = jax.random.normal(k_feat, (N, in_dim), dtype=jnp.float32)
    type_mask = np.array([0] * (N // 2) + [1] * (N - N // 2), dtype=np.int32)

    ctr_params = []
    keys = jax.random.split(k_rest, 3 * len(num_metapaths_list))
    for i, M in enumerate(num_metapaths_list):
        k0, k1, k2 = keys[3 * i: 3 * i + 3]
        ctr_params.append({
            # stand-in per-metapath encoders, stacked lane-dense: (in_dim, M*HD)
            "W_mp": xavier_normal(k0, (in_dim, M * HD), in_dim, HD),
            "fc1_w_t": xavier_normal(k1, (HD, attn_vec_dim), HD, attn_vec_dim),
            "fc1_b": jnp.zeros((1, attn_vec_dim), dtype=jnp.float32),
            "fc2_w": xavier_normal(k2, (attn_vec_dim, 1), attn_vec_dim, 1),
        })

    params = {
        "ctr_ntype": ctr_params,
        "fc_w_t": xavier_normal(k_fc, (HD, out_dim), HD, out_dim),   # fc.weight^T
        "fc_b": jnp.zeros((1, out_dim), dtype=jnp.float32),          # fc.bias
    }

    h_fc, h = magnn_nc_layer_forward(features, type_mask, params, in_dim, num_heads,
                                     tile_rows=TILE_ROWS)
    jax.block_until_ready((h_fc, h))
    assert h_fc.shape == (N, out_dim) and h.shape == (N, HD)
    assert bool(jnp.all(jnp.isfinite(h_fc))) and bool(jnp.all(jnp.isfinite(h)))

    # loose sanity check vs f32 reference (kernel uses bf16 MXU inputs, f32 accumulate)
    h_fc_ref, h_ref = reference_forward(features, type_mask, params)
    rel = lambda a, b: float(jnp.linalg.norm(a - b) / (jnp.linalg.norm(b) + 1e-6))
    assert rel(h, h_ref) < 0.05, rel(h, h_ref)
    assert rel(h_fc, h_fc_ref) < 0.05, rel(h_fc, h_fc_ref)

    print("KERNEL_OK")
</pallas_src>

<mosaic_0001>
module attributes {stable_mosaic.version = 11 : i64} {
  func.func @kernel(%arg0: i32, %arg1: memref<2xi32, #tpu.memory_space<smem>>, %arg2: memref<2xi32, #tpu.memory_space<smem>>, %arg3: memref<512x16xbf16, #tpu.memory_space<vmem>>, %arg4: memref<1x16x384xbf16, #tpu.memory_space<vmem>>, %arg5: memref<1x128x128xbf16, #tpu.memory_space<vmem>>, %arg6: memref<1x1x128xf32, #tpu.memory_space<vmem>>, %arg7: memref<1x1x384xf32, #tpu.memory_space<vmem>>) attributes {dimension_semantics = [#tpu.dimension_semantics<arbitrary>], iteration_bounds = array<i64: 2>, scalar_prefetch = 2 : i64, scratch_operands = 0 : i64, tpu.core_type = #tpu.core_type<tc>, window_params = [{transform_indices = @transform_0, window_bounds = array<i64: 512, 16>}, {transform_indices = @transform_1, window_bounds = array<i64: 1, 16, 384>}, {transform_indices = @transform_2, window_bounds = array<i64: 1, 128, 128>}, {transform_indices = @transform_3, window_bounds = array<i64: 1, 1, 128>}, {transform_indices = @transform_4, window_bounds = array<i64: 1, 1, 384>}]} {
    %0 = arith.index_cast %arg0 : i32 to index
    %1 = memref.load %arg2[%0] : memref<2xi32, #tpu.memory_space<smem>>
    %c1_i32 = arith.constant 1 : i32
    %2 = arith.cmpi eq, %1, %c1_i32 : i32
    %3 = arith.extui %2 : i1 to i32
    %c0_i32 = arith.constant 0 : i32
    %4 = arith.cmpi ne, %3, %c0_i32 : i32
    scf.if %4 {
      %cst_25 = arith.constant 0.000000e+00 : f32
      %50 = vector.broadcast %cst_25 : f32 to vector<1x384xf32>
      %c0_26 = arith.constant 0 : index
      %c0_27 = arith.constant 0 : index
      %c0_28 = arith.constant 0 : index
      %51 = vector.load %arg7[%c0_26, %c0_27, %c0_28] : memref<1x1x384xf32, #tpu.memory_space<vmem>>, vector<1x1x384xf32>
      %52 = vector.shape_cast %51 : vector<1x1x384xf32> to vector<1x384xf32>
      %53 = vector.shape_cast %50 : vector<1x384xf32> to vector<1x1x384xf32>
      tpu.vector_store %arg7[%c0_26, %c0_27, %c0_28], %53 {strides = array<i32>} : memref<1x1x384xf32, #tpu.memory_space<vmem>>, vector<1x1x384xf32>,
    } else {
    }
    %c0 = arith.constant 0 : index
    %c0_0 = arith.constant 0 : index
    %5 = vector.load %arg3[%c0, %c0_0] : memref<512x16xbf16, #tpu.memory_space<vmem>>, vector<512x16xbf16>
    %c0_1 = arith.constant 0 : index
    %c0_2 = arith.constant 0 : index
    %c0_3 = arith.constant 0 : index
    %6 = vector.load %arg4[%c0_1, %c0_2, %c0_3] : memref<1x16x384xbf16, #tpu.memory_space<vmem>>, vector<1x16x384xbf16>
    %7 = vector.shape_cast %6 : vector<1x16x384xbf16> to vector<16x384xbf16>
    %cst = arith.constant dense<0.000000e+00> : vector<512x384xf32>
    %8 = tpu.matmul %5, %7, %cst {dimension_numbers = #tpu.dot_dimension_numbers<[1], [0], [0], [1], [0, 0, 1, 1], [], []>} : vector<512x16xbf16>, vector<16x384xbf16>, vector<512x384xf32> -> vector<512x384xf32>
    %cst_4 = arith.constant 0.000000e+00 : f32
    %9 = vector.broadcast %cst_4 : f32 to vector<512x384xf32>
    %10 = arith.cmpf ogt, %8, %9 : vector<512x384xf32>
    %cst_5 = arith.constant 0.000000e+00 : f32
    %11 = vector.broadcast %cst_5 : f32 to vector<512x384xf32>
    %12 = arith.minimumf %8, %11 : vector<512x384xf32>
    %13 = math.exp %12 : vector<512x384xf32>
    %cst_6 = arith.constant 1.000000e+00 : f32
    %14 = vector.broadcast %cst_6 : f32 to vector<512x384xf32>
    %15 = arith.subf %13, %14 : vector<512x384xf32>
    %16 = arith.select %10, %8, %15 : vector<512x384xi1>, vector<512x384xf32>
    %17 = arith.truncf %16 : vector<512x384xf32> to vector<512x384xbf16>
    %c0_7 = arith.constant 0 : index
    %c0_8 = arith.constant 0 : index
    %c0_9 = arith.constant 0 : index
    %18 = vector.load %arg5[%c0_7, %c0_8, %c0_9] : memref<1x128x128xbf16, #tpu.memory_space<vmem>>, vector<1x128x128xbf16>
    %19 = vector.shape_cast %18 : vector<1x128x128xbf16> to vector<128x128xbf16>
    %c0_10 = arith.constant 0 : index
    %c0_11 = arith.constant 0 : index
    %c0_12 = arith.constant 0 : index
    %20 = vector.load %arg6[%c0_10, %c0_11, %c0_12] : memref<1x1x128xf32, #tpu.memory_space<vmem>>, vector<1x1x128xf32>
    %21 = vector.shape_cast %20 : vector<1x1x128xf32> to vector<1x128xf32>
    %22 = vector.extract_strided_slice %17 {offsets = [0, 0], sizes = [512, 128], strides = [1, 1]} : vector<512x384xbf16> to vector<512x128xbf16>
    %cst_13 = arith.constant dense<0.000000e+00> : vector<512x128xf32>
    %23 = tpu.matmul %22, %19, %cst_13 {dimension_numbers = #tpu.dot_dimension_numbers<[1], [0], [0], [1], [0, 0, 1, 1], [], []>} : vector<512x128xbf16>, vector<128x128xbf16>, vector<512x128xf32> -> vector<512x128xf32>
    %24 = vector.broadcast %21 : vector<1x128xf32> to vector<512x128xf32>
    %25 = arith.addf %23, %24 : vector<512x128xf32>
    %26 = math.tanh %25 : vector<512x128xf32>
    %cst_14 = arith.constant dense<0.000000e+00> : vector<128xf32>
    %27 = vector.multi_reduction <add>, %26, %cst_14 [0] : vector<512x128xf32> to vector<128xf32>
    %28 = vector.shape_cast %27 : vector<128xf32> to vector<1x128xf32>
    %29 = vector.extract_strided_slice %17 {offsets = [0, 128], sizes = [512, 128], strides = [1, 1]} : vector<512x384xbf16> to vector<512x128xbf16>
    %cst_15 = arith.constant dense<0.000000e+00> : vector<512x128xf32>
    %30 = tpu.matmul %29, %19, %cst_15 {dimension_numbers = #tpu.dot_dimension_numbers<[1], [0], [0], [1], [0, 0, 1, 1], [], []>} : vector<512x128xbf16>, vector<128x128xbf16>, vector<512x128xf32> -> vector<512x128xf32>
    %31 = vector.broadcast %21 : vector<1x128xf32> to vector<512x128xf32>
    %32 = arith.addf %30, %31 : vector<512x128xf32>
    %33 = math.tanh %32 : vector<512x128xf32>
    %cst_16 = arith.constant dense<0.000000e+00> : vector<128xf32>
    %34 = vector.multi_reduction <add>, %33, %cst_16 [0] : vector<512x128xf32> to vector<128xf32>
    %35 = vector.shape_cast %34 : vector<128xf32> to vector<1x128xf32>
    %36 = vector.extract_strided_slice %17 {offsets = [0, 256], sizes = [512, 128], strides = [1, 1]} : vector<512x384xbf16> to vector<512x128xbf16>
    %cst_17 = arith.constant dense<0.000000e+00> : vector<512x128xf32>
    %37 = tpu.matmul %36, %19, %cst_17 {dimension_numbers = #tpu.dot_dimension_numbers<[1], [0], [0], [1], [0, 0, 1, 1], [], []>} : vector<512x128xbf16>, vector<128x128xbf16>, vector<512x128xf32> -> vector<512x128xf32>
    %38 = vector.broadcast %21 : vector<1x128xf32> to vector<512x128xf32>
    %39 = arith.addf %37, %38 : vector<512x128xf32>
    %40 = math.tanh %39 : vector<512x128xf32>
    %cst_18 = arith.constant dense<0.000000e+00> : vector<128xf32>
    %41 = vector.multi_reduction <add>, %40, %cst_18 [0] : vector<512x128xf32> to vector<128xf32>
    %42 = vector.shape_cast %41 : vector<128xf32> to vector<1x128xf32>
    %c0_19 = arith.constant 0 : index
    %c0_20 = arith.constant 0 : index
    %c0_21 = arith.constant 0 : index
    %43 = vector.load %arg7[%c0_19, %c0_20, %c0_21] : memref<1x1x384xf32, #tpu.memory_space<vmem>>, vector<1x1x384xf32>
    %44 = vector.shape_cast %43 : vector<1x1x384xf32> to vector<1x384xf32>
    %45 = tpu.concatenate %28, %35, %42 in 1 : vector<1x128xf32>, vector<1x128xf32>, vector<1x128xf32> -> vector<1x384xf32>
    %46 = arith.addf %44, %45 : vector<1x384xf32>
    %c0_22 = arith.constant 0 : index
    %c0_23 = arith.constant 0 : index
    %c0_24 = arith.constant 0 : index
    %47 = vector.load %arg7[%c0_22, %c0_23, %c0_24] : memref<1x1x384xf32, #tpu.memory_space<vmem>>, vector<1x1x384xf32>
    %48 = vector.shape_cast %47 : vector<1x1x384xf32> to vector<1x384xf32>
    %49 = vector.shape_cast %46 : vector<1x384xf32> to vector<1x1x384xf32>
    tpu.vector_store %arg7[%c0_22, %c0_23, %c0_24], %49 {strides = array<i32>} : memref<1x1x384xf32, #tpu.memory_space<vmem>>, vector<1x1x384xf32>,
    return
  }
  func.func @transform_0(%arg0: i32, %arg1: memref<2xi32, #tpu.memory_space<smem>>, %arg2: memref<2xi32, #tpu.memory_space<smem>>) -> (i32, i32) {
    %c0_i32 = arith.constant 0 : i32
    %c0_i32_0 = arith.constant 0 : i32
    return %arg0, %c0_i32 : i32, i32
  }
  func.func @transform_1(%arg0: i32, %arg1: memref<2xi32, #tpu.memory_space<smem>>, %arg2: memref<2xi32, #tpu.memory_space<smem>>) -> (i32, i32, i32) {
    %0 = arith.index_cast %arg0 : i32 to index
    %1 = memref.load %arg1[%0] : memref<2xi32, #tpu.memory_space<smem>>
    %c0_i32 = arith.constant 0 : i32
    %c0_i32_0 = arith.constant 0 : i32
    %c0_i32_1 = arith.constant 0 : i32
    return %1, %c0_i32, %c0_i32_0 : i32, i32, i32
  }
  func.func @transform_2(%arg0: i32, %arg1: memref<2xi32, #tpu.memory_space<smem>>, %arg2: memref<2xi32, #tpu.memory_space<smem>>) -> (i32, i32, i32) {
    %0 = arith.index_cast %arg0 : i32 to index
    %1 = memref.load %arg1[%0] : memref<2xi32, #tpu.memory_space<smem>>
    %c0_i32 = arith.constant 0 : i32
    %c0_i32_0 = arith.constant 0 : i32
    %c0_i32_1 = arith.constant 0 : i32
    return %1, %c0_i32, %c0_i32_0 : i32, i32, i32
  }
  func.func @transform_3(%arg0: i32, %arg1: memref<2xi32, #tpu.memory_space<smem>>, %arg2: memref<2xi32, #tpu.memory_space<smem>>) -> (i32, i32, i32) {
    %0 = arith.index_cast %arg0 : i32 to index
    %1 = memref.load %arg1[%0] : memref<2xi32, #tpu.memory_space<smem>>
    %c0_i32 = arith.constant 0 : i32
    %c0_i32_0 = arith.constant 0 : i32
    %c0_i32_1 = arith.constant 0 : i32
    return %1, %c0_i32, %c0_i32_0 : i32, i32, i32
  }
  func.func @transform_4(%arg0: i32, %arg1: memref<2xi32, #tpu.memory_space<smem>>, %arg2: memref<2xi32, #tpu.memory_space<smem>>) -> (i32, i32, i32) {
    %0 = arith.index_cast %arg0 : i32 to index
    %1 = memref.load %arg1[%0] : memref<2xi32, #tpu.memory_space<smem>>
    %c0_i32 = arith.constant 0 : i32
    %c0_i32_0 = arith.constant 0 : i32
    %c0_i32_1 = arith.constant 0 : i32
    return %1, %c0_i32, %c0_i32_0 : i32, i32, i32
  }
}

</mosaic_0001>

<bundles_post_ra>
// kernel: tpu_custom_call.1
= control target key start
LH: loop header
LB: loop body
LE: loop exit
PB: predicated region body
PF: predicated region fallthrough
CT: control target
= control target key end

     0   :  { %s5501_s27 = smov [#allocation3]   ;;  %s5502_s28 = smov [#allocation4]   ;;  %s7190_s0 = inlined_call_operand.vmem [shape: s32[2], index: 0, kind: input, shape index: {}]   ;;  %s7191_s2 = inlined_call_operand.vmem [shape: bf16[1024,16], index: 2, kind: input, shape index: {}]   ;;  %s7192_s3 = inlined_call_operand.vmem [shape: bf16[2,16,384], index: 3, kind: input, shape index: {}]   ;;  %s7193_s4 = inlined_call_operand.vmem [shape: bf16[2,128,128], index: 4, kind: input, shape index: {}]   ;;  %s7194_s5 = inlined_call_operand.vmem [shape: f32[2,1,128], index: 5, kind: input, shape index: {}]   ;;  %s7195_s6 = inlined_call_operand.hbm [shape: f32[2,1,384], index: 6, kind: output, shape index: {}]   ;;  %s7196_s1 = inlined_call_operand.vmem [shape: s32[2], index: 1, kind: input, shape index: {}]  }
   0x1   :  { %7198 = sst [smem:[#allocation26_spill]] %s7191_s2  ;;  %s12_s23 = sshll.u32 %s7190_s0, 4  ;;  %s13_s23 = int_to_ptr.vmem [resolvable:$true] %s12_s23 }
   0x2   :  { %s17_s26 = sshll.u32 %s7196_s1, 4  ;;  %s18_s26 = int_to_ptr.vmem [resolvable:$true] %s17_s26 }
   0x3   :  { %15 = dma.vmem_to_smem %s13_s23, 16, %s5501_s27, [#allocation2] }
   0x4   :  { %20 = dma.vmem_to_smem %s18_s26, 16, %s5502_s28, [#allocation2] }
   0x5   :  { %5479 = dma.done.wait [#allocation2], 32 }
   0x6   :  { %5480 = vsyncadd [#allocation2], 4294967264 }
   0x7   :  { %23 = sfence }
   0x8   :  { %24 = vsyncpa [#allocation6], 0 }
   0x9   :  { %26 = vsyncpa [#allocation6 + $0x1], 0  ;;  %s5545_s29 = smov 0   ;;  %s5547_s30 = smov 0  }
   0xa   :  { %s5549_s0 = smov 0   ;;  %s5551_s7 = smov 0  }
   0xb LB: > { %s5566_s1 = sadd.s32 4294967295, %s5499_s7   ;;  %s4042_s8 = sadd.s32 4294967294, %s5499_s7   ;;  %s5499_s7 = sphi %s5551_s7, %s7238_s7   ;;  %s5495_s0 = sphi %s5549_s0, %s7237_s0   ;;  %s5491_s30 = sphi %s5547_s30, %s7236_s30   ;;  %s5487_s29 = sphi %s5545_s29, %s7235_s29  }
   0xc   : > { %s5570_s9 = sadd.s32 1, %s5499_s7   ;;  %s146_s10 = sld [smem:[#allocation3 + %s5499_s7]] }
   0xd   : > { %s147_s11 = sld [smem:[#allocation3 + %s5570_s9]]  ;;  %p161_p0 = scmp.ne.s32.totalorder %s5495_s0, %s5491_s30 }
   0xe   : > { %p162_p1 = scmp.eq.s32.totalorder %s5566_s1, 1  ;;  %p167_p2 = scmp.ne.s32.totalorder %s5491_s30, %s5487_s29 }
   0xf   : > { %p168_p3 = scmp.eq.s32.totalorder %s4042_s8, 1  ;;  %p4045_p5 = scmp.ge.s32.totalorder %s5499_s7, 1 }
  0x10   : > { %p5579_p4 = por %p162_p1, %p161_p0  ;;  %p223_p7 = scmp.lt.s32.totalorder %s5499_s7, 3 }
  0x11   : > { %p5584_p6 = por %p168_p3, %p167_p2  ;;  %s151_s14 = sadd.s32 1, %s5495_s0 }
  0x12   : > { %p224_p8 = pnand %p4045_p5, %p223_p7 }
  0x13   : > { %s148_s15 = ssub.s32 %s146_s10, %s147_s11 }
  0x14   : > { %p149_p9 = scmp.eq.s32.totalorder %s148_s15, 0  ;;  %227 = sbr.rel (%p224_p8) target bundleno = 1135 (0x46f), region = 36 }
  0x16   : > { %s5591_s16 = scalar_select %p149_p9, %s5495_s0, %s151_s14  }
  0x19   : > { %s7197_s17 = sand.u32 1, %s5491_s30   ;;  %s4046_s18 = sshll.u32 %s5566_s1, 6 }
  0x1a   : > { %s4560_s19 = smul.u32 3, %s7197_s17  ;;  %p266_p10 = scmp.lt.s32.totalorder %s4046_s18, 127 }
  0x1b   : > { %s271_s20 = sld [smem:[#allocation3 + %s5566_s1]] }
  0x1c   : > { %s278_s21 = sld [smem:[#allocation3 + %s5566_s1]]  ;;  %s7240_s18 = smov (!%p266_p10, %s4046_s18), 127 }
  0x1d   : > { %s285_s22 = sld [smem:[#allocation3 + %s5566_s1]]  ;;  %s4047_s23 = sshll.u32 %s7240_s18, 2 }
  0x1e   : > { %s292_s24 = sld [smem:[#allocation4 + %s5566_s1]] }
  0x1f   : > { %s7201_s2 = sld [smem:[#allocation26_spill]] }
  0x21   : > { %p272_p11 = scmp.lt.s32.totalorder %s271_s20, 1 }
  0x22   : > { %p279_p12 = scmp.lt.s32.totalorder %s278_s21, 1 }
  0x23   : > { %s7242_s20 = smov (!%p272_p11, %s271_s20), 1  ;;  %p286_p13 = scmp.lt.s32.totalorder %s285_s22, 1 }
  0x24   : > { %s7244_s21 = smov (!%p279_p12, %s278_s21), 1  ;;  %s4561_s28 = smul.u32 24, %s7242_s20 }
  0x25   : > { %s5604_s27 = scalar_lea.vmem %s7201_s2, %s4047_s23  ;;  %s4514_s8 = sshll.u32 %s7244_s21, 6 }
  0x26   : > { %s276_s14 = scalar_lea.vmem %s7192_s3, %s4561_s28  ;;  %s5612_s18 = scalar_lea.vmem %s7193_s4, %s4514_s8 }
  0x27   : > { %s7246_s22 = smov (!%p286_p13, %s285_s22), 1  ;;  %s5619_s2 = scalar_lea.vmem [#allocation5], %s4560_s19 }
  0x28   : > { %s5617_s26 = scalar_lea.vmem %s7194_s5, %s7246_s22  ;;  %p4051_p0 = scmp.ne.s32.totalorder %s292_s24, 1 }
  0x2a   : > { %296 = sbr.rel (%p4051_p0) target bundleno = 51 (0x33), region = 40 }
  0x2f   : > { %v297_v0 = vlaneseq  ;;  %v5503_v1 = vmov 0.0  }
  0x31   : > { %vm299_vm0 = vcmp.lt.s32.totalorder %v297_v0, 384 }
  0x32   : > { %301 = vst.msk [vmem:[%s5619_s2] sm:$0x7] %vm299_vm0, %v5503_v1 }
  0x33 PF: > { %v4182_v2 = vld [vmem:[%s276_s14] sm:$0xf]  ;;  %v4548_v3 = vld [vmem:[%s276_s14 + $0x8] sm:$0xf0]  ;;  %v4547_v4 = vld [vmem:[%s276_s14 + $0x4] sm:$0xf] }
  0x34   : > { %v4183_v5 = vor.u32 %v4548_v3, %v4182_v2  ;;  %v4184_v6 = vld [vmem:[%s276_s14 + $0xc] sm:$0xf0]  ;;  %v4515_v7 = vld [vmem:[%s5604_s27] sm:$0xff]  ;;  %v4190_v10 = vld [vmem:[%s276_s14 + $0x8] sm:$0xf]  ;;  %vm546_vm1 = vcmask 130048  }
  0x35   : > { %v4187_v8 = vor.u32 %v4547_v4, %v4184_v6  ;;  %v4531_v9 = vld [vmem:[%s5604_s27 + $0x80] sm:$0xff]  ;;  %v4549_v11 = vld [vmem:[%s276_s14 + $0x10] sm:$0xf0]  ;;  %v4516_v13 = vld [vmem:[%s5604_s27 + $0x8] sm:$0xff]  ;;  %s4563_s17 = scalar_select %p5579_p4, [#allocation3], [#allocation7] }
  0x36   : > { %650 = vmatpush.bf16.msra.mxu0 %v4183_v5  ;;  %4558 = vmatpush.bf16.msra.mxu2 %v4183_v5  ;;  %v4191_v12 = vor.u32 %v4549_v11, %v4190_v10  ;;  %v4532_v14 = vld [vmem:[%s5604_s27 + $0x88] sm:$0xff]  ;;  %v4517_v15 = vld [vmem:[%s5604_s27 + $0x10] sm:$0xff]  ;;  %v4518_v17 = vld [vmem:[%s5604_s27 + $0x18] sm:$0xff]  ;;  %s7248_s1 = smov (!%p5579_p4, %s5566_s1), 0  ;;  %s7234_s28 = sand.u32 1, %s5491_s30  }
  0x37   : > { %4559 = vmatpush.bf16.msra.mxu3 %v4187_v8  ;;  %819 = vmatpush.bf16.msra.mxu1 %v4187_v8  ;;  %v4533_v16 = vld [vmem:[%s5604_s27 + $0x90] sm:$0xff]  ;;  %v4534_v18 = vld [vmem:[%s5604_s27 + $0x98] sm:$0xff]  ;;  %v4519_v19 = vld [vmem:[%s5604_s27 + $0x20] sm:$0xff]  ;;  %s3941_s19 = sld [smem:[%s4563_s17 + %s7248_s1]]  ;;  %s3947_s1 = sshll.u32 %s5619_s2, 4  ;;  %s3948_s1 = int_to_ptr.vmem [resolvable:$true] %s3947_s1 }
  0x38   : > { %v4535_v20 = vld [vmem:[%s5604_s27 + $0xa0] sm:$0xff]  ;;  %v4520_v21 = vld [vmem:[%s5604_s27 + $0x28] sm:$0xff]  ;;  %v4521_v23 = vld [vmem:[%s5604_s27 + $0x30] sm:$0xff]  ;;  %s3934_s8 = scalar_lea.sflag [#allocation6], %s7234_s28 }
  0x39   : > { %4192 = vmatmul.msk.bf16.vlgmr.msra.gmra.mxu0 %vm546_vm1, %v4515_v7  ;;  %4208 = vmatmul.msk.bf16.vlgmr.msra.gmra.mxu2 %vm546_vm1, %v4531_v9  ;;  %v4536_v22 = vld [vmem:[%s5604_s27 + $0xa8] sm:$0xff]  ;;  %v4537_v24 = vld [vmem:[%s5604_s27 + $0xb0] sm:$0xff]  ;;  %v4522_v25 = vld [vmem:[%s5604_s27 + $0x38] sm:$0xff] }
  0x3a   : > { %988 = vmatpush.bf16.msrb.mxu2 %v4191_v12  ;;  %4240 = vmatmul.msk.bf16.vlgmr.msra.gmra.mxu3 %vm546_vm1, %v4531_v9  ;;  %v4538_v26 = vld [vmem:[%s5604_s27 + $0xb8] sm:$0xff]  ;;  %v4523_v27 = vld [vmem:[%s5604_s27 + $0x40] sm:$0xff]  ;;  %v4524_v41 = vld [vmem:[%s5604_s27 + $0x48] sm:$0xff] }
  0x3b   : > { %4224 = vmatmul.msk.bf16.vlgmr.msra.gmra.mxu1 %vm546_vm1, %v4515_v7  ;;  %v4539_v28 = vld [vmem:[%s5604_s27 + $0xc0] sm:$0xff]  ;;  %v4557_v38 = vld [vmem:[%s5612_s18 + $0x38] sm:$0xff]  ;;  %v4540_v42 = vld [vmem:[%s5604_s27 + $0xc8] sm:$0xff] }
  0x3c   : > { %2690 = vmatpush.bf16.msrb.mxu3 %v4557_v38  ;;  %3120 = vmatpush.bf16.msrb.mxu0 %v4557_v38  ;;  %v4525_v7 = vld [vmem:[%s5604_s27 + $0x50] sm:$0xff] }
  0x3d   : > { %3614 = vmatpush.bf16.msrb.mxu1 %v4557_v38  ;;  %v4541_v8 = vld [vmem:[%s5604_s27 + $0xd0] sm:$0xff]  ;;  %s4562_s20 = smul.u32 3, %s3941_s19 }
  0x3f   : > { %s3945_s24 = scalar_lea.hbm %s7195_s6, %s4562_s20 }
  0x49   : > { %4193 = vmatmul.msk.bf16.gmra.mxu0 %vm546_vm1, %v4516_v13  ;;  %4209 = vmatmul.msk.bf16.gmra.mxu2 %vm546_vm1, %v4532_v14 }
  0x4a   : > { %4241 = vmatmul.msk.bf16.gmra.mxu3 %vm546_vm1, %v4532_v14 }
  0x4b   : > { %4225 = vmatmul.msk.bf16.gmra.mxu1 %vm546_vm1, %v4516_v13 }
  0x59   : > { %4194 = vmatmul.msk.bf16.gmra.mxu0 %vm546_vm1, %v4517_v15  ;;  %4210 = vmatmul.msk.bf16.gmra.mxu2 %vm546_vm1, %v4533_v16 }
  0x5a   : > { %4242 = vmatmul.msk.bf16.gmra.mxu3 %vm546_vm1, %v4533_v16 }
  0x5b   : > { %4226 = vmatmul.msk.bf16.gmra.mxu1 %vm546_vm1, %v4517_v15 }
  0x69   : > { %4195 = vmatmul.msk.bf16.gmra.mxu0 %vm546_vm1, %v4518_v17  ;;  %4211 = vmatmul.msk.bf16.gmra.mxu2 %vm546_vm1, %v4534_v18 }
  0x6a   : > { %4243 = vmatmul.msk.bf16.gmra.mxu3 %vm546_vm1, %v4534_v18 }
  0x6b   : > { %4227 = vmatmul.msk.bf16.gmra.mxu1 %vm546_vm1, %v4518_v17 }
  0x79   : > { %4196 = vmatmul.msk.bf16.gmra.mxu0 %vm546_vm1, %v4519_v19  ;;  %4212 = vmatmul.msk.bf16.gmra.mxu2 %vm546_vm1, %v4535_v20 }
  0x7a   : > { %4244 = vmatmul.msk.bf16.gmra.mxu3 %vm546_vm1, %v4535_v20 }
  0x7b   : > { %4228 = vmatmul.msk.bf16.gmra.mxu1 %vm546_vm1, %v4519_v19 }
  0x89   : > { %4197 = vmatmul.msk.bf16.gmra.mxu0 %vm546_vm1, %v4520_v21  ;;  %4213 = vmatmul.msk.bf16.gmra.mxu2 %vm546_vm1, %v4536_v22 }
  0x8a   : > { %4245 = vmatmul.msk.bf16.gmra.mxu3 %vm546_vm1, %v4536_v22 }
  0x8b   : > { %4229 = vmatmul.msk.bf16.gmra.mxu1 %vm546_vm1, %v4520_v21 }
  0x99   : > { %4198 = vmatmul.msk.bf16.gmra.mxu0 %vm546_vm1, %v4521_v23  ;;  %4214 = vmatmul.msk.bf16.gmra.mxu2 %vm546_vm1, %v4537_v24 }
  0x9a   : > { %4246 = vmatmul.msk.bf16.gmra.mxu3 %vm546_vm1, %v4537_v24 }
  0x9b   : > { %4230 = vmatmul.msk.bf16.gmra.mxu1 %vm546_vm1, %v4521_v23 }
  0xa9   : > { %4199 = vmatmul.msk.bf16.gmra.mxu0 %vm546_vm1, %v4522_v25  ;;  %4215 = vmatmul.msk.bf16.gmra.mxu2 %vm546_vm1, %v4538_v26 }
  0xaa   : > { %4247 = vmatmul.msk.bf16.gmra.mxu3 %vm546_vm1, %v4538_v26 }
  0xab   : > { %4231 = vmatmul.msk.bf16.gmra.mxu1 %vm546_vm1, %v4522_v25 }
  0xb6   : > { %v5672_v29 = vpop.f32.mrf.mxu0 }
  0xb9   : > { %4200 = vmatmul.msk.bf16.gmra.mxu0 %vm546_vm1, %v4523_v27  ;;  %4216 = vmatmul.msk.bf16.gmra.mxu2 %vm546_vm1, %v4539_v28 }
  0xba   : > { %4248 = vmatmul.msk.bf16.gmra.mxu3 %vm546_vm1, %v4539_v28 }
  0xbb   : > { %4232 = vmatmul.msk.bf16.gmra.mxu1 %vm546_vm1, %v4523_v27 }
  0xbc   : > { %v732_v30 = vpop.f32.mrf.mxu2 }
  0xbd   : > { %v1438_v31 = vmin.f32 %v732_v30, 0.0  ;;  %v901_v32 = vpop.f32.mrf.mxu3  ;;  %vm1246_vm3 = vcmp.gt.f32.partialorder %v732_v30, 0.0 }
  0xbe   : > { %v1439_v33 = vmin.f32 %v901_v32, 0.0  ;;  %v5678_v34 = vpop.f32.mrf.mxu0  ;;  %vm1247_vm2 = vcmp.gt.f32.partialorder %v901_v32, 0.0 }
  0xbf   : > { %v1726_v35 = vmul.f32 1.442695, %v1438_v31 }
  0xc0   : > { %v1728_v36 = vmul.f32 1.442695, %v1439_v33 }
  0xc1   : > { %4608 = vpow2.f32 %v1726_v35 }
  0xc2   : > { %4610 = vpow2.f32 %v1728_v36 }
  0xc4   : > { %v734_v37 = vpop.f32.mrf.mxu2 }
  0xc5   : > { %v1441_v39 = vmin.f32 %v734_v37, 0.0  ;;  %v903_v40 = vpop.f32.mrf.mxu3  ;;  %vm1249_vm5 = vcmp.gt.f32.partialorder %v734_v37, 0.0 }
  0xc6   : > { %v1442_v43 = vmin.f32 %v903_v40, 0.0  ;;  %v5683_v44 = vpop.f32.mrf.mxu0  ;;  %vm1250_vm4 = vcmp.gt.f32.partialorder %v903_v40, 0.0 }
  0xc7   : > { %v4609_v45 = vpop.eup %4608  ;;  %v1732_v46 = vmul.f32 1.442695, %v1441_v39 }
  0xc8   : > { %v4611_v47 = vpop.eup %4610  ;;  %v4384_v48 = vadd.f32 -1.0, %v4609_v45  ;;  %v1734_v49 = vmul.f32 1.442695, %v1442_v43  ;;  %v4556_v43 = vld [vmem:[%s5612_s18 + $0x30] sm:$0xff] }
  0xc9   : > { %v4385_v50 = vadd.f32 -1.0, %v4611_v47  ;;  %4612 = vpow2.f32 %v1732_v46  ;;  %4201 = vmatmul.msk.bf16.gmra.mxu0 %vm546_vm1, %v4524_v41  ;;  %4217 = vmatmul.msk.bf16.gmra.mxu2 %vm546_vm1, %v4540_v42  ;;  %v4526_v47 = vld [vmem:[%s5604_s27 + $0x58] sm:$0xff] }
  0xca   : > { %v2206_v51 = vsel %vm1246_vm3, %v732_v30, %v4384_v48  ;;  %4614 = vpow2.f32 %v1734_v49  ;;  %4249 = vmatmul.msk.bf16.gmra.mxu3 %vm546_vm1, %v4540_v42  ;;  %v4542_v48 = vld [vmem:[%s5604_s27 + $0xd8] sm:$0xff]  ;;  %3121 = vmatpush.bf16.msrb.mxu0 %v4556_v43 }
  0xcb   : > { %4233 = vmatmul.msk.bf16.gmra.mxu1 %vm546_vm1, %v4524_v41  ;;  %v2207_v52 = vsel %vm1247_vm2, %v901_v32, %v4385_v50  ;;  %2691 = vmatpush.bf16.msrb.mxu3 %v4556_v43 }
  0xcc   : > { %v2366_v53 = vpack.c.bf16 %v2207_v52, %v2206_v51  ;;  %v737_v54 = vpop.f32.mrf.mxu2  ;;  %3615 = vmatpush.bf16.msrb.mxu1 %v4556_v43 }
  0xcd   : > { %v1444_v55 = vmin.f32 %v737_v54, 0.0  ;;  %v906_v56 = vpop.f32.mrf.mxu3  ;;  %vm1252_vm7 = vcmp.gt.f32.partialorder %v737_v54, 0.0 }
  0xce   : > { %v1445_v57 = vmin.f32 %v906_v56, 0.0  ;;  %v5689_v58 = vpop.f32.mrf.mxu0  ;;  %v2546_v9 = vunpack.c.l.b16 %v2366_v53  ;;  %v3024_v13 = vunpack.c.h.b16 %v2366_v53  ;;  %vm1253_vm6 = vcmp.gt.f32.partialorder %v906_v56, 0.0 }
  0xcf   : > { %v4613_v59 = vpop.eup %4612  ;;  %v1738_v60 = vmul.f32 1.442695, %v1444_v55 }
  0xd0   : > { %v4615_v61 = vpop.eup %4614  ;;  %v4387_v62 = vadd.f32 -1.0, %v4613_v59  ;;  %v1740_v63 = vmul.f32 1.442695, %v1445_v57 }
  0xd1   : > { %v4388_v0 = vadd.f32 -1.0, %v4615_v61  ;;  %4616 = vpow2.f32 %v1738_v60 }
  0xd2   : > { %v2209_v1 = vsel %vm1249_vm5, %v734_v37, %v4387_v62  ;;  %4618 = vpow2.f32 %v1740_v63 }
  0xd3   : > { %v2210_v2 = vsel %vm1250_vm4, %v903_v40, %v4388_v0 }
  0xd4   : > { %v2368_v3 = vpack.c.bf16 %v2210_v2, %v2209_v1  ;;  %v739_v4 = vpop.f32.mrf.mxu2 }
  0xd5   : > { %v1447_v5 = vmin.f32 %v739_v4, 0.0  ;;  %v908_v6 = vpop.f32.mrf.mxu3  ;;  %vm1255_vm9 = vcmp.gt.f32.partialorder %v739_v4, 0.0 }
  0xd6   : > { %v1448_v10 = vmin.f32 %v908_v6, 0.0  ;;  %v5693_v11 = vpop.f32.mrf.mxu0  ;;  %v2547_v12 = vunpack.c.l.b16 %v2368_v3  ;;  %v3025_v14 = vunpack.c.h.b16 %v2368_v3  ;;  %vm1256_vm8 = vcmp.gt.f32.partialorder %v908_v6, 0.0 }
  0xd7   : > { %v4617_v15 = vpop.eup %4616  ;;  %v1744_v16 = vmul.f32 1.442695, %v1447_v5 }
  0xd8   : > { %v4619_v17 = vpop.eup %4618  ;;  %v4390_v18 = vadd.f32 -1.0, %v4617_v15  ;;  %v1746_v19 = vmul.f32 1.442695, %v1448_v10  ;;  %v5695_v20 = vpack.c.b16 %v2547_v12, %v2546_v9  ;;  %v5697_v21 = vpack.c.b16 %v3025_v14, %v3024_v13 }
  0xd9   : > { %v4391_v22 = vadd.f32 -1.0, %v4619_v17  ;;  %4620 = vpow2.f32 %v1744_v16  ;;  %4202 = vmatmul.msk.bf16.gmra.mxu0 %vm546_vm1, %v4525_v7  ;;  %4218 = vmatmul.msk.bf16.gmra.mxu2 %vm546_vm1, %v4541_v8 }
  0xda   : > { %v2212_v23 = vsel %vm1252_vm7, %v737_v54, %v4390_v18  ;;  %4622 = vpow2.f32 %v1746_v19  ;;  %4250 = vmatmul.msk.bf16.gmra.mxu3 %vm546_vm1, %v4541_v8 }
  0xdb   : > { %4234 = vmatmul.msk.bf16.gmra.mxu1 %vm546_vm1, %v4525_v7  ;;  %v2213_v24 = vsel %vm1253_vm6, %v906_v56, %v4391_v22 }
  0xdc   : > { %v2370_v25 = vpack.c.bf16 %v2213_v24, %v2212_v23  ;;  %v742_v26 = vpop.f32.mrf.mxu2  ;;  %v4527_v23 = vld [vmem:[%s5604_s27 + $0x60] sm:$0xff] }
  0xdd   : > { %v1450_v27 = vmin.f32 %v742_v26, 0.0  ;;  %v911_v28 = vpop.f32.mrf.mxu3  ;;  %vm1258_vm11 = vcmp.gt.f32.partialorder %v742_v26, 0.0  ;;  %v4543_v24 = vld [vmem:[%s5604_s27 + $0xe0] sm:$0xff] }
  0xde   : > { %v1451_v30 = vmin.f32 %v911_v28, 0.0  ;;  %v5704_v31 = vpop.f32.mrf.mxu0  ;;  %v2548_v49 = vunpack.c.l.b16 %v2370_v25  ;;  %v3026_v53 = vunpack.c.h.b16 %v2370_v25  ;;  %vm1259_vm10 = vcmp.gt.f32.partialorder %v911_v28, 0.0 }
  0xdf   : > { %v4621_v32 = vpop.eup %4620  ;;  %v1750_v33 = vmul.f32 1.442695, %v1450_v27 }
  0xe0   : > { %v4623_v35 = vpop.eup %4622  ;;  %v4393_v36 = vadd.f32 -1.0, %v4621_v32  ;;  %v1752_v37 = vmul.f32 1.442695, %v1451_v30 }
  0xe1   : > { %v4394_v38 = vadd.f32 -1.0, %v4623_v35  ;;  %4624 = vpow2.f32 %v1750_v33 }
  0xe2   : > { %v2215_v39 = vsel %vm1255_vm9, %v739_v4, %v4393_v36  ;;  %4626 = vpow2.f32 %v1752_v37  ;;  %vm1150_vm9 = vcmp.gt.f32.partialorder %v5672_v29, 0.0 }
  0xe3   : > { %v2216_v40 = vsel %vm1256_vm8, %v908_v6, %v4394_v38 }
  0xe4   : > { %v2372_v41 = vpack.c.bf16 %v2216_v40, %v2215_v39  ;;  %v744_v42 = vpop.f32.mrf.mxu2 }
  0xe5   : > { %v1453_v45 = vmin.f32 %v744_v42, 0.0  ;;  %v913_v46 = vpop.f32.mrf.mxu3  ;;  %vm1261_vm13 = vcmp.gt.f32.partialorder %v744_v42, 0.0 }
  0xe6   : > { %v1454_v50 = vmin.f32 %v913_v46, 0.0  ;;  %v5709_v51 = vpop.f32.mrf.mxu0  ;;  %v2549_v52 = vunpack.c.l.b16 %v2372_v41  ;;  %v3027_v54 = vunpack.c.h.b16 %v2372_v41  ;;  %vm1262_vm12 = vcmp.gt.f32.partialorder %v913_v46, 0.0 }
  0xe7   : > { %v4625_v55 = vpop.eup %4624  ;;  %v1756_v56 = vmul.f32 1.442695, %v1453_v45 }
  0xe8   : > { %v4627_v57 = vpop.eup %4626  ;;  %v4396_v59 = vadd.f32 -1.0, %v4625_v55  ;;  %v1758_v60 = vmul.f32 1.442695, %v1454_v50  ;;  %v5711_v61 = vpack.c.b16 %v2549_v52, %v2548_v49  ;;  %v5713_v62 = vpack.c.b16 %v3027_v54, %v3026_v53  ;;  %v5733_v49 = vpop.f32.mrf.mxu1 }
  0xe9   : > { %v4397_v63 = vadd.f32 -1.0, %v4627_v57  ;;  %4628 = vpow2.f32 %v1756_v56  ;;  %4203 = vmatmul.msk.bf16.gmra.mxu0 %vm546_vm1, %v4526_v47  ;;  %4219 = vmatmul.msk.bf16.gmra.mxu2 %vm546_vm1, %v4542_v48 }
  0xea   : > { %v2218_v0 = vsel %vm1258_vm11, %v742_v26, %v4396_v59  ;;  %4630 = vpow2.f32 %v1758_v60  ;;  %4251 = vmatmul.msk.bf16.gmra.mxu3 %vm546_vm1, %v4542_v48  ;;  %v4555_v60 = vld [vmem:[%s5612_s18 + $0x28] sm:$0xff] }
  0xeb   : > { %4235 = vmatmul.msk.bf16.gmra.mxu1 %vm546_vm1, %v4526_v47  ;;  %v2219_v1 = vsel %vm1259_vm10, %v911_v28, %v4397_v63  ;;  %2692 = vmatpush.bf16.msrb.mxu3 %v4555_v60  ;;  %vm1153_vm10 = vcmp.gt.f32.partialorder %v5678_v34, 0.0 }
  0xec   : > { %v2374_v2 = vpack.c.bf16 %v2219_v1, %v2218_v0  ;;  %v747_v3 = vpop.f32.mrf.mxu2  ;;  %3122 = vmatpush.bf16.msrb.mxu0 %v4555_v60  ;;  %3616 = vmatpush.bf16.msrb.mxu1 %v4555_v60 }
  0xed   : > { %v1456_v4 = vmin.f32 %v747_v3, 0.0  ;;  %v916_v5 = vpop.f32.mrf.mxu3  ;;  %vm1264_vm15 = vcmp.gt.f32.partialorder %v747_v3, 0.0 }
  0xee   : > { %v1457_v6 = vmin.f32 %v916_v5, 0.0  ;;  %v5720_v7 = vpop.f32.mrf.mxu0  ;;  %v2550_v25 = vunpack.c.l.b16 %v2374_v2  ;;  %v3028_v30 = vunpack.c.h.b16 %v2374_v2  ;;  %vm1265_vm14 = vcmp.gt.f32.partialorder %v916_v5, 0.0 }
  0xef   : > { %v4629_v8 = vpop.eup %4628  ;;  %v1762_v9 = vmul.f32 1.442695, %v1456_v4 }
  0xf0   : > { %v4631_v10 = vpop.eup %4630  ;;  %v4399_v12 = vadd.f32 -1.0, %v4629_v8  ;;  %v1764_v13 = vmul.f32 1.442695, %v1457_v6  ;;  %v4544_v6 = vld [vmem:[%s5604_s27 + $0xe8] sm:$0xff]  ;;  %v5747_v8 = vpop.f32.mrf.mxu1 }
  0xf1   : > { %v4400_v14 = vadd.f32 -1.0, %v4631_v10  ;;  %4632 = vpow2.f32 %v1762_v9  ;;  %v4554_v9 = vld [vmem:[%s5612_s18 + $0x20] sm:$0xff] }
  0xf2   : > { %v2221_v15 = vsel %vm1261_vm13, %v744_v42, %v4399_v12  ;;  %4634 = vpow2.f32 %v1764_v13  ;;  %2693 = vmatpush.bf16.msrb.mxu3 %v4554_v9  ;;  %3123 = vmatpush.bf16.msrb.mxu0 %v4554_v9  ;;  %vm1151_vm13 = vcmp.gt.f32.partialorder %v5733_v49, 0.0 }
  0xf3   : > { %v2222_v16 = vsel %vm1262_vm12, %v913_v46, %v4400_v14  ;;  %3617 = vmatpush.bf16.msrb.mxu1 %v4554_v9 }
  0xf4   : > { %v2376_v17 = vpack.c.bf16 %v2222_v16, %v2221_v15  ;;  %v749_v18 = vpop.f32.mrf.mxu2 }
  0xf5   : > { %v1459_v19 = vmin.f32 %v749_v18, 0.0  ;;  %v918_v22 = vpop.f32.mrf.mxu3  ;;  %vm1267_vm2 = vcmp.gt.f32.partialorder %v749_v18, 0.0 }
  0xf6   : > { %v1460_v26 = vmin.f32 %v918_v22, 0.0  ;;  %v5724_v27 = vpop.f32.mrf.mxu0  ;;  %v2551_v28 = vunpack.c.l.b16 %v2376_v17  ;;  %v3029_v32 = vunpack.c.h.b16 %v2376_v17  ;;  %vm1268_vm0 = vcmp.gt.f32.partialorder %v918_v22, 0.0 }
  0xf7   : > { %v4633_v33 = vpop.eup %4632  ;;  %v1768_v35 = vmul.f32 1.442695, %v1459_v19 }
  0xf8   : > { %v4635_v36 = vpop.eup %4634  ;;  %v4402_v37 = vadd.f32 -1.0, %v4633_v33  ;;  %v1770_v38 = vmul.f32 1.442695, %v1460_v26  ;;  %v5726_v39 = vpack.c.b16 %v2551_v28, %v2550_v25  ;;  %v5728_v40 = vpack.c.b16 %v3029_v32, %v3028_v30  ;;  %v4553_v28 = vld [vmem:[%s5612_s18 + $0x18] sm:$0xff] }
  0xf9   : > { %v4403_v41 = vadd.f32 -1.0, %v4635_v36  ;;  %4636 = vpow2.f32 %v1768_v35  ;;  %4204 = vmatmul.msk.bf16.gmra.mxu0 %vm546_vm1, %v4527_v23  ;;  %4220 = vmatmul.msk.bf16.gmra.mxu2 %vm546_vm1, %v4543_v24  ;;  %v1342_v25 = vmin.f32 %v5672_v29, 0.0  ;;  %v1345_v30 = vmin.f32 %v5678_v34, 0.0 }
  0xfa   : > { %v2224_v42 = vsel %vm1264_vm15, %v747_v3, %v4402_v37  ;;  %4638 = vpow2.f32 %v1770_v38  ;;  %4252 = vmatmul.msk.bf16.gmra.mxu3 %vm546_vm1, %v4543_v24  ;;  %3124 = vmatpush.bf16.msrb.mxu0 %v4553_v28  ;;  %vm1156_vm15 = vcmp.gt.f32.partialorder %v5683_v44, 0.0 }
  0xfb   : > { %v2225_v43 = vsel %vm1265_vm14, %v916_v5, %v4403_v41  ;;  %v5744_v5 = vld [vmem:[%s5604_s27 + $0x68] sm:$0xff]  ;;  %4236 = vmatmul.msk.bf16.gmra.mxu1 %vm546_vm1, %v4527_v23  ;;  %2694 = vmatpush.bf16.msrb.mxu3 %v4553_v28  ;;  %vm1154_vm14 = vcmp.gt.f32.partialorder %v5747_v8, 0.0 }
  0xfc   : > { %v2378_v45 = vpack.c.bf16 %v2225_v43, %v2224_v42  ;;  %v752_v46 = vpop.f32.mrf.mxu2  ;;  %v5774_v42 = vpop.f32.mrf.mxu1  ;;  %v4552_v43 = vld [vmem:[%s5612_s18 + $0x10] sm:$0xff]  ;;  %3618 = vmatpush.bf16.msrb.mxu1 %v4553_v28 }
  0xfd   : > { %v1462_v47 = vmin.f32 %v752_v46, 0.0  ;;  %v921_v48 = vpop.f32.mrf.mxu3  ;;  %vm1270_vm3 = vcmp.gt.f32.partialorder %v752_v46, 0.0 }
  0xfe   : > { %v1463_v50 = vmin.f32 %v921_v48, 0.0  ;;  %v5735_v52 = vpop.f32.mrf.mxu0  ;;  %vm1271_vm4 = vcmp.gt.f32.partialorder %v921_v48, 0.0  ;;  %v2552_v23 = vunpack.c.l.b16 %v2378_v45  ;;  %v3030_v24 = vunpack.c.h.b16 %v2378_v45  ;;  %3125 = vmatpush.bf16.msrb.mxu0 %v4552_v43 }
  0xff   : > { %v4637_v53 = vpop.eup %4636  ;;  %v1774_v54 = vmul.f32 1.442695, %v1462_v47  ;;  %v1534_v45 = vmul.f32 1.442695, %v1342_v25  ;;  %2695 = vmatpush.bf16.msrb.mxu3 %v4552_v43 }
 0x100   : > { %v4639_v55 = vpop.eup %4638  ;;  %v4405_v56 = vadd.f32 -1.0, %v4637_v53  ;;  %v1776_v57 = vmul.f32 1.442695, %v1463_v50  ;;  %v1540_v50 = vmul.f32 1.442695, %v1345_v30  ;;  %3619 = vmatpush.bf16.msrb.mxu1 %v4552_v43 }
 0x101   : > { %v4406_v59 = vadd.f32 -1.0, %v4639_v55  ;;  %4640 = vpow2.f32 %v1774_v54  ;;  %v1343_v54 = vmin.f32 %v5733_v49, 0.0 }
 0x102   : > { %v2227_v63 = vsel %vm1267_vm2, %v749_v18, %v4405_v56  ;;  %4642 = vpow2.f32 %v1776_v57 }
 0x103   : > { %v2228_v0 = vsel %vm1268_vm0, %v918_v22, %v4406_v59  ;;  %v1346_v59 = vmin.f32 %v5747_v8, 0.0 }
 0x104   : > { %v2380_v1 = vpack.c.bf16 %v2228_v0, %v2227_v63  ;;  %v5738_v2 = vpop.f32.mrf.mxu2  ;;  %v4551_v63 = vld [vmem:[%s5612_s18 + $0x8] sm:$0xff] }
 0x105   : > { %v1465_v3 = vmin.f32 %v5738_v2, 0.0  ;;  %v5741_v4 = vpop.f32.mrf.mxu3  ;;  %vm1273_vm6 = vcmp.gt.f32.partialorder %v5738_v2, 0.0  ;;  %2696 = vmatpush.bf16.msrb.mxu3 %v4551_v63  ;;  %3126 = vmatpush.bf16.msrb.mxu0 %v4551_v63 }
 0x106   : > { %v1466_v10 = vmin.f32 %v5741_v4, 0.0  ;;  %v5752_v12 = vpop.f32.mrf.mxu0  ;;  %v2553_v15 = vunpack.c.l.b16 %v2380_v1  ;;  %v3031_v19 = vunpack.c.h.b16 %v2380_v1  ;;  %vm1274_vm5 = vcmp.gt.f32.partialorder %v5741_v4, 0.0  ;;  %3620 = vmatpush.bf16.msrb.mxu1 %v4551_v63 }
 0x107   : > { %v4641_v13 = vpop.eup %4640  ;;  %v1780_v14 = vmul.f32 1.442695, %v1465_v3  ;;  %v1536_v3 = vmul.f32 1.442695, %v1343_v54 }
 0x108   : > { %v4643_v16 = vpop.eup %4642  ;;  %v4408_v17 = vadd.f32 -1.0, %v4641_v13  ;;  %v1782_v18 = vmul.f32 1.442695, %v1466_v10  ;;  %v5763_v33 = vpack.c.b16 %v2553_v15, %v2552_v23  ;;  %v5765_v35 = vpack.c.b16 %v3031_v19, %v3030_v24 }
 0x109   : > { %v4409_v22 = vadd.f32 -1.0, %v4643_v16  ;;  %4644 = vpow2.f32 %v1780_v14  ;;  %4205 = vmatmul.msk.bf16.gmra.mxu0 %vm546_vm1, %v5744_v5  ;;  %4221 = vmatmul.msk.bf16.gmra.mxu2 %vm546_vm1, %v4544_v6  ;;  %v1542_v10 = vmul.f32 1.442695, %v1346_v59  ;;  %v1348_v13 = vmin.f32 %v5683_v44, 0.0  ;;  %v4545_v16 = vld [vmem:[%s5604_s27 + $0xf0] sm:$0xff] }
 0x10a   : > { %v2230_v26 = vsel %vm1270_vm3, %v752_v46, %v4408_v17  ;;  %4646 = vpow2.f32 %v1782_v18  ;;  %4253 = vmatmul.msk.bf16.gmra.mxu3 %vm546_vm1, %v4544_v6  ;;  %v5799_v17 = vpop.f32.mrf.mxu1  ;;  %v1351_v18 = vmin.f32 %v5689_v58, 0.0  ;;  %vm1159_vm3 = vcmp.gt.f32.partialorder %v5689_v58, 0.0 }
 0x10b   : > { %v2231_v32 = vsel %vm1271_vm4, %v921_v48, %v4409_v22  ;;  %4237 = vmatmul.msk.bf16.gmra.mxu1 %vm546_vm1, %v5744_v5  ;;  %v1546_v5 = vmul.f32 1.442695, %v1348_v13  ;;  %vm1162_vm4 = vcmp.gt.f32.partialorder %v5693_v11, 0.0 }
 0x10c   : > { %v5767_v36 = vpack.c.bf16 %v2231_v32, %v2230_v26  ;;  %v5769_v37 = vpop.f32.mrf.mxu2  ;;  %v1552_v43 = vmul.f32 1.442695, %v1351_v18  ;;  %v1352_v18 = vmin.f32 %v5799_v17, 0.0 }
 0x10d   : > { %v1468_v38 = vmin.f32 %v5769_v37, 0.0  ;;  %v5772_v41 = vpop.f32.mrf.mxu3  ;;  %vm1276_vm8 = vcmp.gt.f32.partialorder %v5769_v37, 0.0 }
 0x10e   : > { %v1469_v46 = vmin.f32 %v5772_v41, 0.0  ;;  %v5778_v47 = vpop.f32.mrf.mxu0  ;;  %vm1277_vm7 = vcmp.gt.f32.partialorder %v5772_v41, 0.0  ;;  %v2554_v63 = vunpack.c.l.b16 %v5767_v36  ;;  %v3032_v13 = vunpack.c.h.b16 %v5767_v36 }
 0x10f   : > { %v4645_v48 = vpop.eup %4644  ;;  %v1786_v53 = vmul.f32 1.442695, %v1468_v38 }
 0x110   : > { %v4647_v55 = vpop.eup %4646  ;;  %v4411_v56 = vadd.f32 -1.0, %v4645_v48  ;;  %v1788_v57 = vmul.f32 1.442695, %v1469_v46 }
 0x111   : > { %v4412_v60 = vadd.f32 -1.0, %v4647_v55  ;;  %4648 = vpow2.f32 %v1786_v53 }
 0x112   : > { %v2233_v0 = vsel %vm1273_vm6, %v5738_v2, %v4411_v56  ;;  %4650 = vpow2.f32 %v1788_v57  ;;  %v5796_v2 = vld [vmem:[%s5604_s27 + $0x70] sm:$0xff]  ;;  %v5827_v57 = vpop.f32.mrf.mxu1 }
 0x113   : > { %4652 = vpow2.f32 %v1534_v45  ;;  %v2234_v1 = vsel %vm1274_vm5, %v5741_v4, %v4412_v60  ;;  %v4550_v4 = vld [vmem:[%s5612_s18] sm:$0xff]  ;;  %s5455_s18 = scalar_lea.hbm %s7195_s6, 6 }
 0x114   : > { %4654 = vpow2.f32 %v1540_v50  ;;  %v5787_v6 = vpack.c.bf16 %v2234_v1, %v2233_v0  ;;  %v5789_v9 = vpop.f32.mrf.mxu2  ;;  %2697 = vmatpush.bf16.msrb.mxu3 %v4550_v4  ;;  %3127 = vmatpush.bf16.msrb.mxu0 %v4550_v4 }
 0x115   : > { %v1471_v14 = vmin.f32 %v5789_v9, 0.0  ;;  %v5793_v15 = vpop.f32.mrf.mxu3  ;;  %4656 = vpow2.f32 %v1536_v3  ;;  %3621 = vmatpush.bf16.msrb.mxu1 %v4550_v4  ;;  %vm1279_vm12 = vcmp.gt.f32.partialorder %v5789_v9, 0.0 }
 0x116   : > { %v1472_v19 = vmin.f32 %v5793_v15, 0.0  ;;  %v5806_v22 = vpop.f32.mrf.mxu0  ;;  %4658 = vpow2.f32 %v1542_v10  ;;  %v2555_v0 = vunpack.c.l.b16 %v5787_v6  ;;  %vm1280_vm11 = vcmp.gt.f32.partialorder %v5793_v15, 0.0 }
 0x117   : > { %v4649_v23 = vpop.eup %4648  ;;  %v1792_v24 = vmul.f32 1.442695, %v1471_v14  ;;  %v1349_v10 = vmin.f32 %v5774_v42, 0.0 }
 0x118   : > { %v4651_v25 = vpop.eup %4650  ;;  %v4414_v26 = vadd.f32 -1.0, %v4649_v23  ;;  %v1794_v28 = vmul.f32 1.442695, %v1472_v19  ;;  %v5838_v19 = vpack.c.b16 %v2555_v0, %v2554_v63 }
 0x119   : > { %v4653_v30 = vpop.eup %4652  ;;  %v4415_v32 = vadd.f32 -1.0, %v4651_v25  ;;  %4660 = vpow2.f32 %v1792_v24  ;;  %4206 = vmatmul.msk.bf16.gmra.mxu0 %vm546_vm1, %v5796_v2  ;;  %4222 = vmatmul.msk.bf16.gmra.mxu2 %vm546_vm1, %v4545_v16  ;;  %v3033_v24 = vunpack.c.h.b16 %v5787_v6  ;;  %v1354_v25 = vmin.f32 %v5693_v11, 0.0 }
 0x11a   : > { %v4655_v38 = vpop.eup %4654  ;;  %v2236_v45 = vsel %vm1276_vm8, %v5769_v37, %v4414_v26  ;;  %4662 = vpow2.f32 %v1794_v28  ;;  %4254 = vmatmul.msk.bf16.gmra.mxu3 %vm546_vm1, %v4545_v16  ;;  %v4288_v54 = vadd.f32 -1.0, %v4653_v30  ;;  %7202 = vst [vmem:[#allocation10_spill] sm:$0xff] %v5838_v19  ;;  %v5867_v63 = vpop.f32.mrf.mxu1  ;;  %vm1160_vm8 = vcmp.gt.f32.partialorder %v5799_v17, 0.0 }
 0x11b   : > { %v2237_v46 = vsel %vm1277_vm7, %v5772_v41, %v4415_v32  ;;  %v4657_v53 = vpop.eup %4656  ;;  %v4291_v55 = vadd.f32 -1.0, %v4655_v38  ;;  %4664 = vpow2.f32 %v1546_v5  ;;  %v1548_v32 = vmul.f32 1.442695, %v1349_v10  ;;  %4238 = vmatmul.msk.bf16.gmra.mxu1 %vm546_vm1, %v5796_v2 }
 0x11c   : > { %v5820_v48 = vpack.c.bf16 %v2237_v46, %v2236_v45  ;;  %v5822_v50 = vpop.f32.mrf.mxu2  ;;  %v4659_v59 = vpop.eup %4658  ;;  %4666 = vpow2.f32 %v1552_v43  ;;  %v4289_v28 = vadd.f32 -1.0, %v4657_v53  ;;  %v5847_v38 = vpack.c.b16 %v3033_v24, %v3032_v13 }
 0x11d   : > { %v1474_v37 = vmin.f32 %v5822_v50, 0.0  ;;  %v5825_v56 = vpop.f32.mrf.mxu3  ;;  %v4292_v5 = vadd.f32 -1.0, %v4659_v59  ;;  %v2110_v46 = vsel %vm1150_vm9, %v5672_v29, %v4288_v54  ;;  %v5864_v59 = vld [vmem:[%s5604_s27 + $0x78] sm:$0xff]  ;;  %v2113_v29 = vsel %vm1153_vm10, %v5678_v34, %v4291_v55 }
 0x11e   : > { %v1475_v41 = vmin.f32 %v5825_v56, 0.0  ;;  %v5830_v60 = vpop.f32.mrf.mxu0  ;;  %v1558_v0 = vmul.f32 1.442695, %v1354_v25  ;;  %v2111_v13 = vsel %vm1151_vm13, %v5733_v49, %v4289_v28  ;;  %vm1283_vm0 = vcmp.gt.f32.partialorder %v5825_v56, 0.0 }
 0x11f   : > { %v4661_v1 = vpop.eup %4660  ;;  %v1798_v3 = vmul.f32 1.442695, %v1474_v37  ;;  %v2114_v2 = vsel %vm1154_vm14, %v5747_v8, %v4292_v5  ;;  %vm1282_vm2 = vcmp.gt.f32.partialorder %v5822_v50, 0.0  ;;  %v5889_v8 = vpack.c.bf16 %v2111_v13, %v2110_v46 }
 0x120   : > { %v4663_v14 = vpop.eup %4662  ;;  %v4417_v16 = vadd.f32 -1.0, %v4661_v1  ;;  %v1800_v4 = vmul.f32 1.442695, %v1475_v41  ;;  %v4546_v41 = vld [vmem:[%s5604_s27 + $0xf8] sm:$0xff]  ;;  %v2304_v24 = vpack.c.bf16 %v2114_v2, %v2113_v29  ;;  %v1358_v2 = vmin.f32 %v5867_v63, 0.0 }
 0x121   : > { %v4418_v23 = vadd.f32 -1.0, %v4663_v14  ;;  %4668 = vpow2.f32 %v1798_v3  ;;  %v4665_v36 = vpop.eup %4664  ;;  %v2514_v46 = vunpack.c.l.b16 %v5889_v8  ;;  %vm1157_vm7 = vcmp.gt.f32.partialorder %v5774_v42, 0.0 }
 0x122   : > { %v2239_v26 = vsel %vm1279_vm12, %v5789_v9, %v4417_v16  ;;  %4670 = vpow2.f32 %v1800_v4  ;;  %v4667_v43 = vpop.eup %4666  ;;  %v1554_v9 = vmul.f32 1.442695, %v1352_v18  ;;  %v4294_v54 = vadd.f32 -1.0, %v4665_v36 }
 0x123   : > { %v2240_v30 = vsel %vm1280_vm11, %v5793_v15, %v4418_v23  ;;  %v1357_v15 = vmin.f32 %v5704_v31, 0.0  ;;  %4672 = vpow2.f32 %v1548_v32  ;;  %v4297_v36 = vadd.f32 -1.0, %v4667_v43  ;;  %v5907_v32 = vpop.f32.mrf.mxu1 }
 0x124   : > { %v5849_v45 = vpack.c.bf16 %v2240_v30, %v2239_v26  ;;  %v5852_v6 = vpop.f32.mrf.mxu2  ;;  %4674 = vpow2.f32 %v1554_v9  ;;  %v5896_v25 = vsel %vm1156_vm15, %v5683_v44, %v4294_v54  ;;  %v1360_v30 = vmin.f32 %v5709_v51, 0.0 }
 0x125   : > { %v1477_v53 = vmin.f32 %v5852_v6, 0.0  ;;  %v5861_v37 = vpop.f32.mrf.mxu3  ;;  %v1564_v55 = vmul.f32 1.442695, %v1357_v15  ;;  %v1363_v9 = vmin.f32 %v5720_v7, 0.0  ;;  %v2992_v15 = vunpack.c.h.b16 %v5889_v8 }
 0x126   : > { %v1478_v1 = vmin.f32 %v5861_v37, 0.0  ;;  %v5875_v3 = vpop.f32.mrf.mxu0  ;;  %v2515_v29 = vunpack.c.l.b16 %v2304_v24  ;;  %v2993_v54 = vunpack.c.h.b16 %v2304_v24  ;;  %vm1286_vm5 = vcmp.gt.f32.partialorder %v5861_v37, 0.0 }
 0x127   : > { %v4669_v10 = vpop.eup %4668  ;;  %v1804_v14 = vmul.f32 1.442695, %v1477_v53  ;;  %vm1285_vm6 = vcmp.gt.f32.partialorder %v5852_v6, 0.0  ;;  %vm1165_vm11 = vcmp.gt.f32.partialorder %v5704_v31, 0.0  ;;  %vm1163_vm12 = vcmp.gt.f32.partialorder %v5827_v57, 0.0 }
 0x128   : > { %v4671_v16 = vpop.eup %4670  ;;  %v4420_v4 = vadd.f32 -1.0, %v4669_v10  ;;  %v1806_v34 = vmul.f32 1.442695, %v1478_v1  ;;  %v1355_v1 = vmin.f32 %v5827_v57, 0.0  ;;  %vm1168_vm15 = vcmp.gt.f32.partialorder %v5709_v51, 0.0 }
 0x129   : > { %v4421_v18 = vadd.f32 -1.0, %v4671_v16  ;;  %4676 = vpow2.f32 %v1804_v14  ;;  %4207 = vmatmul.msk.bf16.gmra.mxu0 %vm546_vm1, %v5864_v59  ;;  %4223 = vmatmul.msk.bf16.gmra.mxu2 %vm546_vm1, %v4546_v41 }
 0x12a   : > { %v2242_v49 = vsel %vm1282_vm2, %v5822_v50, %v4420_v4  ;;  %4678 = vpow2.f32 %v1806_v34  ;;  %4255 = vmatmul.msk.bf16.gmra.mxu3 %vm546_vm1, %v4546_v41  ;;  %v4673_v50 = vpop.eup %4672  ;;  %v2557_v4 = vunpack.c.l.b16 %v5849_v45 }
 0x12b   : > { %v2243_v23 = vsel %vm1283_vm0, %v5825_v56, %v4421_v18  ;;  %4680 = vpow2.f32 %v1558_v0  ;;  %v4675_v44 = vpop.eup %4674  ;;  %v2556_v18 = vunpack.c.l.b16 %v5820_v48  ;;  %vm1166_vm0 = vcmp.gt.f32.partialorder %v5867_v63, 0.0 }
 0x12c   : > { %v5899_v26 = vpack.c.bf16 %v2243_v23, %v2242_v49  ;;  %v5901_v28 = vpop.f32.mrf.mxu2  ;;  %4682 = vpow2.f32 %v1564_v55  ;;  %v4295_v23 = vadd.f32 -1.0, %v4673_v50  ;;  %v4298_v24 = vadd.f32 -1.0, %v4675_v44  ;;  %v5938_v44 = vpop.f32.mrf.mxu1  ;;  %4239 = vmatmul.msk.bf16.gmra.mxu1 %vm546_vm1, %v5864_v59 }
 0x12d   : > { %v1480_v56 = vmin.f32 %v5901_v28, 0.0  ;;  %v5905_v5 = vpop.f32.mrf.mxu3  ;;  %v3056_v50 = vpack.c.b16 %v2993_v54, %v2992_v15  ;;  %vm1288_vm10 = vcmp.gt.f32.partialorder %v5901_v28, 0.0 }
 0x12e   : > { %v1481_v53 = vmin.f32 %v5905_v5, 0.0  ;;  %v5913_v41 = vpop.f32.mrf.mxu0  ;;  %v2120_v15 = vsel %vm1160_vm8, %v5799_v17, %v4298_v24  ;;  %vm1289_vm9 = vcmp.gt.f32.partialorder %v5905_v5, 0.0  ;;  %vm1174_vm8 = vcmp.gt.f32.partialorder %v5724_v27, 0.0 }
 0x12f   : > { %v4677_v43 = vpop.eup %4676  ;;  %v1810_v0 = vmul.f32 1.442695, %v1480_v56  ;;  %v1560_v56 = vmul.f32 1.442695, %v1355_v1  ;;  %v1570_v1 = vmul.f32 1.442695, %v1360_v30 }
 0x130   : > { %v4679_v10 = vpop.eup %4678  ;;  %v4423_v13 = vadd.f32 -1.0, %v4677_v43  ;;  %v1812_v14 = vmul.f32 1.442695, %v1481_v53 }
 0x131   : > { %v4424_v16 = vadd.f32 -1.0, %v4679_v10  ;;  %4684 = vpow2.f32 %v1810_v0  ;;  %v4681_v34 = vpop.eup %4680  ;;  %v1566_v0 = vmul.f32 1.442695, %v1358_v2  ;;  %v5930_v10 = vpack.c.b16 %v2557_v4, %v2556_v18 }
 0x132   : > { %v2245_v55 = vsel %vm1285_vm6, %v5852_v6, %v4423_v13  ;;  %4686 = vpow2.f32 %v1812_v14  ;;  %v4683_v49 = vpop.eup %4682  ;;  %v2119_v6 = vsel %vm1159_vm3, %v5689_v58, %v4297_v36  ;;  %v4300_v13 = vadd.f32 -1.0, %v4681_v34 }
 0x133   : > { %v2246_v8 = vsel %vm1286_vm5, %v5861_v37, %v4424_v16  ;;  %7203 = vst [vmem:[#allocation11_spill] sm:$0xff] %v5930_v10  ;;  %v1576_v16 = vmul.f32 1.442695, %v1363_v9  ;;  %v2117_v36 = vsel %vm1157_vm7, %v5774_v42, %v4295_v23  ;;  %4688 = vpow2.f32 %v1560_v56 }
 0x134   : > { %v5925_v53 = vpack.c.bf16 %v2246_v8, %v2245_v55  ;;  %v5927_v43 = vpop.f32.mrf.mxu2  ;;  %v2578_v55 = vpack.c.b16 %v2515_v29, %v2514_v46  ;;  %4690 = vpow2.f32 %v1566_v0  ;;  %v5376_v29 = vld [vmem:[%s5604_s27] sm:$0xff]  ;;  %v5958_v17 = vpack.c.bf16 %v2117_v36, %v5896_v25 }
 0x135   : > { %v1483_v14 = vmin.f32 %v5927_v43, 0.0  ;;  %v5936_v37 = vpop.f32.mrf.mxu3  ;;  %v5960_v54 = vpack.c.bf16 %v2120_v15, %v2119_v6  ;;  %v5965_v18 = vsel %vm1162_vm4, %v5693_v11, %v4300_v13  ;;  %v4303_v8 = vadd.f32 -1.0, %v4683_v49  ;;  %v5981_v13 = vpop.f32.mrf.mxu1 }
 0x136   : > { %v1484_v2 = vmin.f32 %v5936_v37, 0.0  ;;  %v5943_v4 = vpop.f32.mrf.mxu0  ;;  %v3035_v56 = vunpack.c.h.b16 %v5849_v45  ;;  %v1369_v6 = vmin.f32 %v5735_v52, 0.0  ;;  %v2516_v45 = vunpack.c.l.b16 %v5958_v17 }
 0x137   : > { %v4685_v58 = vpop.eup %4684  ;;  %v1816_v34 = vmul.f32 1.442695, %v1483_v14  ;;  %vm1291_vm13 = vcmp.gt.f32.partialorder %v5927_v43, 0.0  ;;  %vm1292_vm14 = vcmp.gt.f32.partialorder %v5936_v37, 0.0  ;;  %v1361_v36 = vmin.f32 %v5907_v32, 0.0 }
 0x138   : > { %v4687_v59 = vpop.eup %4686  ;;  %v4426_v30 = vadd.f32 -1.0, %v4685_v58  ;;  %v1818_v9 = vmul.f32 1.442695, %v1484_v2  ;;  %v2995_v2 = vunpack.c.h.b16 %v5960_v54  ;;  %v2517_v10 = vunpack.c.l.b16 %v5960_v54 }
 0x139   : > { %v4427_v46 = vadd.f32 -1.0, %v4687_v59  ;;  %4692 = vpow2.f32 %v1816_v34  ;;  %4256 = vmatmul.msk.bf16.vlgmr.msrb.gmra.mxu2 %vm546_vm1, %v5376_v29  ;;  %3128 = vmatmul.bf16.vlgmr.msrb.gmra.mxu0 %v3056_v50  ;;  %v4689_v0 = vpop.eup %4688  ;;  %v1364_v59 = vmin.f32 %v5938_v44, 0.0  ;;  %v2558_v29 = vunpack.c.l.b16 %v5899_v26 }
 0x13a   : > { %v2248_v42 = vsel %vm1288_vm10, %v5901_v28, %v4426_v30  ;;  %4694 = vpow2.f32 %v1818_v9  ;;  %2698 = vmatmul.bf16.vlgmr.msrb.gmra.mxu3 %v2578_v55  ;;  %v1366_v28 = vmin.f32 %v5724_v27, 0.0  ;;  %v4691_v14 = vpop.eup %4690  ;;  %v2125_v54 = vsel %vm1165_vm11, %v5704_v31, %v4303_v8 }
 0x13b   : > { %4696 = vpow2.f32 %v1570_v1  ;;  %v2249_v23 = vsel %vm1289_vm9, %v5905_v5, %v4427_v46  ;;  %v3034_v5 = vunpack.c.h.b16 %v5820_v48  ;;  %v1588_v8 = vmul.f32 1.442695, %v1369_v6  ;;  %v5377_v6 = vld [vmem:[%s5604_s27 + $0x8] sm:$0xff] }
 0x13c   : > { %4698 = vpow2.f32 %v1576_v16  ;;  %v5971_v25 = vpack.c.bf16 %v2249_v23, %v2248_v42  ;;  %v5973_v24 = vpop.f32.mrf.mxu2  ;;  %v2994_v16 = vunpack.c.h.b16 %v5958_v17  ;;  %v2559_v42 = vunpack.c.l.b16 %v5925_v53 }
 0x13d   : > { %v1486_v11 = vmin.f32 %v5973_v24, 0.0  ;;  %v5979_v49 = vpop.f32.mrf.mxu3  ;;  %v5994_v30 = vpack.c.b16 %v3035_v56, %v3034_v5  ;;  %v4304_v56 = vadd.f32 -1.0, %v4691_v14  ;;  %v1572_v5 = vmul.f32 1.442695, %v1361_v36 }
 0x13e   : > { %v1487_v50 = vmin.f32 %v5979_v49, 0.0  ;;  %v5985_v1 = vpop.f32.mrf.mxu0  ;;  %v3057_v36 = vpack.c.b16 %v2995_v2, %v2994_v16  ;;  %vm1295_vm2 = vcmp.gt.f32.partialorder %v5979_v49, 0.0  ;;  %vm1294_vm3 = vcmp.gt.f32.partialorder %v5973_v24, 0.0 }
 0x13f   : > { %v4693_v55 = vpop.eup %4692  ;;  %v1822_v58 = vmul.f32 1.442695, %v1486_v11  ;;  %7204 = vst [vmem:[#allocation12_spill] sm:$0xff] %v5994_v30  ;;  %v4301_v11 = vadd.f32 -1.0, %v4689_v0  ;;  %v2126_v16 = vsel %vm1166_vm0, %v5867_v63, %v4304_v56  ;;  %vm1171_vm4 = vcmp.gt.f32.partialorder %v5720_v7, 0.0 }
 0x140   : > { %v4695_v48 = vpop.eup %4694  ;;  %v4429_v34 = vadd.f32 -1.0, %v4693_v55  ;;  %v1824_v15 = vmul.f32 1.442695, %v1487_v50  ;;  %v6003_v55 = vpack.c.b16 %v2559_v42, %v2558_v29  ;;  %v2579_v42 = vpack.c.b16 %v2517_v10, %v2516_v45 }
 0x141   : > { %v4697_v9 = vpop.eup %4696  ;;  %v4430_v46 = vadd.f32 -1.0, %v4695_v48  ;;  %4700 = vpow2.f32 %v1822_v58  ;;  %v6037_v45 = vpack.c.bf16 %v2126_v16, %v2125_v54  ;;  %v1372_v56 = vmin.f32 %v5752_v12, 0.0 }
 0x142   : > { %v4699_v17 = vpop.eup %4698  ;;  %v2251_v23 = vsel %vm1291_vm13, %v5927_v43, %v4429_v34  ;;  %4702 = vpow2.f32 %v1824_v15  ;;  %7205 = vst [vmem:[#allocation13_spill] sm:$0xff] %v6003_v55  ;;  %v1578_v43 = vmul.f32 1.442695, %v1364_v59  ;;  %v4306_v0 = vadd.f32 -1.0, %v4697_v9  ;;  %v6017_v34 = vpop.f32.mrf.mxu1 }
 0x143   : > { %v2252_v50 = vsel %vm1292_vm14, %v5936_v37, %v4430_v46  ;;  %v1582_v15 = vmul.f32 1.442695, %v1366_v28  ;;  %v2123_v46 = vsel %vm1163_vm12, %v5827_v57, %v4301_v11  ;;  %4704 = vpow2.f32 %v1572_v5 }
 0x144   : > { %v6006_v58 = vpack.c.bf16 %v2252_v50, %v2251_v23  ;;  %v6008_v48 = vpop.f32.mrf.mxu2  ;;  %4706 = vpow2.f32 %v1578_v43  ;;  %v6031_v57 = vpack.c.bf16 %v2123_v46, %v5965_v18  ;;  %v6042_v11 = vsel %vm1168_vm15, %v5709_v51, %v4306_v0 }
 0x145   : > { %v1489_v37 = vmin.f32 %v6008_v48, 0.0  ;;  %v6015_v14 = vpop.f32.mrf.mxu3  ;;  %v4309_v18 = vadd.f32 -1.0, %v4699_v17  ;;  %v3037_v43 = vunpack.c.h.b16 %v5925_v53  ;;  %vm1169_vm5 = vcmp.gt.f32.partialorder %v5907_v32, 0.0 }
 0x146   : > { %v1490_v29 = vmin.f32 %v6015_v14, 0.0  ;;  %v6023_v59 = vpop.f32.mrf.mxu0  ;;  %v2996_v53 = vunpack.c.h.b16 %v6031_v57  ;;  %vm1297_vm6 = vcmp.gt.f32.partialorder %v6008_v48, 0.0  ;;  %vm1298_vm7 = vcmp.gt.f32.partialorder %v6015_v14, 0.0 }
 0x147   : > { %v4701_v31 = vpop.eup %4700  ;;  %v1828_v9 = vmul.f32 1.442695, %v1489_v37  ;;  %v1375_v37 = vmin.f32 %v5778_v47, 0.0  ;;  %v2519_v30 = vunpack.c.l.b16 %v6037_v45  ;;  %vm1172_vm9 = vcmp.gt.f32.partialorder %v5938_v44, 0.0 }
 0x148   : > { %v4703_v2 = vpop.eup %4702  ;;  %v4432_v28 = vadd.f32 -1.0, %v4701_v31  ;;  %v1830_v23 = vmul.f32 1.442695, %v1490_v29  ;;  %v2997_v29 = vunpack.c.h.b16 %v6037_v45  ;;  %v2131_v45 = vsel %vm1171_vm4, %v5720_v7, %v4309_v18 }
 0x149   : > { %v4433_v10 = vadd.f32 -1.0, %v4703_v2  ;;  %4708 = vpow2.f32 %v1828_v9  ;;  %4257 = vmatmul.msk.bf16.gmra.mxu2 %vm546_vm1, %v5377_v6  ;;  %3133 = vmatmul.bf16.gmra.mxu0 %v3057_v36  ;;  %v4705_v54 = vpop.eup %4704  ;;  %v1367_v9 = vmin.f32 %v5981_v13, 0.0  ;;  %v1600_v18 = vmul.f32 1.442695, %v1375_v37  ;;  %v5378_v37 = vld [vmem:[%s5604_s27 + $0x10] sm:$0xff] }
 0x14a   : > { %v2254_v63 = vsel %vm1294_vm3, %v5973_v24, %v4432_v28  ;;  %4710 = vpow2.f32 %v1830_v23  ;;  %2703 = vmatmul.bf16.gmra.mxu3 %v2579_v42  ;;  %v6059_v0 = vpop.f32.mrf.mxu1  ;;  %v4707_v36 = vpop.eup %4706  ;;  %v3036_v42 = vunpack.c.h.b16 %v5899_v26  ;;  %v1370_v23 = vmin.f32 %v6017_v34, 0.0 }
 0x14b   : > { %4712 = vpow2.f32 %v1582_v15  ;;  %v2255_v50 = vsel %vm1295_vm2, %v5979_v49, %v4433_v10  ;;  %v2518_v49 = vunpack.c.l.b16 %v6031_v57  ;;  %v2560_v26 = vunpack.c.l.b16 %v5971_v25 }
 0x14c   : > { %4714 = vpow2.f32 %v1588_v8  ;;  %v6048_v5 = vpack.c.bf16 %v2255_v50, %v2254_v63  ;;  %v6050_v24 = vpop.f32.mrf.mxu2  ;;  %v6071_v10 = vpack.c.b16 %v3037_v43, %v3036_v42  ;;  %v2561_v63 = vunpack.c.l.b16 %v6006_v58 }
 0x14d   : > { %v1492_v51 = vmin.f32 %v6050_v24, 0.0  ;;  %v6056_v17 = vpop.f32.mrf.mxu3  ;;  %v4310_v43 = vadd.f32 -1.0, %v4707_v36  ;;  %v1584_v42 = vmul.f32 1.442695, %v1367_v9  ;;  %v3058_v9 = vpack.c.b16 %v2997_v29, %v2996_v53 }
 0x14e   : > { %v1493_v15 = vmin.f32 %v6056_v17, 0.0  ;;  %v6062_v46 = vpop.f32.mrf.mxu0  ;;  %7206 = vst [vmem:[#allocation14_spill] sm:$0xff] %v6071_v10  ;;  %vm1301_vm10 = vcmp.gt.f32.partialorder %v6056_v17, 0.0  ;;  %vm1300_vm11 = vcmp.gt.f32.partialorder %v6050_v24, 0.0  ;;  %vm1177_vm12 = vcmp.gt.f32.partialorder %v5735_v52, 0.0 }
 0x14f   : > { %v4709_v31 = vpop.eup %4708  ;;  %v1834_v8 = vmul.f32 1.442695, %v1492_v51  ;;  %v4307_v51 = vadd.f32 -1.0, %v4705_v54  ;;  %v2132_v53 = vsel %vm1172_vm9, %v5938_v44, %v4310_v43  ;;  %v1378_v43 = vmin.f32 %v5806_v22, 0.0 }
 0x150   : > { %v4711_v16 = vpop.eup %4710  ;;  %v4435_v2 = vadd.f32 -1.0, %v4709_v31  ;;  %v1836_v28 = vmul.f32 1.442695, %v1493_v15  ;;  %v6080_v31 = vpack.c.b16 %v2561_v63, %v2560_v26  ;;  %v2580_v26 = vpack.c.b16 %v2519_v30, %v2518_v49 }
 0x151   : > { %v4713_v57 = vpop.eup %4712  ;;  %v4436_v6 = vadd.f32 -1.0, %v4711_v16  ;;  %4716 = vpow2.f32 %v1834_v8  ;;  %v6114_v49 = vpack.c.bf16 %v2132_v53, %v2131_v45  ;;  %vm1175_vm13 = vcmp.gt.f32.partialorder %v5981_v13, 0.0 }
 0x152   : > { %v4715_v50 = vpop.eup %4714  ;;  %v2257_v55 = vsel %vm1297_vm6, %v6008_v48, %v4435_v2  ;;  %4718 = vpow2.f32 %v1836_v28  ;;  %7207 = vst [vmem:[#allocation15_spill] sm:$0xff] %v6080_v31  ;;  %v1590_v48 = vmul.f32 1.442695, %v1370_v23  ;;  %v4312_v54 = vadd.f32 -1.0, %v4713_v57  ;;  %v6094_v2 = vpop.f32.mrf.mxu1 }
 0x153   : > { %v2258_v15 = vsel %vm1298_vm7, %v6015_v14, %v4436_v6  ;;  %v1594_v28 = vmul.f32 1.442695, %v1372_v56  ;;  %4720 = vpow2.f32 %v1584_v42  ;;  %v2521_v10 = vunpack.c.l.b16 %v6114_v49 }
 0x154   : > { %v6083_v8 = vpack.c.bf16 %v2258_v15, %v2257_v55  ;;  %v6085_v16 = vpop.f32.mrf.mxu2  ;;  %v2129_v55 = vsel %vm1169_vm5, %v5907_v32, %v4307_v51  ;;  %4722 = vpow2.f32 %v1590_v48  ;;  %v6119_v51 = vsel %vm1174_vm8, %v5724_v27, %v4312_v54 }
 0x155   : > { %v1495_v14 = vmin.f32 %v6085_v16, 0.0  ;;  %v6092_v36 = vpop.f32.mrf.mxu3  ;;  %v6108_v32 = vpack.c.bf16 %v2129_v55, %v6042_v11  ;;  %v4315_v11 = vadd.f32 -1.0, %v4715_v50  ;;  %v3039_v48 = vunpack.c.h.b16 %v6006_v58 }
 0x156   : > { %v1496_v6 = vmin.f32 %v6092_v36, 0.0  ;;  %v6100_v23 = vpop.f32.mrf.mxu0  ;;  %vm1303_vm14 = vcmp.gt.f32.partialorder %v6085_v16, 0.0  ;;  %vm1304_vm15 = vcmp.gt.f32.partialorder %v6092_v36, 0.0  ;;  %vm1180_vm0 = vcmp.gt.f32.partialorder %v5752_v12, 0.0 }
 0x157   : > { %v4717_v7 = vpop.eup %4716  ;;  %v1840_v57 = vmul.f32 1.442695, %v1495_v14  ;;  %v1381_v14 = vmin.f32 %v5830_v60, 0.0  ;;  %v2998_v58 = vunpack.c.h.b16 %v6108_v32  ;;  %vm1178_vm2 = vcmp.gt.f32.partialorder %v6017_v34, 0.0 }
 0x158   : > { %v4719_v29 = vpop.eup %4718  ;;  %v4438_v56 = vadd.f32 -1.0, %v4717_v7  ;;  %v1842_v63 = vmul.f32 1.442695, %v1496_v6  ;;  %v2999_v6 = vunpack.c.h.b16 %v6114_v49  ;;  %v2137_v49 = vsel %vm1177_vm12, %v5735_v52, %v4315_v11 }
 0x159   : > { %v4439_v30 = vadd.f32 -1.0, %v4719_v29  ;;  %4724 = vpow2.f32 %v1840_v57  ;;  %4258 = vmatmul.msk.bf16.gmra.mxu2 %vm546_vm1, %v5378_v37  ;;  %3138 = vmatmul.bf16.gmra.mxu0 %v3058_v9  ;;  %v4721_v45 = vpop.eup %4720  ;;  %v1373_v57 = vmin.f32 %v6059_v0, 0.0  ;;  %v1612_v11 = vmul.f32 1.442695, %v1381_v14  ;;  %v5379_v14 = vld [vmem:[%s5604_s27 + $0x18] sm:$0xff] }
 0x15a   : > { %v2260_v44 = vsel %vm1300_vm11, %v6050_v24, %v4438_v56  ;;  %4726 = vpow2.f32 %v1842_v63  ;;  %2708 = vmatmul.bf16.gmra.mxu3 %v2580_v26  ;;  %v6136_v54 = vpop.f32.mrf.mxu1  ;;  %v4723_v9 = vpop.eup %4722  ;;  %v3038_v26 = vunpack.c.h.b16 %v5971_v25  ;;  %v1376_v63 = vmin.f32 %v6094_v2, 0.0 }
 0x15b   : > { %4728 = vpow2.f32 %v1594_v28  ;;  %v2261_v15 = vsel %vm1301_vm10, %v6056_v17, %v4439_v30  ;;  %v2520_v17 = vunpack.c.l.b16 %v6108_v32  ;;  %v2562_v25 = vunpack.c.l.b16 %v6048_v5 }
 0x15c   : > { %4730 = vpow2.f32 %v1600_v18  ;;  %v6125_v42 = vpack.c.bf16 %v2261_v15, %v2260_v44  ;;  %v6127_v24 = vpop.f32.mrf.mxu2  ;;  %v6148_v30 = vpack.c.b16 %v3039_v48, %v3038_v26  ;;  %v2563_v44 = vunpack.c.l.b16 %v6083_v8 }
 0x15d   : > { %v1498_v27 = vmin.f32 %v6127_v24, 0.0  ;;  %v6133_v50 = vpop.f32.mrf.mxu3  ;;  %v4316_v48 = vadd.f32 -1.0, %v4723_v9  ;;  %v1596_v26 = vmul.f32 1.442695, %v1373_v57  ;;  %v3059_v57 = vpack.c.b16 %v2999_v6, %v2998_v58 }
 0x15e   : > { %v1499_v28 = vmin.f32 %v6133_v50, 0.0  ;;  %v6139_v55 = vpop.f32.mrf.mxu0  ;;  %7208 = vst [vmem:[#allocation16_spill] sm:$0xff] %v6148_v30  ;;  %vm1307_vm3 = vcmp.gt.f32.partialorder %v6133_v50, 0.0  ;;  %vm1306_vm4 = vcmp.gt.f32.partialorder %v6127_v24, 0.0  ;;  %vm1183_vm5 = vcmp.gt.f32.partialorder %v5778_v47, 0.0 }
 0x15f   : > { %v4725_v7 = vpop.eup %4724  ;;  %v1846_v18 = vmul.f32 1.442695, %v1498_v27  ;;  %v4313_v27 = vadd.f32 -1.0, %v4721_v45  ;;  %v2138_v58 = vsel %vm1178_vm2, %v6017_v34, %v4316_v48  ;;  %v1384_v48 = vmin.f32 %v5875_v3, 0.0 }
 0x160   : > { %v4727_v53 = vpop.eup %4726  ;;  %v4441_v29 = vadd.f32 -1.0, %v4725_v7  ;;  %v1848_v56 = vmul.f32 1.442695, %v1499_v28  ;;  %v6157_v7 = vpack.c.b16 %v2563_v44, %v2562_v25  ;;  %v2581_v25 = vpack.c.b16 %v2521_v10, %v2520_v17 }
 0x161   : > { %v4729_v32 = vpop.eup %4728  ;;  %v4442_v37 = vadd.f32 -1.0, %v4727_v53  ;;  %4732 = vpow2.f32 %v1846_v18  ;;  %v6191_v17 = vpack.c.bf16 %v2138_v58, %v2137_v49  ;;  %vm1181_vm6 = vcmp.gt.f32.partialorder %v6059_v0, 0.0 }
 0x162   : > { %v4731_v15 = vpop.eup %4730  ;;  %v2263_v31 = vsel %vm1303_vm14, %v6085_v16, %v4441_v29  ;;  %4734 = vpow2.f32 %v1848_v56  ;;  %7209 = vst [vmem:[#allocation17_spill] sm:$0xff] %v6157_v7  ;;  %v1602_v16 = vmul.f32 1.442695, %v1376_v63  ;;  %v4318_v45 = vadd.f32 -1.0, %v4729_v32  ;;  %v6171_v29 = vpop.f32.mrf.mxu1 }
 0x163   : > { %v2264_v28 = vsel %vm1304_vm15, %v6092_v36, %v4442_v37  ;;  %v1606_v56 = vmul.f32 1.442695, %v1378_v43  ;;  %4736 = vpow2.f32 %v1596_v26  ;;  %v1382_v58 = vmin.f32 %v6171_v29, 0.0 }
 0x164   : > { %v6160_v18 = vpack.c.bf16 %v2264_v28, %v2263_v31  ;;  %v6162_v53 = vpop.f32.mrf.mxu2  ;;  %v2135_v31 = vsel %vm1175_vm13, %v5981_v13, %v4313_v27  ;;  %4738 = vpow2.f32 %v1602_v16  ;;  %v6196_v27 = vsel %vm1180_vm0, %v5752_v12, %v4318_v45 }
 0x165   : > { %v1501_v36 = vmin.f32 %v6162_v53, 0.0  ;;  %v6169_v9 = vpop.f32.mrf.mxu3  ;;  %v6185_v13 = vpack.c.bf16 %v2135_v31, %v6119_v51  ;;  %v4321_v51 = vadd.f32 -1.0, %v4731_v15  ;;  %v3041_v16 = vunpack.c.h.b16 %v6083_v8 }
 0x166   : > { %v1502_v37 = vmin.f32 %v6169_v9, 0.0  ;;  %v6177_v63 = vpop.f32.mrf.mxu0  ;;  %vm1310_vm7 = vcmp.gt.f32.partialorder %v6169_v9, 0.0  ;;  %vm1186_vm8 = vcmp.gt.f32.partialorder %v5806_v22, 0.0  ;;  %vm1309_vm9 = vcmp.gt.f32.partialorder %v6162_v53, 0.0 }
 0x167   : > { %v4733_v52 = vpop.eup %4732  ;;  %v1852_v32 = vmul.f32 1.442695, %v1501_v36  ;;  %v1387_v36 = vmin.f32 %v5913_v41, 0.0  ;;  %v3000_v8 = vunpack.c.h.b16 %v6185_v13  ;;  %v2523_v30 = vunpack.c.l.b16 %v6191_v17 }
 0x168   : > { %v4735_v6 = vpop.eup %4734  ;;  %v4444_v43 = vadd.f32 -1.0, %v4733_v52  ;;  %v1854_v44 = vmul.f32 1.442695, %v1502_v37  ;;  %v3001_v37 = vunpack.c.h.b16 %v6191_v17  ;;  %vm1184_vm10 = vcmp.gt.f32.partialorder %v6094_v2, 0.0 }
 0x169   : > { %v4445_v10 = vadd.f32 -1.0, %v4735_v6  ;;  %4740 = vpow2.f32 %v1852_v32  ;;  %4259 = vmatmul.msk.bf16.gmra.mxu2 %vm546_vm1, %v5379_v14  ;;  %3143 = vmatmul.bf16.gmra.mxu0 %v3059_v57  ;;  %v4737_v49 = vpop.eup %4736  ;;  %v1379_v32 = vmin.f32 %v6136_v54, 0.0  ;;  %vm1189_vm13 = vcmp.gt.f32.partialorder %v5830_v60, 0.0 }
 0x16a   : > { %v2266_v34 = vsel %vm1306_vm4, %v6127_v24, %v4444_v43  ;;  %4742 = vpow2.f32 %v1854_v44  ;;  %2713 = vmatmul.bf16.gmra.mxu3 %v2581_v25  ;;  %v6213_v45 = vpop.f32.mrf.mxu1  ;;  %v4739_v57 = vpop.eup %4738  ;;  %v3040_v25 = vunpack.c.h.b16 %v6048_v5  ;;  %v4319_v7 = vadd.f32 -1.0, %v4737_v49 }
 0x16b   : > { %4744 = vpow2.f32 %v1606_v56  ;;  %v2267_v28 = vsel %vm1307_vm3, %v6133_v50, %v4445_v10  ;;  %v2522_v50 = vunpack.c.l.b16 %v6185_v13  ;;  %v2565_v13 = vunpack.c.l.b16 %v6160_v18 }
 0x16c   : > { %4746 = vpow2.f32 %v1612_v11  ;;  %v6202_v26 = vpack.c.bf16 %v2267_v28, %v2266_v34  ;;  %v6204_v24 = vpop.f32.mrf.mxu2  ;;  %v6225_v10 = vpack.c.b16 %v3041_v16, %v3040_v25  ;;  %v2564_v34 = vunpack.c.l.b16 %v6125_v42 }
 0x16d   : > { %v1504_v12 = vmin.f32 %v6204_v24, 0.0  ;;  %v6210_v15 = vpop.f32.mrf.mxu3  ;;  %v1608_v25 = vmul.f32 1.442695, %v1379_v32  ;;  %v1618_v49 = vmul.f32 1.442695, %v1384_v48  ;;  %v1390_v48 = vmin.f32 %v5943_v4, 0.0 }
 0x16e   : > { %v1505_v56 = vmin.f32 %v6210_v15, 0.0  ;;  %v6216_v31 = vpop.f32.mrf.mxu0  ;;  %7210 = vst [vmem:[#allocation18_spill] sm:$0xff] %v6225_v10  ;;  %vm1313_vm11 = vcmp.gt.f32.partialorder %v6210_v15, 0.0  ;;  %vm1312_vm12 = vcmp.gt.f32.partialorder %v6204_v24, 0.0  ;;  %vm1187_vm0 = vcmp.gt.f32.partialorder %v6136_v54, 0.0 }
 0x16f   : > { %v4741_v52 = vpop.eup %4740  ;;  %v1858_v11 = vmul.f32 1.442695, %v1504_v12  ;;  %vm1192_vm2 = vcmp.gt.f32.partialorder %v5875_v3, 0.0  ;;  %vm1190_vm3 = vcmp.gt.f32.partialorder %v6171_v29, 0.0 }
 0x170   : > { %v4743_v6 = vpop.eup %4742  ;;  %v4447_v43 = vadd.f32 -1.0, %v4741_v52  ;;  %v1860_v44 = vmul.f32 1.442695, %v1505_v56  ;;  %v4322_v56 = vadd.f32 -1.0, %v4739_v57  ;;  %v6235_v52 = vpack.c.b16 %v2565_v13, %v2564_v34 }
 0x171   : > { %v4745_v14 = vpop.eup %4744  ;;  %v4448_v5 = vadd.f32 -1.0, %v4743_v6  ;;  %4748 = vpow2.f32 %v1858_v11  ;;  %v2143_v11 = vsel %vm1183_vm5, %v5778_v47, %v4321_v51  ;;  %v3060_v57 = vpack.c.b16 %v3001_v37, %v3000_v8 }
 0x172   : > { %v4747_v28 = vpop.eup %4746  ;;  %v2269_v12 = vsel %vm1309_vm9, %v6162_v53, %v4447_v43  ;;  %4750 = vpow2.f32 %v1860_v44  ;;  %7211 = vst [vmem:[#allocation19_spill] sm:$0xff] %v6235_v52  ;;  %v1614_v53 = vmul.f32 1.442695, %v1382_v58  ;;  %v4324_v17 = vadd.f32 -1.0, %v4745_v14  ;;  %v6248_v32 = vpop.f32.mrf.mxu1 }
 0x173   : > { %v2270_v16 = vsel %vm1310_vm7, %v6169_v9, %v4448_v5  ;;  %v1624_v44 = vmul.f32 1.442695, %v1387_v36  ;;  %v2141_v47 = vsel %vm1181_vm6, %v6059_v0, %v4319_v7  ;;  %v2582_v58 = vpack.c.b16 %v2523_v30, %v2522_v50  ;;  %v5380_v50 = vld [vmem:[%s5604_s27 + $0x20] sm:$0xff] }
 0x174   : > { %v6240_v6 = vpack.c.bf16 %v2270_v16, %v2269_v12  ;;  %v6242_v10 = vpop.f32.mrf.mxu2  ;;  %v2144_v8 = vsel %vm1184_vm10, %v6094_v2, %v4322_v56  ;;  %4752 = vpow2.f32 %v1608_v25  ;;  %v6263_v7 = vpack.c.bf16 %v2141_v47, %v6196_v27 }
 0x175   : > { %v1507_v43 = vmin.f32 %v6242_v10, 0.0  ;;  %v6246_v9 = vpop.f32.mrf.mxu3  ;;  %4754 = vpow2.f32 %v1614_v53  ;;  %v6269_v34 = vpack.c.bf16 %v2144_v8, %v2143_v11  ;;  %v6274_v12 = vsel %vm1186_vm8, %v5806_v22, %v4324_v17 }
 0x176   : > { %v1508_v51 = vmin.f32 %v6246_v9, 0.0  ;;  %v6254_v13 = vpop.f32.mrf.mxu0  ;;  %v4327_v27 = vadd.f32 -1.0, %v4747_v28  ;;  %v1630_v56 = vmul.f32 1.442695, %v1390_v48  ;;  %v3043_v11 = vunpack.c.h.b16 %v6160_v18 }
 0x177   : > { %v4749_v14 = vpop.eup %4748  ;;  %v1864_v5 = vmul.f32 1.442695, %v1507_v43  ;;  %v1393_v43 = vmin.f32 %v5985_v1, 0.0  ;;  %v2524_v28 = vunpack.c.l.b16 %v6263_v7  ;;  %v3002_v18 = vunpack.c.h.b16 %v6263_v7 }
 0x178   : > { %v4751_v36 = vpop.eup %4750  ;;  %v4450_v37 = vadd.f32 -1.0, %v4749_v14  ;;  %v1866_v0 = vmul.f32 1.442695, %v1508_v51  ;;  %v3003_v51 = vunpack.c.h.b16 %v6269_v34  ;;  %vm1315_vm14 = vcmp.gt.f32.partialorder %v6242_v10, 0.0 }
 0x179   : > { %v4451_v30 = vadd.f32 -1.0, %v4751_v36  ;;  %4756 = vpow2.f32 %v1864_v5  ;;  %4260 = vmatmul.msk.bf16.gmra.mxu2 %vm546_vm1, %v5380_v50  ;;  %3148 = vmatmul.bf16.gmra.mxu0 %v3060_v57  ;;  %vm1316_vm15 = vcmp.gt.f32.partialorder %v6246_v9, 0.0  ;;  %v2566_v5 = vunpack.c.l.b16 %v6202_v26 }
 0x17a   : > { %v2272_v2 = vsel %vm1312_vm12, %v6204_v24, %v4450_v37  ;;  %4758 = vpow2.f32 %v1866_v0  ;;  %2718 = vmatmul.bf16.gmra.mxu3 %v2582_v58  ;;  %v4753_v53 = vpop.eup %4752  ;;  %v3042_v58 = vunpack.c.h.b16 %v6125_v42  ;;  %v1388_v0 = vmin.f32 %v6248_v32, 0.0 }
 0x17b   : > { %4760 = vpow2.f32 %v1618_v49  ;;  %v2273_v16 = vsel %vm1313_vm11, %v6210_v15, %v4451_v30  ;;  %v1385_v49 = vmin.f32 %v6213_v45, 0.0  ;;  %v6290_v15 = vpop.f32.mrf.mxu1  ;;  %v4755_v57 = vpop.eup %4754  ;;  %v2567_v42 = vunpack.c.l.b16 %v6240_v6 }
 0x17c   : > { %4762 = vpow2.f32 %v1624_v44  ;;  %v6279_v25 = vpack.c.bf16 %v2273_v16, %v2272_v2  ;;  %v6281_v24 = vpop.f32.mrf.mxu2  ;;  %v6302_v30 = vpack.c.b16 %v3043_v11, %v3042_v58  ;;  %v4325_v19 = vadd.f32 -1.0, %v4753_v53 }
 0x17d   : > { %v1510_v22 = vmin.f32 %v6281_v24, 0.0  ;;  %v6286_v17 = vpop.f32.mrf.mxu3  ;;  %v1620_v2 = vmul.f32 1.442695, %v1385_v49  ;;  %v4328_v11 = vadd.f32 -1.0, %v4755_v57  ;;  %v6311_v58 = vpack.c.b16 %v2567_v42, %v2566_v5 }
 0x17e   : > { %v1511_v44 = vmin.f32 %v6286_v17, 0.0  ;;  %v6293_v47 = vpop.f32.mrf.mxu0  ;;  %v3061_v57 = vpack.c.b16 %v3003_v51, %v3002_v18  ;;  %vm1319_vm4 = vcmp.gt.f32.partialorder %v6286_v17, 0.0  ;;  %vm1318_vm5 = vcmp.gt.f32.partialorder %v6281_v24, 0.0 }
 0x17f   : > { %v4757_v14 = vpop.eup %4756  ;;  %v1870_v48 = vmul.f32 1.442695, %v1510_v22  ;;  %v2525_v22 = vunpack.c.l.b16 %v6269_v34  ;;  %7212 = vst [vmem:[#allocation20_spill] sm:$0xff] %v6311_v58  ;;  %v2149_v34 = vsel %vm1189_vm13, %v5830_v60, %v4327_v27  ;;  %v1636_v60 = vmul.f32 1.442695, %v1393_v43 }
 0x180   : > { %v4759_v8 = vpop.eup %4758  ;;  %v4453_v36 = vadd.f32 -1.0, %v4757_v14  ;;  %v1872_v37 = vmul.f32 1.442695, %v1511_v44  ;;  %v2150_v18 = vsel %vm1190_vm3, %v6171_v29, %v4328_v11  ;;  %vm1195_vm6 = vcmp.gt.f32.partialorder %v5913_v41, 0.0 }
 0x181   : > { %v4761_v7 = vpop.eup %4760  ;;  %v4454_v50 = vadd.f32 -1.0, %v4759_v8  ;;  %4764 = vpow2.f32 %v1870_v48  ;;  %v6343_v43 = vpack.c.bf16 %v2150_v18, %v2149_v34  ;;  %vm1193_vm7 = vcmp.gt.f32.partialorder %v6213_v45, 0.0 }
 0x182   : > { %v4763_v16 = vpop.eup %4762  ;;  %v2275_v52 = vsel %vm1315_vm14, %v6242_v10, %v4453_v36  ;;  %4766 = vpow2.f32 %v1872_v37  ;;  %v1626_v10 = vmul.f32 1.442695, %v1388_v0  ;;  %v4330_v5 = vadd.f32 -1.0, %v4761_v7 }
 0x183   : > { %v2276_v44 = vsel %vm1316_vm15, %v6246_v9, %v4454_v50  ;;  %4768 = vpow2.f32 %v1620_v2  ;;  %v6325_v48 = vpop.f32.mrf.mxu1  ;;  %v2583_v37 = vpack.c.b16 %v2525_v22, %v2524_v28  ;;  %v4333_v2 = vadd.f32 -1.0, %v4763_v16 }
 0x184   : > { %v6314_v49 = vpack.c.bf16 %v2276_v44, %v2275_v52  ;;  %v6316_v14 = vpop.f32.mrf.mxu2  ;;  %v2147_v52 = vsel %vm1187_vm0, %v6136_v54, %v4325_v19  ;;  %4770 = vpow2.f32 %v1630_v56  ;;  %v5381_v56 = vld [vmem:[%s5604_s27 + $0x28] sm:$0xff]  ;;  %v1396_v22 = vmin.f32 %v6023_v59, 0.0 }
 0x185   : > { %v1513_v9 = vmin.f32 %v6316_v14, 0.0  ;;  %v6323_v53 = vpop.f32.mrf.mxu3  ;;  %4772 = vpow2.f32 %v1626_v10  ;;  %v6337_v19 = vpack.c.bf16 %v2147_v52, %v6274_v12  ;;  %v6348_v12 = vsel %vm1192_vm2, %v5875_v3, %v4330_v5 }
 0x186   : > { %v1514_v8 = vmin.f32 %v6323_v53, 0.0  ;;  %v6329_v36 = vpop.f32.mrf.mxu0  ;;  %v3045_v10 = vunpack.c.h.b16 %v6240_v6  ;;  %v3005_v6 = vunpack.c.h.b16 %v6343_v43  ;;  %vm1322_vm8 = vcmp.gt.f32.partialorder %v6323_v53, 0.0 }
 0x187   : > { %v4765_v0 = vpop.eup %4764  ;;  %v1876_v27 = vmul.f32 1.442695, %v1513_v9  ;;  %v2526_v9 = vunpack.c.l.b16 %v6337_v19  ;;  %v1391_v18 = vmin.f32 %v6290_v15, 0.0  ;;  %vm1321_vm9 = vcmp.gt.f32.partialorder %v6316_v14, 0.0 }
 0x188   : > { %v4767_v51 = vpop.eup %4766  ;;  %v4456_v50 = vadd.f32 -1.0, %v4765_v0  ;;  %v1878_v7 = vmul.f32 1.442695, %v1514_v8  ;;  %v3044_v0 = vunpack.c.h.b16 %v6202_v26  ;;  %v2568_v26 = vunpack.c.l.b16 %v6279_v25 }
 0x189   : > { %v4457_v54 = vadd.f32 -1.0, %v4767_v51  ;;  %4774 = vpow2.f32 %v1876_v27  ;;  %4261 = vmatmul.msk.bf16.gmra.mxu2 %vm546_vm1, %v5381_v56  ;;  %3153 = vmatmul.bf16.gmra.mxu0 %v3061_v57  ;;  %v4769_v28 = vpop.eup %4768  ;;  %v1394_v51 = vmin.f32 %v6325_v48, 0.0  ;;  %v2569_v56 = vunpack.c.l.b16 %v6314_v49 }
 0x18a   : > { %v2278_v29 = vsel %vm1318_vm5, %v6281_v24, %v4456_v50  ;;  %4776 = vpow2.f32 %v1878_v7  ;;  %2723 = vmatmul.bf16.gmra.mxu3 %v2583_v37  ;;  %v1399_v24 = vmin.f32 %v6062_v46, 0.0  ;;  %v4771_v34 = vpop.eup %4770  ;;  %v4331_v52 = vadd.f32 -1.0, %v4769_v28 }
 0x18b   : > { %4778 = vpow2.f32 %v1636_v60  ;;  %v2279_v42 = vsel %vm1319_vm4, %v6286_v17, %v4457_v54  ;;  %v3004_v17 = vunpack.c.h.b16 %v6337_v19  ;;  %v6366_v57 = vpop.f32.mrf.mxu1  ;;  %v4773_v5 = vpop.eup %4772  ;;  %v6376_v54 = vpack.c.b16 %v3045_v10, %v3044_v0 }
 0x18c   : > { %v6355_v44 = vpack.c.bf16 %v2279_v42, %v2278_v29  ;;  %v6357_v11 = vpop.f32.mrf.mxu2  ;;  %v2527_v58 = vunpack.c.l.b16 %v6343_v43  ;;  %vm1196_vm10 = vcmp.gt.f32.partialorder %v6248_v32, 0.0  ;;  %v6387_v0 = vpack.c.b16 %v2569_v56, %v2568_v26 }
 0x18d   : > { %v1516_v3 = vmin.f32 %v6357_v11, 0.0  ;;  %v6362_v16 = vpop.f32.mrf.mxu3  ;;  %7213 = vst [vmem:[#allocation21_spill] sm:$0xff] %v6376_v54  ;;  %vm1198_vm11 = vcmp.gt.f32.partialorder %v5943_v4, 0.0  ;;  %v1638_v43 = vmul.f32 1.442695, %v1394_v51  ;;  %vm1324_vm13 = vcmp.gt.f32.partialorder %v6357_v11, 0.0 }
 0x18e   : > { %v1517_v8 = vmin.f32 %v6362_v16, 0.0  ;;  %v6369_v37 = vpop.f32.mrf.mxu0  ;;  %7214 = vst [vmem:[#allocation22_spill] sm:$0xff] %v6387_v0  ;;  %v1642_v56 = vmul.f32 1.442695, %v1396_v22  ;;  %v2584_v51 = vpack.c.b16 %v2527_v58, %v2526_v9  ;;  %vm1325_vm12 = vcmp.gt.f32.partialorder %v6362_v16, 0.0  ;;  %v5382_v58 = vld [vmem:[%s5604_s27 + $0x30] sm:$0xff] }
 0x18f   : > { %v4775_v60 = vpop.eup %4774  ;;  %v1882_v27 = vmul.f32 1.442695, %v1516_v3  ;;  %v4334_v3 = vadd.f32 -1.0, %v4773_v5  ;;  %vm1201_vm14 = vcmp.gt.f32.partialorder %v5985_v1, 0.0  ;;  %vm1199_vm2 = vcmp.gt.f32.partialorder %v6290_v15, 0.0 }
 0x190   : > { %v4777_v50 = vpop.eup %4776  ;;  %v4459_v7 = vadd.f32 -1.0, %v4775_v60  ;;  %v1884_v19 = vmul.f32 1.442695, %v1517_v8  ;;  %v1632_v8 = vmul.f32 1.442695, %v1391_v18  ;;  %vm1204_vm3 = vcmp.gt.f32.partialorder %v6023_v59, 0.0 }
 0x191   : > { %v4779_v29 = vpop.eup %4778  ;;  %v4460_v28 = vadd.f32 -1.0, %v4777_v50  ;;  %4780 = vpow2.f32 %v1882_v27  ;;  %v4336_v27 = vadd.f32 -1.0, %v4771_v34  ;;  %vm1202_vm4 = vcmp.gt.f32.partialorder %v6325_v48, 0.0 }
 0x192   : > { %v2281_v42 = vsel %vm1321_vm9, %v6316_v14, %v4459_v7  ;;  %4782 = vpow2.f32 %v1884_v19  ;;  %v2153_v14 = vsel %vm1193_vm7, %v6213_v45, %v4331_v52  ;;  %v3062_v7 = vpack.c.b16 %v3005_v6, %v3004_v17 }
 0x193   : > { %v2282_v10 = vsel %vm1322_vm8, %v6323_v53, %v4460_v28  ;;  %v2155_v53 = vsel %vm1195_vm6, %v5913_v41, %v4333_v2  ;;  %v6403_v19 = vpop.f32.mrf.mxu1  ;;  %v2156_v28 = vsel %vm1196_vm10, %v6248_v32, %v4334_v3  ;;  %v6410_v41 = vpack.c.bf16 %v2153_v14, %v6348_v12 }
 0x194   : > { %v6390_v60 = vpack.c.bf16 %v2282_v10, %v2281_v42  ;;  %v6395_v5 = vpop.f32.mrf.mxu2  ;;  %v1648_v42 = vmul.f32 1.442695, %v1399_v24  ;;  %4784 = vpow2.f32 %v1632_v8  ;;  %v6414_v6 = vpack.c.bf16 %v2156_v28, %v2155_v53 }
 0x195   : > { %v1519_v18 = vmin.f32 %v6395_v5, 0.0  ;;  %v6401_v50 = vpop.f32.mrf.mxu3  ;;  %4786 = vpow2.f32 %v1638_v43  ;;  %v6423_v24 = vsel %vm1198_vm11, %v5943_v4, %v4336_v27  ;;  %v4339_v9 = vadd.f32 -1.0, %v4779_v29 }
 0x196   : > { %v1520_v45 = vmin.f32 %v6401_v50, 0.0  ;;  %v6407_v52 = vpop.f32.mrf.mxu0  ;;  %v1402_v10 = vmin.f32 %v6100_v23, 0.0  ;;  %v1405_v53 = vmin.f32 %v6139_v55, 0.0  ;;  %v2528_v27 = vunpack.c.l.b16 %v6410_v41 }
 0x197   : > { %v4781_v26 = vpop.eup %4780  ;;  %v1888_v2 = vmul.f32 1.442695, %v1519_v18  ;;  %vm1327_vm15 = vcmp.gt.f32.partialorder %v6395_v5, 0.0  ;;  %vm1328_vm0 = vcmp.gt.f32.partialorder %v6401_v50, 0.0  ;;  %vm1207_vm7 = vcmp.gt.f32.partialorder %v6062_v46, 0.0 }
 0x198   : > { %v4783_v34 = vpop.eup %4782  ;;  %v4462_v17 = vadd.f32 -1.0, %v4781_v26  ;;  %v1890_v22 = vmul.f32 1.442695, %v1520_v45  ;;  %v1397_v45 = vmin.f32 %v6366_v57, 0.0  ;;  %vm1205_vm8 = vcmp.gt.f32.partialorder %v6366_v57, 0.0 }
 0x199   : > { %v4463_v32 = vadd.f32 -1.0, %v4783_v34  ;;  %4788 = vpow2.f32 %v1888_v2  ;;  %4262 = vmatmul.msk.bf16.gmra.mxu2 %vm546_vm1, %v5382_v58  ;;  %3158 = vmatmul.bf16.gmra.mxu0 %v3062_v7  ;;  %v3007_v2 = vunpack.c.h.b16 %v6414_v6  ;;  %vm1208_vm11 = vcmp.gt.f32.partialorder %v6403_v19, 0.0 }
 0x19a   : > { %v2284_v12 = vsel %vm1324_vm13, %v6357_v11, %v4462_v17  ;;  %4790 = vpow2.f32 %v1890_v22  ;;  %2728 = vmatmul.bf16.gmra.mxu3 %v2584_v51  ;;  %v3047_v11 = vunpack.c.h.b16 %v6314_v49  ;;  %v4785_v43 = vpop.eup %4784  ;;  %v3006_v49 = vunpack.c.h.b16 %v6410_v41 }
 0x19b   : > { %4792 = vpow2.f32 %v1642_v56  ;;  %v2285_v3 = vsel %vm1325_vm12, %v6362_v16, %v4463_v32  ;;  %v2529_v16 = vunpack.c.l.b16 %v6414_v6  ;;  %v6440_v18 = vpop.f32.mrf.mxu1  ;;  %v4787_v7 = vpop.eup %4786  ;;  %v3046_v51 = vunpack.c.h.b16 %v6279_v25 }
 0x19c   : > { %4794 = vpow2.f32 %v1648_v42  ;;  %v6429_v8 = vpack.c.bf16 %v2285_v3, %v2284_v12  ;;  %v6431_v14 = vpop.f32.mrf.mxu2  ;;  %v1400_v32 = vmin.f32 %v6403_v19, 0.0  ;;  %v2570_v25 = vunpack.c.l.b16 %v6355_v44 }
 0x19d   : > { %v1522_v4 = vmin.f32 %v6431_v14, 0.0  ;;  %v6436_v29 = vpop.f32.mrf.mxu3  ;;  %v6452_v58 = vpack.c.b16 %v3047_v11, %v3046_v51  ;;  %v2571_v3 = vunpack.c.l.b16 %v6390_v60  ;;  %v1644_v6 = vmul.f32 1.442695, %v1397_v45 }
 0x19e   : > { %v1523_v56 = vmin.f32 %v6436_v29, 0.0  ;;  %v6443_v28 = vpop.f32.mrf.mxu0  ;;  %v4340_v11 = vadd.f32 -1.0, %v4787_v7  ;;  %v3063_v7 = vpack.c.b16 %v3007_v2, %v3006_v49  ;;  %vm1331_vm5 = vcmp.gt.f32.partialorder %v6436_v29, 0.0 }
 0x19f   : > { %v4789_v26 = vpop.eup %4788  ;;  %v1894_v42 = vmul.f32 1.442695, %v1522_v4  ;;  %v4337_v4 = vadd.f32 -1.0, %v4785_v43  ;;  %v6461_v51 = vpack.c.b16 %v2571_v3, %v2570_v25  ;;  %v2161_v43 = vsel %vm1201_vm14, %v5985_v1, %v4339_v9 }
 0x1a0   : > { %v4791_v34 = vpop.eup %4790  ;;  %v4465_v17 = vadd.f32 -1.0, %v4789_v26  ;;  %v1896_v22 = vmul.f32 1.442695, %v1523_v56  ;;  %v2585_v25 = vpack.c.b16 %v2529_v16, %v2528_v27  ;;  %v1654_v3 = vmul.f32 1.442695, %v1402_v10  ;;  %v5383_v10 = vld [vmem:[%s5604_s27 + $0x38] sm:$0xff] }
 0x1a1   : > { %v4793_v41 = vpop.eup %4792  ;;  %v4466_v12 = vadd.f32 -1.0, %v4791_v34  ;;  %4796 = vpow2.f32 %v1894_v42  ;;  %7215 = vst [vmem:[#allocation23_spill] sm:$0xff] %v6461_v51  ;;  %v1660_v1 = vmul.f32 1.442695, %v1405_v53  ;;  %vm1330_vm6 = vcmp.gt.f32.partialorder %v6431_v14, 0.0  ;;  %v5384_v51 = vld [vmem:[%s5604_s27 + $0x40] sm:$0xff] }
 0x1a2   : > { %v4795_v0 = vpop.eup %4794  ;;  %v2287_v54 = vsel %vm1327_vm15, %v6395_v5, %v4465_v17  ;;  %4798 = vpow2.f32 %v1896_v22  ;;  %v1650_v5 = vmul.f32 1.442695, %v1400_v32  ;;  %v4342_v45 = vadd.f32 -1.0, %v4793_v41 }
 0x1a3   : > { %v2288_v56 = vsel %vm1328_vm0, %v6401_v50, %v4466_v12  ;;  %v6475_v17 = vpop.f32.mrf.mxu1  ;;  %4800 = vpow2.f32 %v1644_v6  ;;  %v2162_v41 = vsel %vm1202_vm4, %v6325_v48, %v4340_v11  ;;  %vm1210_vm12 = vcmp.gt.f32.partialorder %v6100_v23, 0.0 }
 0x1a4   : > { %v6464_v26 = vpack.c.bf16 %v2288_v56, %v2287_v54  ;;  %v6466_v42 = vpop.f32.mrf.mxu2  ;;  %v2159_v54 = vsel %vm1199_vm2, %v6290_v15, %v4337_v4  ;;  %4802 = vpow2.f32 %v1650_v5  ;;  %v6492_v48 = vpack.c.bf16 %v2162_v41, %v2161_v43 }
 0x1a5   : > { %v1525_v50 = vmin.f32 %v6466_v42, 0.0  ;;  %v6473_v34 = vpop.f32.mrf.mxu3  ;;  %v6487_v27 = vpack.c.bf16 %v2159_v54, %v6423_v24  ;;  %v2164_v6 = vsel %vm1204_vm3, %v6023_v59, %v4342_v45  ;;  %v4345_v56 = vadd.f32 -1.0, %v4795_v0 }
 0x1a6   : > { %v1526_v22 = vmin.f32 %v6473_v34, 0.0  ;;  %v6479_v12 = vpop.f32.mrf.mxu0  ;;  %v1408_v5 = vmin.f32 %v6177_v63, 0.0  ;;  %v2531_v45 = vunpack.c.l.b16 %v6492_v48  ;;  %v3049_v41 = vunpack.c.h.b16 %v6390_v60 }
 0x1a7   : > { %v4797_v32 = vpop.eup %4796  ;;  %v1900_v9 = vmul.f32 1.442695, %v1525_v50  ;;  %vm1333_vm9 = vcmp.gt.f32.partialorder %v6466_v42, 0.0  ;;  %vm1334_vm10 = vcmp.gt.f32.partialorder %v6473_v34, 0.0  ;;  %v2573_v60 = vunpack.c.l.b16 %v6464_v26 }
 0x1a8   : > { %v4799_v49 = vpop.eup %4798  ;;  %v4468_v2 = vadd.f32 -1.0, %v4797_v32  ;;  %v1902_v15 = vmul.f32 1.442695, %v1526_v22  ;;  %v3008_v22 = vunpack.c.h.b16 %v6487_v27  ;;  %vm1213_vm15 = vcmp.gt.f32.partialorder %v6139_v55, 0.0 }
 0x1a9   : > { %v4469_v16 = vadd.f32 -1.0, %v4799_v49  ;;  %4804 = vpow2.f32 %v1900_v9  ;;  %4263 = vmatmul.msk.bf16.gmra.mxu2 %vm546_vm1, %v5383_v10  ;;  %3163 = vmatmul.bf16.gmra.mxu0 %v3063_v7  ;;  %v4801_v4 = vpop.eup %4800  ;;  %v3048_v9 = vunpack.c.h.b16 %v6355_v44  ;;  %v2572_v44 = vunpack.c.l.b16 %v6429_v8 }
 0x1aa   : > { %v2290_v53 = vsel %vm1330_vm6, %v6431_v14, %v4468_v2  ;;  %4806 = vpow2.f32 %v1902_v15  ;;  %2733 = vmatmul.bf16.gmra.mxu3 %v2585_v25  ;;  %v4803_v54 = vpop.eup %4802  ;;  %v3009_v25 = vunpack.c.h.b16 %v6492_v48  ;;  %vm1211_vm3 = vcmp.gt.f32.partialorder %v6440_v18, 0.0 }
 0x1ab   : > { %4808 = vpow2.f32 %v1654_v3  ;;  %v2291_v24 = vsel %vm1331_vm5, %v6436_v29, %v4469_v16  ;;  %v2530_v29 = vunpack.c.l.b16 %v6487_v27  ;;  %v6511_v7 = vpop.f32.mrf.mxu1  ;;  %v4346_v27 = vadd.f32 -1.0, %v4803_v54 }
 0x1ac   : > { %4810 = vpow2.f32 %v1660_v1  ;;  %v6501_v11 = vpack.c.bf16 %v2291_v24, %v2290_v53  ;;  %v6503_v14 = vpop.f32.mrf.mxu2  ;;  %v4343_v1 = vadd.f32 -1.0, %v4801_v4  ;;  %v6523_v53 = vpack.c.b16 %v3049_v41, %v3048_v9 }
 0x1ad   : > { %v1528_v43 = vmin.f32 %v6503_v14, 0.0  ;;  %v6508_v50 = vpop.f32.mrf.mxu3  ;;  %v1666_v4 = vmul.f32 1.442695, %v1408_v5  ;;  %v6539_v9 = vpack.c.b16 %v2573_v60, %v2572_v44  ;;  %v2586_v44 = vpack.c.b16 %v2531_v45, %v2530_v29 }
 0x1ae   : > { %v1529_v59 = vmin.f32 %v6508_v50, 0.0  ;;  %v6514_v0 = vpop.f32.mrf.mxu0  ;;  %v2165_v54 = vsel %vm1205_vm8, %v6366_v57, %v4343_v1  ;;  %v2168_v1 = vsel %vm1208_vm11, %v6403_v19, %v4346_v27  ;;  %vm1337_vm13 = vcmp.gt.f32.partialorder %v6508_v50, 0.0 }
 0x1af   : > { %v4805_v32 = vpop.eup %4804  ;;  %v1906_v3 = vmul.f32 1.442695, %v1528_v43  ;;  %7216 = vst [vmem:[#allocation24_spill] sm:$0xff] %v6539_v9  ;;  %vm1336_vm14 = vcmp.gt.f32.partialorder %v6503_v14, 0.0  ;;  %vm1214_vm4 = vcmp.gt.f32.partialorder %v6475_v17, 0.0  ;;  %vm1216_vm5 = vcmp.gt.f32.partialorder %v6177_v63, 0.0 }
 0x1b0   : > { %v4807_v49 = vpop.eup %4806  ;;  %v4471_v2 = vadd.f32 -1.0, %v4805_v32  ;;  %v1908_v15 = vmul.f32 1.442695, %v1529_v59  ;;  %v1403_v59 = vmin.f32 %v6440_v18, 0.0  ;;  %vm1222_vm11 = vcmp.gt.f32.partialorder %v6254_v13, 0.0 }
 0x1b1   : > { %v4809_v16 = vpop.eup %4808  ;;  %v4472_v10 = vadd.f32 -1.0, %v4807_v49  ;;  %4812 = vpow2.f32 %v1906_v3  ;;  %v1406_v3 = vmin.f32 %v6475_v17, 0.0  ;;  %v3064_v49 = vpack.c.b16 %v3009_v25, %v3008_v22 }
 0x1b2   : > { %v4811_v48 = vpop.eup %4810  ;;  %v2293_v24 = vsel %vm1333_vm9, %v6466_v42, %v4471_v2  ;;  %4814 = vpow2.f32 %v1908_v15  ;;  %v4348_v57 = vadd.f32 -1.0, %v4809_v16  ;;  %vm1217_vm9 = vcmp.gt.f32.partialorder %v6511_v7, 0.0 }
 0x1b3   : > { %v2294_v43 = vsel %vm1334_vm10, %v6473_v34, %v4472_v10  ;;  %v2167_v34 = vsel %vm1207_vm7, %v6062_v46, %v4345_v56  ;;  %v6548_v2 = vpop.f32.mrf.mxu1  ;;  %v6553_v10 = vld [vmem:[%s5617_s26] ss:$0 sm:$0xff]  ;;  %4816 = vpow2.f32 %v1666_v4  ;;  %v6555_v56 = vpack.c.bf16 %v2165_v54, %v2164_v6 }
 0x1b4   : > { %v6531_v32 = vpack.c.bf16 %v2294_v43, %v2293_v24  ;;  %v6536_v42 = vpop.f32.mrf.mxu2  ;;  %v1656_v43 = vmul.f32 1.442695, %v1403_v59  ;;  %v1662_v16 = vmul.f32 1.442695, %v1406_v3  ;;  %v6559_v27 = vpack.c.bf16 %v2168_v1, %v2167_v34 }
 0x1b5   : > { %v1531_v5 = vmin.f32 %v6536_v42, 0.0  ;;  %v6546_v41 = vpop.f32.mrf.mxu3  ;;  %v6569_v45 = vsel %vm1210_vm12, %v6100_v23, %v4348_v57  ;;  %v4351_v4 = vadd.f32 -1.0, %v4811_v48  ;;  %v2532_v3 = vunpack.c.l.b16 %v6555_v56 }
 0x1b6   : > { %v1532_v15 = vmin.f32 %v6546_v41, 0.0  ;;  %v3129_v24 = vpop.f32.mrf.mxu0  ;;  %v2533_v48 = vunpack.c.l.b16 %v6559_v27  ;;  %vm1340_vm0 = vcmp.gt.f32.partialorder %v6546_v41, 0.0  ;;  %v3050_v1 = vunpack.c.h.b16 %v6429_v8 }
 0x1b7   : > { %v4813_v46 = vpop.eup %4812  ;;  %v1912_v60 = vmul.f32 1.442695, %v1531_v5  ;;  %v3130_v29 = vadd.f32 %v6553_v10, %v3129_v24  ;;  %v3010_v5 = vunpack.c.h.b16 %v6555_v56  ;;  %v2575_v56 = vunpack.c.l.b16 %v6531_v32 }
 0x1b8   : > { %v4815_v9 = vpop.eup %4814  ;;  %v4474_v22 = vadd.f32 -1.0, %v4813_v46  ;;  %v1914_v25 = vmul.f32 1.442695, %v1532_v15  ;;  %v3051_v15 = vunpack.c.h.b16 %v6464_v26  ;;  %vm1339_vm2 = vcmp.gt.f32.partialorder %v6536_v42, 0.0 }
 0x1b9   : > { %v4475_v19 = vadd.f32 -1.0, %v4815_v9  ;;  %4818 = vpow2.f32 %v1912_v60  ;;  %4264 = vmatmul.msk.bf16.gmra.mxu2 %vm546_vm1, %v5384_v51  ;;  %3168 = vmatmul.bf16.gmra.mxu0 %v3064_v49  ;;  %v1411_v51 = vmin.f32 %v6216_v31, 0.0  ;;  %v6580_v9 = vpop.eup %4816  ;;  %v2574_v60 = vunpack.c.l.b16 %v6501_v11 }
 0x1ba   : > { %v2296_v6 = vsel %vm1336_vm14, %v6503_v14, %v4474_v22  ;;  %4820 = vpow2.f32 %v1914_v25  ;;  %2738 = vmatmul.bf16.gmra.mxu3 %v2586_v44  ;;  %v6594_v25 = vpack.c.b16 %v3051_v15, %v3050_v1  ;;  %v1409_v1 = vmin.f32 %v6511_v7, 0.0 }
 0x1bb   : > { %v2297_v59 = vsel %vm1337_vm13, %v6508_v50, %v4475_v19  ;;  %4822 = vpow2.f32 %v1656_v43  ;;  %v3011_v50 = vunpack.c.h.b16 %v6559_v27  ;;  %v6586_v49 = vpop.f32.mrf.mxu1  ;;  %v3053_v19 = vunpack.c.h.b16 %v6531_v32 }
 0x1bc   : > { %v6575_v54 = vpack.c.bf16 %v2297_v59, %v2296_v6  ;;  %v6577_v14 = vpop.f32.mrf.mxu2  ;;  %4824 = vpow2.f32 %v1662_v16  ;;  %v3052_v16 = vunpack.c.h.b16 %v6501_v11  ;;  %v6599_v26 = vpack.c.b16 %v2575_v56, %v2574_v60 }
 0x1bd   : > { %v1344_v23 = vmin.f32 %v6577_v14, 0.0  ;;  %v2699_v34 = vpop.f32.mrf.mxu3  ;;  %4826 = vtanh.f32 %v3130_v29  ;;  %v2173_v11 = vsel %vm1213_vm15, %v6139_v55, %v4351_v4  ;;  %v1672_v32 = vmul.f32 1.442695, %v1411_v51 }
 0x1be   : > { %v3131_v57 = vpop.f32.mrf.mxu0  ;;  %v2700_v59 = vadd.f32 %v6553_v10, %v2699_v34  ;;  %v3065_v51 = vpack.c.b16 %v3011_v50, %v3010_v5  ;;  %vm1152_vm6 = vcmp.gt.f32.partialorder %v6577_v14, 0.0  ;;  %vm1219_vm7 = vcmp.gt.f32.partialorder %v6216_v31, 0.0 }
 0x1bf   : > { %v4819_v24 = vpop.eup %4818  ;;  %v1538_v44 = vmul.f32 1.442695, %v1344_v23  ;;  %v3132_v46 = vadd.f32 %v6553_v10, %v3131_v57  ;;  %v6603_v23 = vpack.c.b16 %v3053_v19, %v3052_v16  ;;  %vm1220_vm10 = vcmp.gt.f32.partialorder %v6548_v2, 0.0 }
 0x1c0   : > { %v4821_v43 = vpop.eup %4820  ;;  %v4477_v22 = vadd.f32 -1.0, %v4819_v24  ;;  %v1414_v24 = vmin.f32 %v6254_v13, 0.0  ;;  %vm1225_vm13 = vcmp.gt.f32.partialorder %v6293_v47, 0.0  ;;  %vm1223_vm15 = vcmp.gt.f32.partialorder %v6586_v49, 0.0 }
 0x1c1   : > { %v4823_v27 = vpop.eup %4822  ;;  %v4478_v8 = vadd.f32 -1.0, %v4821_v43  ;;  %4828 = vpow2.f32 %v1538_v44 }
 0x1c2   : > { %v4825_v6 = vpop.eup %4824  ;;  %v2299_v29 = vsel %vm1339_vm2, %v6536_v42, %v4477_v22  ;;  %4830 = vtanh.f32 %v3132_v46  ;;  %v4349_v44 = vadd.f32 -1.0, %v4823_v27  ;;  %v1412_v46 = vmin.f32 %v6548_v2, 0.0 }
 0x1c3   : > { %v2300_v57 = vsel %vm1340_vm0, %v6546_v41, %v4478_v8  ;;  %v4827_v15 = vpop.eup %4826  ;;  %v4352_v60 = vadd.f32 -1.0, %v4825_v6  ;;  %v6618_v56 = vpop.f32.mrf.mxu1  ;;  %4832 = vtanh.f32 %v2700_v59  ;;  %v2587_v22 = vpack.c.b16 %v2533_v48, %v2532_v3  ;;  %v5385_v48 = vld [vmem:[%s5604_s27 + $0x48] sm:$0xff] }
 0x1c4   : > { %v2428_v42 = vpack.c.bf16 %v2300_v57, %v2299_v29  ;;  %v6613_v34 = vpop.f32.mrf.mxu2  ;;  %4834 = vpow2.f32 %v1672_v32  ;;  %v1668_v8 = vmul.f32 1.442695, %v1409_v1  ;;  %v1678_v29 = vmul.f32 1.442695, %v1414_v24 }
 0x1c5   : > { %v1347_v55 = vmin.f32 %v6613_v34, 0.0  ;;  %v2701_v4 = vpop.f32.mrf.mxu3  ;;  %v2171_v5 = vsel %vm1211_vm3, %v6440_v18, %v4349_v44  ;;  %v1674_v50 = vmul.f32 1.442695, %v1412_v46  ;;  %v1417_v59 = vmin.f32 %v6293_v47, 0.0 }
 0x1c6   : > { %v2702_v41 = vadd.f32 %v6553_v10, %v2701_v4  ;;  %v3134_v43 = vpop.f32.mrf.mxu0  ;;  %v2174_v3 = vsel %vm1214_vm4, %v6475_v17, %v4352_v60  ;;  %v2576_v1 = vunpack.c.l.b16 %v6575_v54  ;;  %v2577_v18 = vunpack.c.l.b16 %v2428_v42 }
 0x1c7   : > { %v4829_v16 = vpop.eup %4828  ;;  %v1544_v19 = vmul.f32 1.442695, %v1347_v55  ;;  %v3135_v27 = vadd.f32 %v6553_v10, %v3134_v43  ;;  %v6634_v24 = vpack.c.bf16 %v2171_v5, %v6569_v45  ;;  %v2344_v46 = vpack.c.bf16 %v2174_v3, %v2173_v11 }
 0x1c8   : > { %v4831_v6 = vpop.eup %4830  ;;  %4836 = vtanh.f32 %v2702_v41  ;;  %v4290_v32 = vadd.f32 -1.0, %v4829_v16  ;;  %v6638_v17 = vpack.c.b16 %v2577_v18, %v2576_v1  ;;  %v3054_v60 = vunpack.c.h.b16 %v6575_v54 }
 0x1c9   : > { %v3353_v57 = vadd.f32 %v4831_v6, %v4827_v15  ;;  %4838 = vpow2.f32 %v1544_v19  ;;  %4265 = vmatmul.msk.bf16.gmra.mxu2 %vm546_vm1, %v5385_v48  ;;  %3173 = vmatmul.bf16.gmra.mxu0 %v3065_v51  ;;  %v3055_v15 = vunpack.c.h.b16 %v2428_v42  ;;  %v4833_v44 = vpop.eup %4832  ;;  %v4354_v51 = vadd.f32 -1.0, %v6580_v9 }
 0x1ca   : > { %4840 = vtanh.f32 %v3135_v27  ;;  %2743 = vmatmul.bf16.gmra.mxu3 %v2587_v22  ;;  %7217 = vst [vmem:[#allocation25_spill] sm:$0xff] %v6638_v17  ;;  %v4835_v4 = vpop.eup %4834  ;;  %v1684_v11 = vmul.f32 1.442695, %v1417_v59  ;;  %v2112_v43 = vsel %vm1152_vm6, %v6577_v14, %v4290_v32  ;;  %v2534_v6 = vunpack.c.l.b16 %v6634_v24 }
 0x1cb   : > { %4842 = vpow2.f32 %v1668_v8  ;;  %v6648_v16 = vpack.c.b16 %v3055_v15, %v3054_v60  ;;  %v3012_v59 = vunpack.c.h.b16 %v6634_v24  ;;  %v3013_v14 = vunpack.c.h.b16 %v2344_v46 }
 0x1cc   : > { %v6636_v55 = vpop.f32.mrf.mxu2  ;;  %4844 = vpow2.f32 %v1674_v50  ;;  %v2303_v48 = vpack.c.bf16 %v2112_v43, %v2112_v43  ;;  %vm1155_vm8 = vcmp.gt.f32.partialorder %v6613_v34, 0.0  ;;  %v2535_v15 = vunpack.c.l.b16 %v2344_v46 }
 0x1cd   : > { %4846 = vpow2.f32 %v1678_v29  ;;  %v1350_v45 = vmin.f32 %v6636_v55, 0.0  ;;  %v2704_v42 = vpop.f32.mrf.mxu3  ;;  %v6652_v29 = vpop.f32.mrf.mxu1  ;;  %vm1158_vm12 = vcmp.gt.f32.partialorder %v6636_v55, 0.0  ;;  %vm1226_vm0 = vcmp.gt.f32.partialorder %v6618_v56, 0.0 }
 0x1ce   : > { %v4837_v41 = vpop.eup %4836  ;;  %v2705_v22 = vadd.f32 %v6553_v10, %v2704_v42  ;;  %v3136_v54 = vpop.f32.mrf.mxu0  ;;  %v1420_v42 = vmin.f32 %v6329_v36, 0.0  ;;  %vm1228_vm2 = vcmp.gt.f32.partialorder %v6329_v36, 0.0  ;;  %vm1231_vm4 = vcmp.gt.f32.partialorder %v6369_v37, 0.0 }
 0x1cf   : > { %v4839_v19 = vpop.eup %4838  ;;  %v2923_v27 = vadd.f32 %v4837_v41, %v4833_v44  ;;  %v1550_v9 = vmul.f32 1.442695, %v1350_v45  ;;  %v3137_v8 = vadd.f32 %v6553_v10, %v3136_v54  ;;  %v1415_v44 = vmin.f32 %v6586_v49, 0.0 }
 0x1d0   : > { %v4841_v5 = vpop.eup %4840  ;;  %v4293_v50 = vadd.f32 -1.0, %v4839_v19  ;;  %4848 = vtanh.f32 %v2705_v22  ;;  %v4357_v45 = vadd.f32 -1.0, %v4835_v4  ;;  %v1418_v22 = vmin.f32 %v6618_v56, 0.0 }
 0x1d1   : > { %v4843_v3 = vpop.eup %4842  ;;  %v3354_v32 = vadd.f32 %v4841_v5, %v3353_v57  ;;  %4850 = vpow2.f32 %v1550_v9  ;;  %v3066_v57 = vpack.c.b16 %v3013_v14, %v3012_v59  ;;  %v3486_v54 = vunpack.c.l.b16 %v2303_v48 }
 0x1d2   : > { %v4845_v1 = vpop.eup %4844  ;;  %v2115_v18 = vsel %vm1155_vm8, %v6613_v34, %v4293_v50  ;;  %4852 = vtanh.f32 %v3137_v8  ;;  %v4355_v41 = vadd.f32 -1.0, %v4843_v3  ;;  %v2588_v5 = vpack.c.b16 %v2535_v15, %v2534_v6 }
 0x1d3   : > { %v4847_v60 = vpop.eup %4846  ;;  %4854 = vpow2.f32 %v1684_v11  ;;  %v2305_v24 = vpack.c.bf16 %v2115_v18, %v2115_v18  ;;  %v4358_v19 = vadd.f32 -1.0, %v4845_v1  ;;  %v1680_v50 = vmul.f32 1.442695, %v1415_v44 }
 0x1d4   : > { %v6660_v43 = vpop.f32.mrf.mxu2  ;;  %v2176_v1 = vsel %vm1216_vm5, %v6177_v63, %v4354_v51  ;;  %v2177_v17 = vsel %vm1217_vm9, %v6511_v7, %v4355_v41  ;;  %v1690_v7 = vmul.f32 1.442695, %v1420_v42  ;;  %v1423_v51 = vmin.f32 %v6369_v37, 0.0 }
 0x1d5   : > { %v3487_v34 = vunpack.c.l.b16 %v2305_v24  ;;  %v1353_v46 = vmin.f32 %v6660_v43, 0.0  ;;  %v2706_v9 = vpop.f32.mrf.mxu3  ;;  %v2180_v44 = vsel %vm1220_vm10, %v6548_v2, %v4358_v19  ;;  %v6681_v63 = vpop.f32.mrf.mxu1  ;;  %v4360_v2 = vadd.f32 -1.0, %v4847_v60 }
 0x1d6   : > { %v4849_v8 = vpop.eup %4848  ;;  %v2707_v4 = vadd.f32 %v6553_v10, %v2706_v9  ;;  %v3139_v11 = vpop.f32.mrf.mxu0  ;;  %v1686_v9 = vmul.f32 1.442695, %v1418_v22  ;;  %vm1161_vm14 = vcmp.gt.f32.partialorder %v6660_v43, 0.0  ;;  %vm1229_vm6 = vcmp.gt.f32.partialorder %v6652_v29, 0.0 }
 0x1d7   : > { %v4851_v3 = vpop.eup %4850  ;;  %v2924_v18 = vadd.f32 %v4849_v8, %v2923_v27  ;;  %v1556_v59 = vmul.f32 1.442695, %v1353_v46  ;;  %v3140_v14 = vadd.f32 %v6553_v10, %v3139_v11  ;;  %v3550_v48 = vpack.c.b16 %v3487_v34, %v3486_v54  ;;  %v5386_v54 = vld [vmem:[%s5604_s27 + $0x50] sm:$0xff] }
 0x1d8   : > { %v4853_v24 = vpop.eup %4852  ;;  %4856 = vtanh.f32 %v2707_v4  ;;  %v2179_v27 = vsel %vm1219_vm7, %v6216_v31, %v4357_v45  ;;  %v4296_v41 = vadd.f32 -1.0, %v4851_v3  ;;  %v2346_v31 = vpack.c.bf16 %v2177_v17, %v2176_v1 }
 0x1d9   : > { %v4855_v6 = vpop.eup %4854  ;;  %v3355_v15 = vadd.f32 %v4853_v24, %v3354_v32  ;;  %4858 = vpow2.f32 %v1556_v59  ;;  %4266 = vmatmul.msk.bf16.gmra.mxu2 %vm546_vm1, %v5386_v54  ;;  %3178 = vmatmul.bf16.gmra.mxu0 %v3066_v57  ;;  %v2348_v32 = vpack.c.bf16 %v2180_v44, %v2179_v27  ;;  %v1696_v34 = vmul.f32 1.442695, %v1423_v51 }
 0x1da   : > { %4860 = vtanh.f32 %v3140_v14  ;;  %2748 = vmatmul.bf16.gmra.mxu3 %v2588_v5  ;;  %3622 = vmatmul.bf16.vlgmr.msrb.gmra.mxu1 %v3550_v48  ;;  %v2118_v17 = vsel %vm1158_vm12, %v6636_v55, %v4296_v41  ;;  %v2536_v5 = vunpack.c.l.b16 %v2346_v31  ;;  %v3014_v59 = vunpack.c.h.b16 %v2346_v31 }
 0x1db   : > { %4862 = vpow2.f32 %v1680_v50  ;;  %v3015_v14 = vunpack.c.h.b16 %v2348_v32  ;;  %v2307_v24 = vpack.c.bf16 %v2118_v17, %v2118_v17  ;;  %v1421_v27 = vmin.f32 %v6652_v29, 0.0 }
 0x1dc   : > { %v6684_v45 = vpop.f32.mrf.mxu2  ;;  %4864 = vpow2.f32 %v1686_v9  ;;  %v4363_v44 = vadd.f32 -1.0, %v4855_v6  ;;  %v1426_v54 = vmin.f32 %v6407_v52, 0.0  ;;  %vm1232_vm7 = vcmp.gt.f32.partialorder %v6681_v63, 0.0 }
 0x1dd   : > { %v1356_v57 = vmin.f32 %v6684_v45, 0.0  ;;  %v2709_v42 = vpop.f32.mrf.mxu3  ;;  %4866 = vpow2.f32 %v1690_v7  ;;  %v6697_v51 = vpop.f32.mrf.mxu1  ;;  %vm1164_vm3 = vcmp.gt.f32.partialorder %v6684_v45, 0.0  ;;  %vm1234_vm8 = vcmp.gt.f32.partialorder %v6407_v52, 0.0 }
 0x1de   : > { %v4857_v22 = vpop.eup %4856  ;;  %v2710_v19 = vadd.f32 %v6553_v10, %v2709_v42  ;;  %v3141_v46 = vpop.f32.mrf.mxu0  ;;  %v3488_v42 = vunpack.c.l.b16 %v2307_v24  ;;  %v2182_v24 = vsel %vm1222_vm11, %v6254_v13, %v4360_v2  ;;  %v1702_v13 = vmul.f32 1.442695, %v1426_v54 }
 0x1df   : > { %v4859_v8 = vpop.eup %4858  ;;  %v2925_v4 = vadd.f32 %v4857_v22, %v2924_v18  ;;  %v1562_v11 = vmul.f32 1.442695, %v1356_v57  ;;  %v3142_v60 = vadd.f32 %v6553_v10, %v3141_v46  ;;  %v2537_v18 = vunpack.c.l.b16 %v2348_v32 }
 0x1e0   : > { %v4861_v50 = vpop.eup %4860  ;;  %v4299_v3 = vadd.f32 -1.0, %v4859_v8  ;;  %4868 = vtanh.f32 %v2710_v19  ;;  %v3067_v57 = vpack.c.b16 %v3015_v14, %v3014_v59  ;;  %vm1237_vm9 = vcmp.gt.f32.partialorder %v6443_v28, 0.0 }
 0x1e1   : > { %v4863_v48 = vpop.eup %4862  ;;  %v3356_v1 = vadd.f32 %v4861_v50, %v3355_v15  ;;  %4870 = vpow2.f32 %v1562_v11  ;;  %v2589_v8 = vpack.c.b16 %v2537_v18, %v2536_v5  ;;  %v1692_v11 = vmul.f32 1.442695, %v1421_v27 }
 0x1e2   : > { %v4865_v55 = vpop.eup %4864  ;;  %v2121_v9 = vsel %vm1161_vm14, %v6660_v43, %v4299_v3  ;;  %4872 = vtanh.f32 %v3142_v60  ;;  %v4361_v31 = vadd.f32 -1.0, %v4863_v48  ;;  %v1424_v43 = vmin.f32 %v6681_v63, 0.0 }
 0x1e3   : > { %4874 = vpow2.f32 %v1696_v34  ;;  %v2309_v7 = vpack.c.bf16 %v2121_v9, %v2121_v9  ;;  %v4867_v41 = vpop.eup %4866  ;;  %v4364_v32 = vadd.f32 -1.0, %v4865_v55  ;;  %vm1235_vm12 = vcmp.gt.f32.partialorder %v6697_v51, 0.0 }
 0x1e4   : > { %v6700_v15 = vpop.f32.mrf.mxu2  ;;  %v2183_v55 = vsel %vm1223_vm15, %v6586_v49, %v4361_v31  ;;  %v1698_v9 = vmul.f32 1.442695, %v1424_v43  ;;  %v1429_v49 = vmin.f32 %v6443_v28, 0.0 }
 0x1e5   : > { %v1359_v22 = vmin.f32 %v6700_v15, 0.0  ;;  %v2711_v6 = vpop.f32.mrf.mxu3  ;;  %v3489_v34 = vunpack.c.l.b16 %v2309_v7  ;;  %v2186_v27 = vsel %vm1226_vm0, %v6618_v56, %v4364_v32  ;;  %v5387_v7 = vld [vmem:[%s5604_s27 + $0x58] sm:$0xff]  ;;  %v2350_v31 = vpack.c.bf16 %v2183_v55, %v2182_v24 }
 0x1e6   : > { %v4869_v17 = vpop.eup %4868  ;;  %v2712_v19 = vadd.f32 %v6553_v10, %v2711_v6  ;;  %v3144_v46 = vpop.f32.mrf.mxu0  ;;  %v4366_v56 = vadd.f32 -1.0, %v4867_v41  ;;  %vm1167_vm5 = vcmp.gt.f32.partialorder %v6700_v15, 0.0  ;;  %v1427_v55 = vmin.f32 %v6697_v51, 0.0 }
 0x1e7   : > { %v4871_v60 = vpop.eup %4870  ;;  %v2926_v50 = vadd.f32 %v4869_v17, %v2925_v4  ;;  %v1568_v3 = vmul.f32 1.442695, %v1359_v22  ;;  %v3145_v59 = vadd.f32 %v6553_v10, %v3144_v46  ;;  %v3551_v14 = vpack.c.b16 %v3489_v34, %v3488_v42 }
 0x1e8   : > { %v4873_v48 = vpop.eup %4872  ;;  %4876 = vtanh.f32 %v2712_v19  ;;  %v2185_v4 = vsel %vm1225_vm13, %v6293_v47, %v4363_v44  ;;  %v4302_v2 = vadd.f32 -1.0, %v4871_v60  ;;  %v1708_v42 = vmul.f32 1.442695, %v1429_v49 }
 0x1e9   : > { %v4875_v5 = vpop.eup %4874  ;;  %v3357_v18 = vadd.f32 %v4873_v48, %v3356_v1  ;;  %4878 = vpow2.f32 %v1568_v3  ;;  %4267 = vmatmul.msk.bf16.gmra.mxu2 %vm546_vm1, %v5387_v7  ;;  %3183 = vmatmul.bf16.gmra.mxu0 %v3067_v57  ;;  %v2352_v47 = vpack.c.bf16 %v2186_v27, %v2185_v4  ;;  %v6727_v57 = vpop.f32.mrf.mxu1  ;;  %v2538_v46 = vunpack.c.l.b16 %v2350_v31 }
 0x1ea   : > { %4880 = vtanh.f32 %v3145_v59  ;;  %2753 = vmatmul.bf16.gmra.mxu3 %v2589_v8  ;;  %3627 = vmatmul.bf16.gmra.mxu1 %v3551_v14  ;;  %v2124_v32 = vsel %vm1164_vm3, %v6684_v45, %v4302_v2  ;;  %v3016_v60 = vunpack.c.h.b16 %v2350_v31  ;;  %v1432_v4 = vmin.f32 %v6479_v12, 0.0 }
 0x1eb   : > { %4882 = vpow2.f32 %v1692_v11  ;;  %v3017_v3 = vunpack.c.h.b16 %v2352_v47  ;;  %v2311_v14 = vpack.c.bf16 %v2124_v32, %v2124_v32  ;;  %v1430_v2 = vmin.f32 %v6727_v57, 0.0 }
 0x1ec   : > { %v6722_v1 = vpop.f32.mrf.mxu2  ;;  %4884 = vpow2.f32 %v1698_v9  ;;  %v4369_v9 = vadd.f32 -1.0, %v4875_v5  ;;  %vm1238_vm13 = vcmp.gt.f32.partialorder %v6727_v57, 0.0  ;;  %vm1240_vm0 = vcmp.gt.f32.partialorder %v6479_v12, 0.0 }
 0x1ed   : > { %v1362_v44 = vmin.f32 %v6722_v1, 0.0  ;;  %v2714_v54 = vpop.f32.mrf.mxu3  ;;  %4886 = vpow2.f32 %v1702_v13  ;;  %vm1170_vm10 = vcmp.gt.f32.partialorder %v6722_v1, 0.0 }
 0x1ee   : > { %v4877_v43 = vpop.eup %4876  ;;  %v2715_v22 = vadd.f32 %v6553_v10, %v2714_v54  ;;  %v3146_v6 = vpop.f32.mrf.mxu0 }
 0x1ef   : > { %v4879_v34 = vpop.eup %4878  ;;  %v2927_v17 = vadd.f32 %v4877_v43, %v2926_v50  ;;  %v1574_v41 = vmul.f32 1.442695, %v1362_v44  ;;  %v3147_v19 = vadd.f32 %v6553_v10, %v3146_v6  ;;  %v2539_v50 = vunpack.c.l.b16 %v2352_v47 }
 0x1f0   : > { %v4881_v8 = vpop.eup %4880  ;;  %v4305_v11 = vadd.f32 -1.0, %v4879_v34  ;;  %4888 = vtanh.f32 %v2715_v22  ;;  %v1704_v22 = vmul.f32 1.442695, %v1427_v55 }
 0x1f1   : > { %v4883_v59 = vpop.eup %4882  ;;  %v3358_v48 = vadd.f32 %v4881_v8, %v3357_v18  ;;  %4890 = vpow2.f32 %v1574_v41  ;;  %v3068_v18 = vpack.c.b16 %v3017_v3, %v3016_v60  ;;  %v2590_v32 = vpack.c.b16 %v2539_v50, %v2538_v46  ;;  %v5388_v50 = vld [vmem:[%s5604_s27 + $0x60] sm:$0xff] }
 0x1f2   : > { %v4885_v45 = vpop.eup %4884  ;;  %v2127_v24 = vsel %vm1167_vm5, %v6700_v15, %v4305_v11  ;;  %4892 = vtanh.f32 %v3147_v19  ;;  %v4367_v13 = vadd.f32 -1.0, %v4883_v59  ;;  %v3490_v15 = vunpack.c.l.b16 %v2311_v14  ;;  %v6747_v11 = vpop.f32.mrf.mxu1 }
 0x1f3   : > { %4894 = vpow2.f32 %v1708_v42  ;;  %v2313_v27 = vpack.c.bf16 %v2127_v24, %v2127_v24  ;;  %v6737_v7 = vpop.eup %4886  ;;  %v4370_v31 = vadd.f32 -1.0, %v4885_v45  ;;  %v2188_v3 = vsel %vm1228_vm2, %v6329_v36, %v4366_v56 }
 0x1f4   : > { %v6740_v49 = vpop.f32.mrf.mxu2  ;;  %v2189_v59 = vsel %vm1229_vm6, %v6652_v29, %v4367_v13  ;;  %v1710_v46 = vmul.f32 1.442695, %v1430_v2  ;;  %v1714_v36 = vmul.f32 1.442695, %v1432_v4  ;;  %v1435_v29 = vmin.f32 %v6514_v0, 0.0 }
 0x1f5   : > { %v1365_v47 = vmin.f32 %v6740_v49, 0.0  ;;  %v2716_v44 = vpop.f32.mrf.mxu3  ;;  %v3491_v5 = vunpack.c.l.b16 %v2313_v27  ;;  %v2192_v24 = vsel %vm1232_vm7, %v6681_v63, %v4370_v31  ;;  %v2354_v55 = vpack.c.bf16 %v2189_v59, %v2188_v3 }
 0x1f6   : > { %v4889_v54 = vpop.eup %4888  ;;  %v2717_v43 = vadd.f32 %v6553_v10, %v2716_v44  ;;  %v3149_v42 = vpop.f32.mrf.mxu0  ;;  %v1720_v27 = vmul.f32 1.442695, %v1435_v29  ;;  %vm1173_vm11 = vcmp.gt.f32.partialorder %v6740_v49, 0.0  ;;  %v4372_v3 = vadd.f32 -1.0, %v6737_v7 }
 0x1f7   : > { %v4891_v6 = vpop.eup %4890  ;;  %v2928_v34 = vadd.f32 %v4889_v54, %v2927_v17  ;;  %v1580_v41 = vmul.f32 1.442695, %v1365_v47  ;;  %v3150_v19 = vadd.f32 %v6553_v10, %v3149_v42  ;;  %v3552_v8 = vpack.c.b16 %v3491_v5, %v3490_v15 }
 0x1f8   : > { %v4893_v60 = vpop.eup %4892  ;;  %4896 = vtanh.f32 %v2717_v43  ;;  %v2191_v17 = vsel %vm1231_vm4, %v6369_v37, %v4369_v9  ;;  %v4308_v56 = vadd.f32 -1.0, %v4891_v6  ;;  %v2540_v5 = vunpack.c.l.b16 %v2354_v55 }
 0x1f9   : > { %v4895_v14 = vpop.eup %4894  ;;  %v3359_v45 = vadd.f32 %v4893_v60, %v3358_v48  ;;  %4898 = vpow2.f32 %v1580_v41  ;;  %4268 = vmatmul.msk.bf16.gmra.mxu2 %vm546_vm1, %v5388_v50  ;;  %3188 = vmatmul.bf16.gmra.mxu0 %v3068_v18  ;;  %v2356_v37 = vpack.c.bf16 %v2192_v24, %v2191_v17  ;;  %v3018_v42 = vunpack.c.h.b16 %v2354_v55 }
 0x1fa   : > { %4900 = vtanh.f32 %v3150_v19  ;;  %2758 = vmatmul.bf16.gmra.mxu3 %v2590_v32  ;;  %3632 = vmatmul.bf16.gmra.mxu1 %v3552_v8  ;;  %v2130_v13 = vsel %vm1170_vm10, %v6722_v1, %v4308_v56  ;;  %v6774_v1 = vpop.f32.mrf.mxu1  ;;  %v1433_v60 = vmin.f32 %v6747_v11, 0.0  ;;  %v4375_v59 = vadd.f32 -1.0, %v4895_v14 }
 0x1fb   : > { %4902 = vpow2.f32 %v1704_v22  ;;  %v3019_v32 = vunpack.c.h.b16 %v2356_v37  ;;  %v2315_v6 = vpack.c.bf16 %v2130_v13, %v2130_v13  ;;  %v2541_v8 = vunpack.c.l.b16 %v2356_v37 }
 0x1fc   : > { %v6764_v48 = vpop.f32.mrf.mxu2  ;;  %4904 = vpow2.f32 %v1710_v46  ;;  %vm1243_vm2 = vcmp.gt.f32.partialorder %v6514_v0, 0.0  ;;  %vm1241_vm3 = vcmp.gt.f32.partialorder %v6747_v11, 0.0  ;;  %vm1244_vm4 = vcmp.gt.f32.partialorder %v6774_v1, 0.0 }
 0x1fd   : > { %v1368_v63 = vmin.f32 %v6764_v48, 0.0  ;;  %v2719_v9 = vpop.f32.mrf.mxu3  ;;  %4906 = vpow2.f32 %v1714_v36  ;;  %v3069_v50 = vpack.c.b16 %v3019_v32, %v3018_v42  ;;  %v1436_v36 = vmin.f32 %v6774_v1, 0.0 }
 0x1fe   : > { %v4897_v4 = vpop.eup %4896  ;;  %v2720_v18 = vadd.f32 %v6553_v10, %v2719_v9  ;;  %v3151_v2 = vpop.f32.mrf.mxu0  ;;  %v2591_v9 = vpack.c.b16 %v2541_v8, %v2540_v5  ;;  %vm1176_vm14 = vcmp.gt.f32.partialorder %v6764_v48, 0.0 }
 0x1ff   : > { %v4899_v15 = vpop.eup %4898  ;;  %v2929_v31 = vadd.f32 %v4897_v4, %v2928_v34  ;;  %v1586_v47 = vmul.f32 1.442695, %v1368_v63  ;;  %v3152_v44 = vadd.f32 %v6553_v10, %v3151_v2  ;;  %v1716_v4 = vmul.f32 1.442695, %v1433_v60 }
 0x200   : > { %v4901_v54 = vpop.eup %4900  ;;  %v4311_v43 = vadd.f32 -1.0, %v4899_v15  ;;  %4908 = vtanh.f32 %v2720_v18 }
 0x201   : > { %v4903_v22 = vpop.eup %4902  ;;  %v3360_v41 = vadd.f32 %v4901_v54, %v3359_v45  ;;  %4910 = vpow2.f32 %v1586_v47  ;;  %v2197_v54 = vsel %vm1237_vm9, %v6443_v28, %v4375_v59 }
 0x202   : > { %v4905_v19 = vpop.eup %4904  ;;  %v2133_v34 = vsel %vm1173_vm11, %v6740_v49, %v4311_v43  ;;  %4912 = vtanh.f32 %v3152_v44  ;;  %v4373_v45 = vadd.f32 -1.0, %v4903_v22  ;;  %v3492_v49 = vunpack.c.l.b16 %v2315_v6  ;;  %v5389_v22 = vld [vmem:[%s5604_s27 + $0x68] sm:$0xff] }
 0x203   : > { %4914 = vpow2.f32 %v1720_v27  ;;  %v2317_v46 = vpack.c.bf16 %v2133_v34, %v2133_v34  ;;  %v6779_v17 = vpop.eup %4906  ;;  %v4376_v29 = vadd.f32 -1.0, %v4905_v19  ;;  %v2194_v44 = vsel %vm1234_vm8, %v6407_v52, %v4372_v3 }
 0x204   : > { %v6782_v24 = vpop.f32.mrf.mxu2  ;;  %v1722_v43 = vmul.f32 1.442695, %v1436_v36 }
 0x205   : > { %v1371_v56 = vmin.f32 %v6782_v24, 0.0  ;;  %v2721_v55 = vpop.f32.mrf.mxu3  ;;  %v3493_v37 = vunpack.c.l.b16 %v2317_v46  ;;  %v2198_v32 = vsel %vm1238_vm13, %v6727_v57, %v4376_v29  ;;  %vm1179_vm15 = vcmp.gt.f32.partialorder %v6782_v24, 0.0 }
 0x206   : > { %v4909_v7 = vpop.eup %4908  ;;  %v2722_v14 = vadd.f32 %v6553_v10, %v2721_v55  ;;  %v3154_v63 = vpop.f32.mrf.mxu0  ;;  %v2360_v6 = vpack.c.bf16 %v2198_v32, %v2197_v54 }
 0x207   : > { %v4911_v27 = vpop.eup %4910  ;;  %v2930_v13 = vadd.f32 %v4909_v7, %v2929_v31  ;;  %v1592_v18 = vmul.f32 1.442695, %v1371_v56  ;;  %v3155_v2 = vadd.f32 %v6553_v10, %v3154_v63  ;;  %v3553_v15 = vpack.c.b16 %v3493_v37, %v3492_v49 }
 0x208   : > { %v4913_v47 = vpop.eup %4912  ;;  %4916 = vtanh.f32 %v2722_v14  ;;  %v2195_v31 = vsel %vm1235_vm12, %v6697_v51, %v4373_v45  ;;  %v4314_v52 = vadd.f32 -1.0, %v4911_v27  ;;  %v3021_v29 = vunpack.c.h.b16 %v2360_v6 }
 0x209   : > { %v4915_v5 = vpop.eup %4914  ;;  %v3361_v42 = vadd.f32 %v4913_v47, %v3360_v41  ;;  %4918 = vpow2.f32 %v1592_v18  ;;  %4269 = vmatmul.msk.bf16.gmra.mxu2 %vm546_vm1, %v5389_v22  ;;  %3193 = vmatmul.bf16.gmra.mxu0 %v3069_v50  ;;  %v2358_v28 = vpack.c.bf16 %v2195_v31, %v2194_v44  ;;  %v2543_v63 = vunpack.c.l.b16 %v2360_v6 }
 0x20a   : > { %4920 = vtanh.f32 %v3155_v2  ;;  %2763 = vmatmul.bf16.gmra.mxu3 %v2591_v9  ;;  %3637 = vmatmul.bf16.gmra.mxu1 %v3553_v15  ;;  %v2136_v34 = vsel %vm1176_vm14, %v6764_v48, %v4314_v52  ;;  %v4381_v27 = vadd.f32 -1.0, %v4915_v5 }
 0x20b   : > { %4922 = vpow2.f32 %v1716_v4  ;;  %v3020_v49 = vunpack.c.h.b16 %v2358_v28  ;;  %v2319_v55 = vpack.c.bf16 %v2136_v34, %v2136_v34  ;;  %v2542_v14 = vunpack.c.l.b16 %v2358_v28 }
 0x20c   : > { %v6803_v19 = vpop.f32.mrf.mxu2  ;;  %4924 = vpow2.f32 %v1722_v43  ;;  %v4378_v4 = vadd.f32 -1.0, %v6779_v17 }
 0x20d   : > { %v1374_v51 = vmin.f32 %v6803_v19, 0.0  ;;  %v2724_v57 = vpop.f32.mrf.mxu3  ;;  %v3070_v2 = vpack.c.b16 %v3021_v29, %v3020_v49  ;;  %v3494_v15 = vunpack.c.l.b16 %v2319_v55  ;;  %v2592_v32 = vpack.c.b16 %v2543_v63, %v2542_v14 }
 0x20e   : > { %v4917_v41 = vpop.eup %4916  ;;  %v2725_v8 = vadd.f32 %v6553_v10, %v2724_v57  ;;  %v3156_v60 = vpop.f32.mrf.mxu0  ;;  %v2203_v57 = vsel %vm1243_vm2, %v6514_v0, %v4381_v27  ;;  %vm1182_vm5 = vcmp.gt.f32.partialorder %v6803_v19, 0.0 }
 0x20f   : > { %v4919_v3 = vpop.eup %4918  ;;  %v2931_v59 = vadd.f32 %v4917_v41, %v2930_v13  ;;  %v1598_v46 = vmul.f32 1.442695, %v1374_v51  ;;  %v3157_v45 = vadd.f32 %v6553_v10, %v3156_v60  ;;  %v2200_v51 = vsel %vm1240_vm0, %v6479_v12, %v4378_v4  ;;  %v5390_v60 = vld [vmem:[%s5604_s27 + $0x70] sm:$0xff] }
 0x210   : > { %v4921_v50 = vpop.eup %4920  ;;  %v4317_v36 = vadd.f32 -1.0, %v4919_v3  ;;  %4926 = vtanh.f32 %v2725_v8 }
 0x211   : > { %v4923_v56 = vpop.eup %4922  ;;  %v3362_v37 = vadd.f32 %v4921_v50, %v3361_v42  ;;  %4928 = vpow2.f32 %v1598_v46 }
 0x212   : > { %v4925_v48 = vpop.eup %4924  ;;  %v2139_v7 = vsel %vm1179_vm15, %v6782_v24, %v4317_v36  ;;  %4930 = vtanh.f32 %v3157_v45  ;;  %v4379_v13 = vadd.f32 -1.0, %v4923_v56  ;;  %v6832_v45 = vld [vmem:[%s5617_s26] ss:$0 sm:$0xff] }
 0x213   : > { %v2321_v9 = vpack.c.bf16 %v2139_v7, %v2139_v7  ;;  %v4382_v47 = vadd.f32 -1.0, %v4925_v48 }
 0x214   : > { %v1017_v18 = vpop.f32.mrf.mxu2  ;;  %v2201_v41 = vsel %vm1241_vm3, %v6747_v11, %v4379_v13 }
 0x215   : > { %v1377_v44 = vmin.f32 %v1017_v18, 0.0  ;;  %v2726_v54 = vpop.f32.mrf.mxu3  ;;  %v3495_v43 = vunpack.c.l.b16 %v2321_v9  ;;  %v2204_v8 = vsel %vm1244_vm4, %v6774_v1, %v4382_v47  ;;  %v2362_v12 = vpack.c.bf16 %v2201_v41, %v2200_v51  ;;  %v5392_v51 = vld [vmem:[%s5604_s27 + $0x78] sm:$0xff] }
 0x216   : > { %v4927_v24 = vpop.eup %4926  ;;  %v2727_v31 = vadd.f32 %v6553_v10, %v2726_v54  ;;  %v3159_v42 = vpop.f32.mrf.mxu0  ;;  %v2364_v3 = vpack.c.bf16 %v2204_v8, %v2203_v57  ;;  %vm1185_vm6 = vcmp.gt.f32.partialorder %v1017_v18, 0.0 }
 0x217   : > { %v4929_v17 = vpop.eup %4928  ;;  %v2932_v5 = vadd.f32 %v4927_v24, %v2931_v59  ;;  %v1604_v22 = vmul.f32 1.442695, %v1377_v44  ;;  %v3160_v52 = vadd.f32 %v6553_v10, %v3159_v42  ;;  %v3554_v28 = vpack.c.b16 %v3495_v43, %v3494_v15 }
 0x218   : > { %v4931_v6 = vpop.eup %4930  ;;  %4932 = vtanh.f32 %v2727_v31  ;;  %v4320_v10 = vadd.f32 -1.0, %v4929_v17  ;;  %v3022_v7 = vunpack.c.h.b16 %v2362_v12  ;;  %v3023_v14 = vunpack.c.h.b16 %v2364_v3 }
 0x219   : > { %v3363_v34 = vadd.f32 %v4931_v6, %v3362_v37  ;;  %4934 = vpow2.f32 %v1604_v22  ;;  %4270 = vmatmul.msk.bf16.gmra.mxu2 %vm546_vm1, %v5390_v60  ;;  %3198 = vmatmul.bf16.gmra.mxu0 %v3070_v2  ;;  %v2544_v4 = vunpack.c.l.b16 %v2362_v12  ;;  %v2545_v27 = vunpack.c.l.b16 %v2364_v3 }
 0x21a   : > { %4936 = vtanh.f32 %v3160_v52  ;;  %2768 = vmatmul.bf16.gmra.mxu3 %v2592_v32  ;;  %3642 = vmatmul.bf16.gmra.mxu1 %v3554_v28  ;;  %v2142_v1 = vsel %vm1182_vm5, %v6803_v19, %v4320_v10  ;;  %v3071_v54 = vpack.c.b16 %v3023_v14, %v3022_v7 }
 0x21b   : > { %v2323_v63 = vpack.c.bf16 %v2142_v1, %v2142_v1  ;;  %v2593_v32 = vpack.c.b16 %v2545_v27, %v2544_v4 }
 0x21c   : > { %v1020_v59 = vpop.f32.mrf.mxu2 }
 0x21d   : > { %v1380_v0 = vmin.f32 %v1020_v59, 0.0  ;;  %v2729_v11 = vpop.f32.mrf.mxu3  ;;  %v3496_v15 = vunpack.c.l.b16 %v2323_v63  ;;  %vm1188_vm7 = vcmp.gt.f32.partialorder %v1020_v59, 0.0 }
 0x21e   : > { %v4933_v46 = vpop.eup %4932  ;;  %v2730_v50 = vadd.f32 %v6832_v45, %v2729_v11  ;;  %v3161_v36 = vpop.f32.mrf.mxu0 }
 0x21f   : > { %v4935_v49 = vpop.eup %4934  ;;  %v2933_v29 = vadd.f32 %v4933_v46, %v2932_v5  ;;  %v1610_v56 = vmul.f32 1.442695, %v1380_v0  ;;  %v3162_v55 = vadd.f32 %v6832_v45, %v3161_v36 }
 0x220   : > { %v4937_v37 = vpop.eup %4936  ;;  %v4323_v48 = vadd.f32 -1.0, %v4935_v49  ;;  %4938 = vtanh.f32 %v2730_v50 }
 0x221   : > { %v3364_v9 = vadd.f32 %v4937_v37, %v3363_v34  ;;  %4940 = vpow2.f32 %v1610_v56 }
 0x222   : > { %v2145_v19 = vsel %vm1185_vm6, %v1017_v18, %v4323_v48  ;;  %4942 = vtanh.f32 %v3162_v55 }
 0x223   : > { %v2325_v13 = vpack.c.bf16 %v2145_v19, %v2145_v19 }
 0x224   : > { %v1022_v2 = vpop.f32.mrf.mxu2 }
 0x225   : > { %v1383_v47 = vmin.f32 %v1022_v2, 0.0  ;;  %v2731_v44 = vpop.f32.mrf.mxu3  ;;  %v3497_v43 = vunpack.c.l.b16 %v2325_v13  ;;  %vm1191_vm8 = vcmp.gt.f32.partialorder %v1022_v2, 0.0 }
 0x226   : > { %v4939_v24 = vpop.eup %4938  ;;  %v2732_v31 = vadd.f32 %v6832_v45, %v2731_v44  ;;  %v3164_v42 = vpop.f32.mrf.mxu0 }
 0x227   : > { %v4941_v17 = vpop.eup %4940  ;;  %v2934_v5 = vadd.f32 %v4939_v24, %v2933_v29  ;;  %v1616_v22 = vmul.f32 1.442695, %v1383_v47  ;;  %v3165_v18 = vadd.f32 %v6832_v45, %v3164_v42  ;;  %v3555_v52 = vpack.c.b16 %v3497_v43, %v3496_v15 }
 0x228   : > { %v4943_v28 = vpop.eup %4942  ;;  %4944 = vtanh.f32 %v2732_v31  ;;  %v4326_v57 = vadd.f32 -1.0, %v4941_v17 }
 0x229   : > { %v3365_v6 = vadd.f32 %v4943_v28, %v3364_v9  ;;  %4946 = vpow2.f32 %v1616_v22  ;;  %4271 = vmatmul.msk.bf16.gmra.mxu2 %vm546_vm1, %v5392_v51  ;;  %3203 = vmatmul.bf16.gmra.mxu0 %v3071_v54  ;;  %v5393_v54 = vld [vmem:[%s5604_s27 + $0x80] sm:$0xff] }
 0x22a   : > { %4948 = vtanh.f32 %v3165_v18  ;;  %2773 = vmatmul.bf16.gmra.mxu3 %v2593_v32  ;;  %3647 = vmatmul.bf16.gmra.mxu1 %v3555_v52  ;;  %v2148_v10 = vsel %vm1188_vm7, %v1020_v59, %v4326_v57 }
 0x22b   : > { %v2327_v49 = vpack.c.bf16 %v2148_v10, %v2148_v10 }
 0x22c   : > { %v1025_v41 = vpop.f32.mrf.mxu2 }
 0x22d   : > { %v1386_v34 = vmin.f32 %v1025_v41, 0.0  ;;  %v2734_v8 = vpop.f32.mrf.mxu3  ;;  %v3498_v59 = vunpack.c.l.b16 %v2327_v49  ;;  %vm1194_vm9 = vcmp.gt.f32.partialorder %v1025_v41, 0.0 }
 0x22e   : > { %v4945_v60 = vpop.eup %4944  ;;  %v2735_v12 = vadd.f32 %v6832_v45, %v2734_v8  ;;  %v3166_v3 = vpop.f32.mrf.mxu0 }
 0x22f   : > { %v4947_v0 = vpop.eup %4946  ;;  %v2935_v11 = vadd.f32 %v4945_v60, %v2934_v5  ;;  %v1622_v46 = vmul.f32 1.442695, %v1386_v34  ;;  %v3167_v1 = vadd.f32 %v6832_v45, %v3166_v3 }
 0x230   : > { %v4949_v50 = vpop.eup %4948  ;;  %v4329_v36 = vadd.f32 -1.0, %v4947_v0  ;;  %4950 = vtanh.f32 %v2735_v12 }
 0x231   : > { %v3366_v29 = vadd.f32 %v4949_v50, %v3365_v6  ;;  %4952 = vpow2.f32 %v1622_v46 }
 0x232   : > { %v2151_v56 = vsel %vm1191_vm8, %v1022_v2, %v4329_v36  ;;  %4954 = vtanh.f32 %v3167_v1 }
 0x233   : > { %v2329_v55 = vpack.c.bf16 %v2151_v56, %v2151_v56 }
 0x234   : > { %v1027_v37 = vpop.f32.mrf.mxu2 }
 0x235   : > { %v1389_v48 = vmin.f32 %v1027_v37, 0.0  ;;  %v2736_v7 = vpop.f32.mrf.mxu3  ;;  %v3499_v14 = vunpack.c.l.b16 %v2329_v55  ;;  %vm1197_vm10 = vcmp.gt.f32.partialorder %v1027_v37, 0.0 }
 0x236   : > { %v4951_v63 = vpop.eup %4950  ;;  %v2737_v9 = vadd.f32 %v6832_v45, %v2736_v7  ;;  %v3169_v19 = vpop.f32.mrf.mxu0 }
 0x237   : > { %v4953_v4 = vpop.eup %4952  ;;  %v2936_v27 = vadd.f32 %v4951_v63, %v2935_v11  ;;  %v1628_v13 = vmul.f32 1.442695, %v1389_v48  ;;  %v3170_v15 = vadd.f32 %v6832_v45, %v3169_v19  ;;  %v3556_v47 = vpack.c.b16 %v3499_v14, %v3498_v59 }
 0x238   : > { %v4955_v44 = vpop.eup %4954  ;;  %4956 = vtanh.f32 %v2737_v9  ;;  %v4332_v43 = vadd.f32 -1.0, %v4953_v4 }
 0x239   : > { %v3367_v2 = vadd.f32 %v4955_v44, %v3366_v29  ;;  %4958 = vpow2.f32 %v1628_v13  ;;  %4272 = vmatmul.msk.bf16.gmra.mxu2 %vm546_vm1, %v5393_v54  ;;  %3208 = vmatmul.bf16.gmra.mxu0 %v5697_v21 }
 0x23a   : > { %4960 = vtanh.f32 %v3170_v15  ;;  %2778 = vmatmul.bf16.gmra.mxu3 %v5695_v20  ;;  %3652 = vmatmul.bf16.gmra.mxu1 %v3556_v47  ;;  %v2154_v17 = vsel %vm1194_vm9, %v1025_v41, %v4332_v43 }
 0x23b   : > { %v2331_v57 = vpack.c.bf16 %v2154_v17, %v2154_v17 }
 0x23c   : > { %v1030_v24 = vpop.f32.mrf.mxu2 }
 0x23d   : > { %v1392_v31 = vmin.f32 %v1030_v24, 0.0  ;;  %v2739_v42 = vpop.f32.mrf.mxu3  ;;  %v3500_v41 = vunpack.c.l.b16 %v2331_v57  ;;  %vm1200_vm11 = vcmp.gt.f32.partialorder %v1030_v24, 0.0 }
 0x23e   : > { %v4957_v32 = vpop.eup %4956  ;;  %v2740_v5 = vadd.f32 %v6832_v45, %v2739_v42  ;;  %v3171_v22 = vpop.f32.mrf.mxu0 }
 0x23f   : > { %v4959_v18 = vpop.eup %4958  ;;  %v2937_v52 = vadd.f32 %v4957_v32, %v2936_v27  ;;  %v1634_v28 = vmul.f32 1.442695, %v1392_v31  ;;  %v3172_v6 = vadd.f32 %v6832_v45, %v3171_v22 }
 0x240   : > { %v4961_v21 = vpop.eup %4960  ;;  %v4335_v51 = vadd.f32 -1.0, %v4959_v18  ;;  %4962 = vtanh.f32 %v2740_v5 }
 0x241   : > { %v3368_v20 = vadd.f32 %v4961_v21, %v3367_v2  ;;  %4964 = vpow2.f32 %v1634_v28 }
 0x242   : > { %v2157_v34 = vsel %vm1197_vm10, %v1027_v37, %v4335_v51  ;;  %4966 = vtanh.f32 %v3172_v6  ;;  %v5394_v37 = vld [vmem:[%s5604_s27 + $0x88] sm:$0xff] }
 0x243   : > { %v2333_v8 = vpack.c.bf16 %v2157_v34, %v2157_v34 }
 0x244   : > { %v1032_v60 = vpop.f32.mrf.mxu2 }
 0x245   : > { %v1395_v10 = vmin.f32 %v1032_v60, 0.0  ;;  %v2741_v12 = vpop.f32.mrf.mxu3  ;;  %v3501_v3 = vunpack.c.l.b16 %v2333_v8  ;;  %vm1203_vm12 = vcmp.gt.f32.partialorder %v1032_v60, 0.0  ;;  %v5395_v8 = vld [vmem:[%s5604_s27 + $0x90] sm:$0xff] }
 0x246   : > { %v4963_v0 = vpop.eup %4962  ;;  %v2742_v11 = vadd.f32 %v6832_v45, %v2741_v12  ;;  %v3174_v46 = vpop.f32.mrf.mxu0 }
 0x247   : > { %v4965_v1 = vpop.eup %4964  ;;  %v2938_v50 = vadd.f32 %v4963_v0, %v2937_v52  ;;  %v1640_v36 = vmul.f32 1.442695, %v1395_v10  ;;  %v3175_v49 = vadd.f32 %v6832_v45, %v3174_v46  ;;  %v3557_v29 = vpack.c.b16 %v3501_v3, %v3500_v41 }
 0x248   : > { %v4967_v56 = vpop.eup %4966  ;;  %4968 = vtanh.f32 %v2742_v11  ;;  %v4338_v59 = vadd.f32 -1.0, %v4965_v1 }
 0x249   : > { %v3369_v55 = vadd.f32 %v4967_v56, %v3368_v20  ;;  %4970 = vpow2.f32 %v1640_v36  ;;  %4273 = vmatmul.msk.bf16.gmra.mxu2 %vm546_vm1, %v5394_v37  ;;  %3213 = vmatmul.bf16.gmra.mxu0 %v5713_v62 }
 0x24a   : > { %4972 = vtanh.f32 %v3175_v49  ;;  %2783 = vmatmul.bf16.gmra.mxu3 %v5711_v61  ;;  %3657 = vmatmul.bf16.gmra.mxu1 %v3557_v29  ;;  %v2160_v9 = vsel %vm1200_vm11, %v1030_v24, %v4338_v59 }
 0x24b   : > { %v2335_v2 = vpack.c.bf16 %v2160_v9, %v2160_v9 }
 0x24c   : > { %v1035_v48 = vpop.f32.mrf.mxu2 }
 0x24d   : > { %v1398_v7 = vmin.f32 %v1035_v48, 0.0  ;;  %v2744_v14 = vpop.f32.mrf.mxu3  ;;  %v3502_v24 = vunpack.c.l.b16 %v2335_v2  ;;  %vm1206_vm13 = vcmp.gt.f32.partialorder %v1035_v48, 0.0 }
 0x24e   : > { %v4969_v63 = vpop.eup %4968  ;;  %v2745_v19 = vadd.f32 %v6832_v45, %v2744_v14  ;;  %v3176_v4 = vpop.f32.mrf.mxu0 }
 0x24f   : > { %v4971_v27 = vpop.eup %4970  ;;  %v2939_v13 = vadd.f32 %v4969_v63, %v2938_v50  ;;  %v1646_v15 = vmul.f32 1.442695, %v1398_v7  ;;  %v3177_v47 = vadd.f32 %v6832_v45, %v3176_v4 }
 0x250   : > { %v4973_v62 = vpop.eup %4972  ;;  %v4341_v44 = vadd.f32 -1.0, %v4971_v27  ;;  %4974 = vtanh.f32 %v2745_v19 }
 0x251   : > { %v3370_v61 = vadd.f32 %v4973_v62, %v3369_v55  ;;  %4976 = vpow2.f32 %v1646_v15 }
 0x252   : > { %v2163_v54 = vsel %vm1203_vm12, %v1032_v60, %v4341_v44  ;;  %4978 = vtanh.f32 %v3177_v47 }
 0x253   : > { %v2337_v43 = vpack.c.bf16 %v2163_v54, %v2163_v54 }
 0x254   : > { %v1037_v31 = vpop.f32.mrf.mxu2 }
 0x255   : > { %v1401_v42 = vmin.f32 %v1037_v31, 0.0  ;;  %v2746_v32 = vpop.f32.mrf.mxu3  ;;  %v3503_v17 = vunpack.c.l.b16 %v2337_v43  ;;  %vm1209_vm14 = vcmp.gt.f32.partialorder %v1037_v31, 0.0 }
 0x256   : > { %v4975_v5 = vpop.eup %4974  ;;  %v2747_v22 = vadd.f32 %v6832_v45, %v2746_v32  ;;  %v3179_v18 = vpop.f32.mrf.mxu0 }
 0x257   : > { %v4977_v52 = vpop.eup %4976  ;;  %v2940_v28 = vadd.f32 %v4975_v5, %v2939_v13  ;;  %v1652_v6 = vmul.f32 1.442695, %v1401_v42  ;;  %v3180_v21 = vadd.f32 %v6832_v45, %v3179_v18  ;;  %v3623_v51 = vpop.f32.mrf.mxu1  ;;  %v3558_v57 = vpack.c.b16 %v3503_v17, %v3502_v24  ;;  %v5396_v17 = vld [vmem:[%s5604_s27 + $0x98] sm:$0xff] }
 0x258   : > { %v4979_v20 = vpop.eup %4978  ;;  %4980 = vtanh.f32 %v2747_v22  ;;  %v4344_v60 = vadd.f32 -1.0, %v4977_v52  ;;  %v3624_v41 = vadd.f32 %v6832_v45, %v3623_v51 }
 0x259   : > { %v3371_v34 = vadd.f32 %v4979_v20, %v3370_v61  ;;  %4982 = vpow2.f32 %v1652_v6  ;;  %4274 = vmatmul.msk.bf16.gmra.mxu2 %vm546_vm1, %v5395_v8  ;;  %3218 = vmatmul.bf16.gmra.mxu0 %v5728_v40 }
 0x25a   : > { %4984 = vtanh.f32 %v3180_v21  ;;  %2788 = vmatmul.bf16.gmra.mxu3 %v5726_v39  ;;  %3662 = vmatmul.bf16.gmra.mxu1 %v3558_v57  ;;  %v2166_v11 = vsel %vm1206_vm13, %v1035_v48, %v4344_v60 }
 0x25b   : > { %4986 = vtanh.f32 %v3624_v41  ;;  %v2339_v37 = vpack.c.bf16 %v2166_v11, %v2166_v11 }
 0x25c   : > { %v1040_v10 = vpop.f32.mrf.mxu2 }
 0x25d   : > { %v1404_v12 = vmin.f32 %v1040_v10, 0.0  ;;  %v2749_v3 = vpop.f32.mrf.mxu3  ;;  %v3504_v9 = vunpack.c.l.b16 %v2339_v37  ;;  %vm1212_vm15 = vcmp.gt.f32.partialorder %v1040_v10, 0.0 }
 0x25e   : > { %v4981_v0 = vpop.eup %4980  ;;  %v2750_v46 = vadd.f32 %v6832_v45, %v2749_v3  ;;  %v3181_v1 = vpop.f32.mrf.mxu0 }
 0x25f   : > { %v4983_v50 = vpop.eup %4982  ;;  %v2941_v36 = vadd.f32 %v4981_v0, %v2940_v28  ;;  %v1658_v40 = vmul.f32 1.442695, %v1404_v12  ;;  %v3182_v49 = vadd.f32 %v6832_v45, %v3181_v1  ;;  %v3625_v29 = vpop.f32.mrf.mxu1 }
 0x260   : > { %v4985_v39 = vpop.eup %4984  ;;  %v4347_v56 = vadd.f32 -1.0, %v4983_v50  ;;  %4988 = vtanh.f32 %v2750_v46  ;;  %v3626_v55 = vadd.f32 %v6832_v45, %v3625_v29 }
 0x261   : > { %v3372_v59 = vadd.f32 %v4985_v39, %v3371_v34  ;;  %4990 = vpow2.f32 %v1658_v40  ;;  %v4987_v63 = vpop.eup %4986 }
 0x262   : > { %v2169_v48 = vsel %vm1209_vm14, %v1037_v31, %v4347_v56  ;;  %4992 = vtanh.f32 %v3182_v49 }
 0x263   : > { %v2341_v7 = vpack.c.bf16 %v2169_v48, %v2169_v48  ;;  %4994 = vtanh.f32 %v3626_v55 }
 0x264   : > { %v1042_v14 = vpop.f32.mrf.mxu2 }
 0x265   : > { %v1407_v19 = vmin.f32 %v1042_v14, 0.0  ;;  %v2751_v4 = vpop.f32.mrf.mxu3  ;;  %v3505_v27 = vunpack.c.l.b16 %v2341_v7  ;;  %vm1215_vm0 = vcmp.gt.f32.partialorder %v1042_v14, 0.0 }
 0x266   : > { %v4989_v13 = vpop.eup %4988  ;;  %v2752_v15 = vadd.f32 %v6832_v45, %v2751_v4  ;;  %v3184_v47 = vpop.f32.mrf.mxu0 }
 0x267   : > { %v4991_v62 = vpop.eup %4990  ;;  %v2942_v44 = vadd.f32 %v4989_v13, %v2941_v36  ;;  %v1664_v2 = vmul.f32 1.442695, %v1407_v19  ;;  %v3185_v61 = vadd.f32 %v6832_v45, %v3184_v47  ;;  %v3628_v54 = vpop.f32.mrf.mxu1  ;;  %v3559_v43 = vpack.c.b16 %v3505_v27, %v3504_v9  ;;  %v5397_v13 = vld [vmem:[%s5604_s27 + $0xa0] sm:$0xff] }
 0x268   : > { %v4993_v31 = vpop.eup %4992  ;;  %4996 = vtanh.f32 %v2752_v15  ;;  %v3629_v24 = vadd.f32 %v6832_v45, %v3628_v54  ;;  %v4350_v5 = vadd.f32 -1.0, %v4991_v62  ;;  %v7218_v62 = vld [vmem:[#allocation10_spill] sm:$0xff] }
 0x269   : > { %v4995_v42 = vpop.eup %4994  ;;  %v3373_v32 = vadd.f32 %v4993_v31, %v3372_v59  ;;  %4998 = vpow2.f32 %v1664_v2  ;;  %4275 = vmatmul.msk.bf16.gmra.mxu2 %vm546_vm1, %v5396_v17  ;;  %3223 = vmatmul.bf16.gmra.mxu0 %v5765_v35 }
 0x26a   : > { %v3847_v22 = vadd.f32 %v4995_v42, %v4987_v63  ;;  %5000 = vtanh.f32 %v3185_v61  ;;  %2793 = vmatmul.bf16.gmra.mxu3 %v5763_v33  ;;  %3667 = vmatmul.bf16.gmra.mxu1 %v3559_v43  ;;  %v2172_v21 = vsel %vm1212_vm15, %v1040_v10, %v4350_v5 }
 0x26b   : > { %5002 = vtanh.f32 %v3629_v24  ;;  %v2343_v0 = vpack.c.bf16 %v2172_v21, %v2172_v21 }
 0x26c   : > { %v1045_v18 = vpop.f32.mrf.mxu2 }
 0x26d   : > { %v1410_v52 = vmin.f32 %v1045_v18, 0.0  ;;  %v2754_v28 = vpop.f32.mrf.mxu3  ;;  %v3506_v36 = vunpack.c.l.b16 %v2343_v0  ;;  %vm1218_vm2 = vcmp.gt.f32.partialorder %v1045_v18, 0.0 }
 0x26e   : > { %v4997_v6 = vpop.eup %4996  ;;  %v2755_v51 = vadd.f32 %v6832_v45, %v2754_v28  ;;  %v3186_v57 = vpop.f32.mrf.mxu0 }
 0x26f   : > { %v4999_v20 = vpop.eup %4998  ;;  %v2943_v34 = vadd.f32 %v4997_v6, %v2942_v44  ;;  %v1670_v8 = vmul.f32 1.442695, %v1410_v52  ;;  %v3187_v35 = vadd.f32 %v6832_v45, %v3186_v57  ;;  %v3630_v60 = vpop.f32.mrf.mxu1 }
 0x270   : > { %v5001_v41 = vpop.eup %5000  ;;  %v4353_v12 = vadd.f32 -1.0, %v4999_v20  ;;  %5004 = vtanh.f32 %v2755_v51  ;;  %v3631_v33 = vadd.f32 %v6832_v45, %v3630_v60 }
 0x271   : > { %v5003_v3 = vpop.eup %5002  ;;  %v3374_v11 = vadd.f32 %v5001_v41, %v3373_v32  ;;  %5006 = vpow2.f32 %v1670_v8 }
 0x272   : > { %v2175_v10 = vsel %vm1215_vm0, %v1042_v14, %v4353_v12  ;;  %v3848_v46 = vadd.f32 %v5003_v3, %v3847_v22  ;;  %5008 = vtanh.f32 %v3187_v35 }
 0x273   : > { %v2345_v1 = vpack.c.bf16 %v2175_v10, %v2175_v10  ;;  %5010 = vtanh.f32 %v3631_v33 }
 0x274   : > { %v1047_v50 = vpop.f32.mrf.mxu2 }
 0x275   : > { %v1413_v40 = vmin.f32 %v1047_v50, 0.0  ;;  %v2756_v49 = vpop.f32.mrf.mxu3  ;;  %v3507_v29 = vunpack.c.l.b16 %v2345_v1  ;;  %vm1221_vm3 = vcmp.gt.f32.partialorder %v1047_v50, 0.0 }
 0x276   : > { %v5005_v39 = vpop.eup %5004  ;;  %v2757_v56 = vadd.f32 %v6832_v45, %v2756_v49  ;;  %v3189_v55 = vpop.f32.mrf.mxu0 }
 0x277   : > { %v5007_v37 = vpop.eup %5006  ;;  %v2944_v59 = vadd.f32 %v5005_v39, %v2943_v34  ;;  %v1676_v48 = vmul.f32 1.442695, %v1413_v40  ;;  %v3190_v7 = vadd.f32 %v6832_v45, %v3189_v55  ;;  %v3633_v14 = vpop.f32.mrf.mxu1  ;;  %v3560_v63 = vpack.c.b16 %v3507_v29, %v3506_v36  ;;  %v5398_v39 = vld [vmem:[%s5604_s27 + $0xa8] sm:$0xff] }
 0x278   : > { %v5009_v9 = vpop.eup %5008  ;;  %5012 = vtanh.f32 %v2757_v56  ;;  %v3634_v19 = vadd.f32 %v6832_v45, %v3633_v14  ;;  %v4356_v15 = vadd.f32 -1.0, %v5007_v37  ;;  %v7219_v56 = vld [vmem:[#allocation12_spill] sm:$0xff] }
 0x279   : > { %v5011_v4 = vpop.eup %5010  ;;  %v3375_v27 = vadd.f32 %v5009_v9, %v3374_v11  ;;  %5014 = vpow2.f32 %v1676_v48  ;;  %4276 = vmatmul.msk.bf16.gmra.mxu2 %vm546_vm1, %v5397_v13  ;;  %3228 = vmatmul.bf16.gmra.mxu0 %v5847_v38 }
 0x27a   : > { %v3849_v47 = vadd.f32 %v5011_v4, %v3848_v46  ;;  %5016 = vtanh.f32 %v3190_v7  ;;  %2798 = vmatmul.bf16.gmra.mxu3 %v7218_v62  ;;  %3672 = vmatmul.bf16.gmra.mxu1 %v3560_v63  ;;  %v2178_v43 = vsel %vm1218_vm2, %v1045_v18, %v4356_v15 }
 0x27b   : > { %5018 = vtanh.f32 %v3634_v19  ;;  %v2347_v21 = vpack.c.bf16 %v2178_v43, %v2178_v43 }
 0x27c   : > { %v1050_v44 = vpop.f32.mrf.mxu2 }
 0x27d   : > { %v1416_v2 = vmin.f32 %v1050_v44, 0.0  ;;  %v2759_v61 = vpop.f32.mrf.mxu3  ;;  %v3508_v8 = vunpack.c.l.b16 %v2347_v21  ;;  %vm1224_vm4 = vcmp.gt.f32.partialorder %v1050_v44, 0.0 }
 0x27e   : > { %v5013_v54 = vpop.eup %5012  ;;  %v2760_v31 = vadd.f32 %v6832_v45, %v2759_v61  ;;  %v3191_v24 = vpop.f32.mrf.mxu0 }
 0x27f   : > { %v5015_v42 = vpop.eup %5014  ;;  %v2945_v32 = vadd.f32 %v5013_v54, %v2944_v59  ;;  %v1682_v17 = vmul.f32 1.442695, %v1416_v2  ;;  %v3192_v38 = vadd.f32 %v6832_v45, %v3191_v24  ;;  %v3635_v5 = vpop.f32.mrf.mxu1  ;;  %v7220_v59 = vld [vmem:[#allocation11_spill] sm:$0xff] }
 0x280   : > { %v5017_v22 = vpop.eup %5016  ;;  %v4359_v52 = vadd.f32 -1.0, %v5015_v42  ;;  %5020 = vtanh.f32 %v2760_v31  ;;  %v3636_v28 = vadd.f32 %v6832_v45, %v3635_v5 }
 0x281   : > { %v5019_v6 = vpop.eup %5018  ;;  %v3376_v51 = vadd.f32 %v5017_v22, %v3375_v27  ;;  %5022 = vpow2.f32 %v1682_v17 }
 0x282   : > { %v2181_v18 = vsel %vm1221_vm3, %v1047_v50, %v4359_v52  ;;  %v3850_v57 = vadd.f32 %v5019_v6, %v3849_v47  ;;  %5024 = vtanh.f32 %v3192_v38 }
 0x283   : > { %v2349_v20 = vpack.c.bf16 %v2181_v18, %v2181_v18  ;;  %5026 = vtanh.f32 %v3636_v28 }
 0x284   : > { %v1052_v34 = vpop.f32.mrf.mxu2 }
 0x285   : > { %v1419_v35 = vmin.f32 %v1052_v34, 0.0  ;;  %v2761_v60 = vpop.f32.mrf.mxu3  ;;  %v3509_v41 = vunpack.c.l.b16 %v2349_v20  ;;  %vm1227_vm5 = vcmp.gt.f32.partialorder %v1052_v34, 0.0 }
 0x286   : > { %v5021_v12 = vpop.eup %5020  ;;  %v2762_v33 = vadd.f32 %v6832_v45, %v2761_v60  ;;  %v3194_v3 = vpop.f32.mrf.mxu0 }
 0x287   : > { %v5023_v0 = vpop.eup %5022  ;;  %v2946_v11 = vadd.f32 %v5021_v12, %v2945_v32  ;;  %v1688_v10 = vmul.f32 1.442695, %v1419_v35  ;;  %v3195_v46 = vadd.f32 %v6832_v45, %v3194_v3  ;;  %v3638_v1 = vpop.f32.mrf.mxu1  ;;  %v3561_v50 = vpack.c.b16 %v3509_v41, %v3508_v8  ;;  %v7221_v3 = vld [vmem:[#allocation14_spill] sm:$0xff] }
 0x288   : > { %v5025_v36 = vpop.eup %5024  ;;  %5028 = vtanh.f32 %v2762_v33  ;;  %v3639_v40 = vadd.f32 %v6832_v45, %v3638_v1  ;;  %v4362_v55 = vadd.f32 -1.0, %v5023_v0  ;;  %v5399_v33 = vld [vmem:[%s5604_s27 + $0xb0] sm:$0xff] }
 0x289   : > { %v5027_v49 = vpop.eup %5026  ;;  %v3377_v29 = vadd.f32 %v5025_v36, %v3376_v51  ;;  %5030 = vpow2.f32 %v1688_v10  ;;  %4277 = vmatmul.msk.bf16.gmra.mxu2 %vm546_vm1, %v5398_v39  ;;  %3233 = vmatmul.bf16.gmra.mxu0 %v7219_v56  ;;  %v7222_v10 = vld [vmem:[#allocation13_spill] sm:$0xff] }
 0x28a   : > { %v3851_v37 = vadd.f32 %v5027_v49, %v3850_v57  ;;  %5032 = vtanh.f32 %v3195_v46  ;;  %2803 = vmatmul.bf16.gmra.mxu3 %v7220_v59  ;;  %3677 = vmatmul.bf16.gmra.mxu1 %v3561_v50  ;;  %v2184_v9 = vsel %vm1224_vm4, %v1050_v44, %v4362_v55 }
 0x28b   : > { %5034 = vtanh.f32 %v3639_v40  ;;  %v2351_v31 = vpack.c.bf16 %v2184_v9, %v2184_v9 }
 0x28c   : > { %v1055_v48 = vpop.f32.mrf.mxu2 }
 0x28d   : > { %v1422_v7 = vmin.f32 %v1055_v48, 0.0  ;;  %v2764_v14 = vpop.f32.mrf.mxu3  ;;  %v3510_v38 = vunpack.c.l.b16 %v2351_v31  ;;  %vm1230_vm6 = vcmp.gt.f32.partialorder %v1055_v48, 0.0 }
 0x28e   : > { %v5029_v63 = vpop.eup %5028  ;;  %v2765_v19 = vadd.f32 %v6832_v45, %v2764_v14  ;;  %v3196_v4 = vpop.f32.mrf.mxu0 }
 0x28f   : > { %v5031_v27 = vpop.eup %5030  ;;  %v2947_v13 = vadd.f32 %v5029_v63, %v2946_v11  ;;  %v1694_v15 = vmul.f32 1.442695, %v1422_v7  ;;  %v3197_v47 = vadd.f32 %v6832_v45, %v3196_v4  ;;  %v3640_v62 = vpop.f32.mrf.mxu1 }
 0x290   : > { %v5033_v2 = vpop.eup %5032  ;;  %v4365_v61 = vadd.f32 -1.0, %v5031_v27  ;;  %5036 = vtanh.f32 %v2765_v19  ;;  %v3641_v54 = vadd.f32 %v6832_v45, %v3640_v62 }
 0x291   : > { %v5035_v43 = vpop.eup %5034  ;;  %v3378_v24 = vadd.f32 %v5033_v2, %v3377_v29  ;;  %5038 = vpow2.f32 %v1694_v15 }
 0x292   : > { %v2187_v44 = vsel %vm1227_vm5, %v1052_v34, %v4365_v61  ;;  %v3852_v42 = vadd.f32 %v5035_v43, %v3851_v37  ;;  %5040 = vtanh.f32 %v3197_v47 }
 0x293   : > { %v2353_v32 = vpack.c.bf16 %v2187_v44, %v2187_v44  ;;  %5042 = vtanh.f32 %v3641_v54 }
 0x294   : > { %v1057_v17 = vpop.f32.mrf.mxu2 }
 0x295   : > { %v1425_v5 = vmin.f32 %v1057_v17, 0.0  ;;  %v2766_v22 = vpop.f32.mrf.mxu3  ;;  %v3511_v52 = vunpack.c.l.b16 %v2353_v32  ;;  %vm1233_vm7 = vcmp.gt.f32.partialorder %v1057_v17, 0.0 }
 0x296   : > { %v5037_v28 = vpop.eup %5036  ;;  %v2767_v6 = vadd.f32 %v6832_v45, %v2766_v22  ;;  %v3199_v21 = vpop.f32.mrf.mxu0 }
 0x297   : > { %v5039_v51 = vpop.eup %5038  ;;  %v2948_v18 = vadd.f32 %v5037_v28, %v2947_v13  ;;  %v1700_v57 = vmul.f32 1.442695, %v1425_v5  ;;  %v3200_v20 = vadd.f32 %v6832_v45, %v3199_v21  ;;  %v3643_v34 = vpop.f32.mrf.mxu1  ;;  %v3562_v8 = vpack.c.b16 %v3511_v52, %v3510_v38  ;;  %v7223_v21 = vld [vmem:[#allocation16_spill] sm:$0xff] }
 0x298   : > { %v5041_v35 = vpop.eup %5040  ;;  %5044 = vtanh.f32 %v2767_v6  ;;  %v3644_v60 = vadd.f32 %v6832_v45, %v3643_v34  ;;  %v4368_v0 = vadd.f32 -1.0, %v5039_v51  ;;  %v5400_v6 = vld [vmem:[%s5604_s27 + $0xb8] sm:$0xff] }
 0x299   : > { %v5043_v41 = vpop.eup %5042  ;;  %v3379_v12 = vadd.f32 %v5041_v35, %v3378_v24  ;;  %5046 = vpow2.f32 %v1700_v57  ;;  %4278 = vmatmul.msk.bf16.gmra.mxu2 %vm546_vm1, %v5399_v33  ;;  %3238 = vmatmul.bf16.gmra.mxu0 %v7221_v3  ;;  %v7224_v57 = vld [vmem:[#allocation15_spill] sm:$0xff] }
 0x29a   : > { %v3853_v11 = vadd.f32 %v5043_v41, %v3852_v42  ;;  %5048 = vtanh.f32 %v3200_v20  ;;  %2808 = vmatmul.bf16.gmra.mxu3 %v7222_v10  ;;  %3682 = vmatmul.bf16.gmra.mxu1 %v3562_v8  ;;  %v2190_v40 = vsel %vm1230_vm6, %v1055_v48, %v4368_v0 }
 0x29b   : > { %5050 = vtanh.f32 %v3644_v60  ;;  %v2355_v19 = vpack.c.bf16 %v2190_v40, %v2190_v40 }
 0x29c   : > { %v1060_v46 = vpop.f32.mrf.mxu2 }
 0x29d   : > { %v1428_v1 = vmin.f32 %v1060_v46, 0.0  ;;  %v2769_v50 = vpop.f32.mrf.mxu3  ;;  %v3512_v47 = vunpack.c.l.b16 %v2355_v19  ;;  %vm1236_vm8 = vcmp.gt.f32.partialorder %v1060_v46, 0.0 }
 0x29e   : > { %v5045_v36 = vpop.eup %5044  ;;  %v2770_v49 = vadd.f32 %v6832_v45, %v2769_v50  ;;  %v3201_v29 = vpop.f32.mrf.mxu0 }
 0x29f   : > { %v5047_v39 = vpop.eup %5046  ;;  %v2949_v56 = vadd.f32 %v5045_v36, %v2948_v18  ;;  %v1706_v55 = vmul.f32 1.442695, %v1428_v1  ;;  %v3202_v37 = vadd.f32 %v6832_v45, %v3201_v29  ;;  %v3645_v59 = vpop.f32.mrf.mxu1 }
 0x2a0   : > { %v5049_v7 = vpop.eup %5048  ;;  %v4371_v14 = vadd.f32 -1.0, %v5047_v39  ;;  %5052 = vtanh.f32 %v2770_v49  ;;  %v3646_v63 = vadd.f32 %v6832_v45, %v3645_v59 }
 0x2a1   : > { %v5051_v9 = vpop.eup %5050  ;;  %v3380_v4 = vadd.f32 %v5049_v7, %v3379_v12  ;;  %5054 = vpow2.f32 %v1706_v55 }
 0x2a2   : > { %v2193_v48 = vsel %vm1233_vm7, %v1057_v17, %v4371_v14  ;;  %v3854_v27 = vadd.f32 %v5051_v9, %v3853_v11  ;;  %5056 = vtanh.f32 %v3202_v37 }
 0x2a3   : > { %v2357_v13 = vpack.c.bf16 %v2193_v48, %v2193_v48  ;;  %5058 = vtanh.f32 %v3646_v63 }
 0x2a4   : > { %v1062_v15 = vpop.f32.mrf.mxu2 }
 0x2a5   : > { %v1431_v62 = vmin.f32 %v1062_v15, 0.0  ;;  %v2771_v2 = vpop.f32.mrf.mxu3  ;;  %v3513_v61 = vunpack.c.l.b16 %v2357_v13  ;;  %vm1239_vm9 = vcmp.gt.f32.partialorder %v1062_v15, 0.0 }
 0x2a6   : > { %v5053_v54 = vpop.eup %5052  ;;  %v2772_v43 = vadd.f32 %v6832_v45, %v2771_v2  ;;  %v3204_v31 = vpop.f32.mrf.mxu0 }
 0x2a7   : > { %v5055_v24 = vpop.eup %5054  ;;  %v2950_v44 = vadd.f32 %v5053_v54, %v2949_v56  ;;  %v1712_v42 = vmul.f32 1.442695, %v1431_v62  ;;  %v3205_v32 = vadd.f32 %v6832_v45, %v3204_v31  ;;  %v3648_v17 = vpop.f32.mrf.mxu1  ;;  %v3563_v38 = vpack.c.b16 %v3513_v61, %v3512_v47  ;;  %v7225_v31 = vld [vmem:[#allocation18_spill] sm:$0xff] }
 0x2a8   : > { %v5057_v5 = vpop.eup %5056  ;;  %5060 = vtanh.f32 %v2772_v43  ;;  %v3649_v22 = vadd.f32 %v6832_v45, %v3648_v17  ;;  %v4374_v51 = vadd.f32 -1.0, %v5055_v24  ;;  %v5401_v43 = vld [vmem:[%s5604_s27 + $0xc0] sm:$0xff] }
 0x2a9   : > { %v5059_v52 = vpop.eup %5058  ;;  %v3381_v28 = vadd.f32 %v5057_v5, %v3380_v4  ;;  %5062 = vpow2.f32 %v1712_v42  ;;  %4279 = vmatmul.msk.bf16.gmra.mxu2 %vm546_vm1, %v5400_v6  ;;  %3243 = vmatmul.bf16.gmra.mxu0 %v7223_v21  ;;  %v7226_v42 = vld [vmem:[#allocation17_spill] sm:$0xff] }
 0x2aa   : > { %v3855_v18 = vadd.f32 %v5059_v52, %v3854_v27  ;;  %5064 = vtanh.f32 %v3205_v32  ;;  %2813 = vmatmul.bf16.gmra.mxu3 %v7224_v57  ;;  %3687 = vmatmul.bf16.gmra.mxu1 %v3563_v38  ;;  %v2196_v60 = vsel %vm1236_vm8, %v1060_v46, %v4374_v51 }
 0x2ab   : > { %5066 = vtanh.f32 %v3649_v22  ;;  %v2359_v49 = vpack.c.bf16 %v2196_v60, %v2196_v60  ;;  %v6929_v22 = vld [vmem:[%s5617_s26] ss:$0 sm:$0xff] }
 0x2ac   : > { %v1065_v20 = vpop.f32.mrf.mxu2 }
 0x2ad   : > { %v1434_v34 = vmin.f32 %v1065_v20, 0.0  ;;  %v2774_v8 = vpop.f32.mrf.mxu3  ;;  %v3514_v37 = vunpack.c.l.b16 %v2359_v49  ;;  %vm1242_vm10 = vcmp.gt.f32.partialorder %v1065_v20, 0.0 }
 0x2ae   : > { %v5061_v35 = vpop.eup %5060  ;;  %v2775_v41 = vadd.f32 %v6832_v45, %v2774_v8  ;;  %v3206_v12 = vpop.f32.mrf.mxu0 }
 0x2af   : > { %v5063_v33 = vpop.eup %5062  ;;  %v2951_v3 = vadd.f32 %v5061_v35, %v2950_v44  ;;  %v1718_v0 = vmul.f32 1.442695, %v1434_v34  ;;  %v3207_v11 = vadd.f32 %v6832_v45, %v3206_v12  ;;  %v3650_v10 = vpop.f32.mrf.mxu1 }
 0x2b0   : > { %v5065_v1 = vpop.eup %5064  ;;  %v4377_v50 = vadd.f32 -1.0, %v5063_v33  ;;  %5068 = vtanh.f32 %v2775_v41  ;;  %v3651_v36 = vadd.f32 %v6832_v45, %v3650_v10 }
 0x2b1   : > { %v5067_v40 = vpop.eup %5066  ;;  %v3382_v29 = vadd.f32 %v5065_v1, %v3381_v28  ;;  %5070 = vpow2.f32 %v1718_v0 }
 0x2b2   : > { %v2199_v46 = vsel %vm1239_vm9, %v1062_v15, %v4377_v50  ;;  %v3856_v39 = vadd.f32 %v5067_v40, %v3855_v18  ;;  %5072 = vtanh.f32 %v3207_v11 }
 0x2b3   : > { %v2361_v56 = vpack.c.bf16 %v2199_v46, %v2199_v46  ;;  %5074 = vtanh.f32 %v3651_v36 }
 0x2b4   : > { %v1067_v55 = vpop.f32.mrf.mxu2 }
 0x2b5   : > { %v1437_v59 = vmin.f32 %v1067_v55, 0.0  ;;  %v2776_v7 = vpop.f32.mrf.mxu3  ;;  %v3515_v14 = vunpack.c.l.b16 %v2361_v56  ;;  %vm1245_vm11 = vcmp.gt.f32.partialorder %v1067_v55, 0.0 }
 0x2b6   : > { %v5069_v63 = vpop.eup %5068  ;;  %v2777_v9 = vadd.f32 %v6832_v45, %v2776_v7  ;;  %v3209_v19 = vpop.f32.mrf.mxu0 }
 0x2b7   : > { %v5071_v4 = vpop.eup %5070  ;;  %v2952_v48 = vadd.f32 %v5069_v63, %v2951_v3  ;;  %v1724_v27 = vmul.f32 1.442695, %v1437_v59  ;;  %v3210_v13 = vadd.f32 %v6832_v45, %v3209_v19  ;;  %v3653_v15 = vpop.f32.mrf.mxu1  ;;  %v3564_v47 = vpack.c.b16 %v3515_v14, %v3514_v37 }
 0x2b8   : > { %v5073_v62 = vpop.eup %5072  ;;  %5076 = vtanh.f32 %v2777_v9  ;;  %v3654_v2 = vadd.f32 %v6832_v45, %v3653_v15  ;;  %v4380_v24 = vadd.f32 -1.0, %v5071_v4  ;;  %v5403_v9 = vld [vmem:[%s5604_s27 + $0xc8] sm:$0xff] }
 0x2b9   : > { %v5075_v61 = vpop.eup %5074  ;;  %v3383_v54 = vadd.f32 %v5073_v62, %v3382_v29  ;;  %5078 = vpow2.f32 %v1724_v27  ;;  %4280 = vmatmul.msk.bf16.gmra.mxu2 %vm546_vm1, %v5401_v43  ;;  %3248 = vmatmul.bf16.gmra.mxu0 %v7225_v31 }
 0x2ba   : > { %v3857_v44 = vadd.f32 %v5075_v61, %v3856_v39  ;;  %5080 = vtanh.f32 %v3210_v13  ;;  %2818 = vmatmul.bf16.gmra.mxu3 %v7226_v42  ;;  %3692 = vmatmul.bf16.gmra.mxu1 %v3564_v47  ;;  %v2202_v5 = vsel %vm1242_vm10, %v1065_v20, %v4380_v24 }
 0x2bb   : > { %5082 = vtanh.f32 %v3654_v2  ;;  %v2363_v41 = vpack.c.bf16 %v2202_v5, %v2202_v5 }
 0x2bc   : > { %v6925_v32 = vpop.f32.mrf.mxu2 }
 0x2bd   : > { %v1440_v45 = vmin.f32 %v6925_v32, 0.0  ;;  %v2779_v17 = vpop.f32.mrf.mxu3  ;;  %v3516_v11 = vunpack.c.l.b16 %v2363_v41  ;;  %vm1248_vm12 = vcmp.gt.f32.partialorder %v6925_v32, 0.0 }
 0x2be   : > { %v5077_v38 = vpop.eup %5076  ;;  %v2780_v52 = vadd.f32 %v6929_v22, %v2779_v17  ;;  %v3211_v28 = vpop.f32.mrf.mxu0 }
 0x2bf   : > { %v5079_v6 = vpop.eup %5078  ;;  %v2953_v21 = vadd.f32 %v5077_v38, %v2952_v48  ;;  %v1730_v51 = vmul.f32 1.442695, %v1440_v45  ;;  %v3212_v18 = vadd.f32 %v6929_v22, %v3211_v28  ;;  %v3655_v57 = vpop.f32.mrf.mxu1  ;;  %v7227_v48 = vld [vmem:[#allocation19_spill] sm:$0xff] }
 0x2c0   : > { %v5081_v34 = vpop.eup %5080  ;;  %v4383_v8 = vadd.f32 -1.0, %v5079_v6  ;;  %5084 = vtanh.f32 %v2780_v52  ;;  %v3656_v35 = vadd.f32 %v6929_v22, %v3655_v57 }
 0x2c1   : > { %v5083_v60 = vpop.eup %5082  ;;  %v3384_v20 = vadd.f32 %v5081_v34, %v3383_v54  ;;  %5086 = vpow2.f32 %v1730_v51 }
 0x2c2   : > { %v2205_v12 = vsel %vm1245_vm11, %v1067_v55, %v4383_v8  ;;  %v3858_v33 = vadd.f32 %v5083_v60, %v3857_v44  ;;  %5088 = vtanh.f32 %v3212_v18 }
 0x2c3   : > { %v2365_v3 = vpack.c.bf16 %v2205_v12, %v2205_v12  ;;  %5090 = vtanh.f32 %v3656_v35 }
 0x2c4   : > { %v1072_v0 = vpop.f32.mrf.mxu2 }
 0x2c5   : > { %v1443_v10 = vmin.f32 %v1072_v0, 0.0  ;;  %v2781_v1 = vpop.f32.mrf.mxu3  ;;  %v3517_v50 = vunpack.c.l.b16 %v2365_v3  ;;  %vm1251_vm13 = vcmp.gt.f32.partialorder %v1072_v0, 0.0 }
 0x2c6   : > { %v5085_v36 = vpop.eup %5084  ;;  %v2782_v40 = vadd.f32 %v6929_v22, %v2781_v1  ;;  %v3214_v49 = vpop.f32.mrf.mxu0 }
 0x2c7   : > { %v5087_v29 = vpop.eup %5086  ;;  %v2954_v46 = vadd.f32 %v5085_v36, %v2953_v21  ;;  %v1736_v39 = vmul.f32 1.442695, %v1443_v10  ;;  %v3215_v56 = vadd.f32 %v6929_v22, %v3214_v49  ;;  %v3658_v55 = vpop.f32.mrf.mxu1  ;;  %v3565_v37 = vpack.c.b16 %v3517_v50, %v3516_v11  ;;  %v5404_v50 = vld [vmem:[%s5604_s27 + $0xd0] sm:$0xff]  ;;  %v7228_v36 = vld [vmem:[#allocation21_spill] sm:$0xff] }
 0x2c8   : > { %v5089_v59 = vpop.eup %5088  ;;  %5092 = vtanh.f32 %v2782_v40  ;;  %v3659_v7 = vadd.f32 %v6929_v22, %v3658_v55  ;;  %v4386_v19 = vadd.f32 -1.0, %v5087_v29  ;;  %v7229_v29 = vld [vmem:[#allocation20_spill] sm:$0xff] }
 0x2c9   : > { %v5091_v14 = vpop.eup %5090  ;;  %v3385_v63 = vadd.f32 %v5089_v59, %v3384_v20  ;;  %5094 = vpow2.f32 %v1736_v39  ;;  %4281 = vmatmul.msk.bf16.gmra.mxu2 %vm546_vm1, %v5403_v9  ;;  %3253 = vmatmul.bf16.gmra.mxu0 %v6302_v30 }
 0x2ca   : > { %v3859_v4 = vadd.f32 %v5091_v14, %v3858_v33  ;;  %5096 = vtanh.f32 %v3215_v56  ;;  %2823 = vmatmul.bf16.gmra.mxu3 %v7227_v48  ;;  %3697 = vmatmul.bf16.gmra.mxu1 %v3565_v37  ;;  %v2208_v62 = vsel %vm1248_vm12, %v6925_v32, %v4386_v19 }
 0x2cb   : > { %5098 = vtanh.f32 %v3659_v7  ;;  %v2367_v38 = vpack.c.bf16 %v2208_v62, %v2208_v62 }
 0x2cc   : > { %v1075_v27 = vpop.f32.mrf.mxu2 }
 0x2cd   : > { %v1446_v13 = vmin.f32 %v1075_v27, 0.0  ;;  %v2784_v15 = vpop.f32.mrf.mxu3  ;;  %v3518_v21 = vunpack.c.l.b16 %v2367_v38  ;;  %vm1254_vm14 = vcmp.gt.f32.partialorder %v1075_v27, 0.0 }
 0x2ce   : > { %v5093_v47 = vpop.eup %5092  ;;  %v2785_v2 = vadd.f32 %v6929_v22, %v2784_v15  ;;  %v3216_v61 = vpop.f32.mrf.mxu0 }
 0x2cf   : > { %v5095_v54 = vpop.eup %5094  ;;  %v2955_v30 = vadd.f32 %v5093_v47, %v2954_v46  ;;  %v1742_v43 = vmul.f32 1.442695, %v1446_v13  ;;  %v3217_v31 = vadd.f32 %v6929_v22, %v3216_v61  ;;  %v3660_v24 = vpop.f32.mrf.mxu1 }
 0x2d0   : > { %v5097_v44 = vpop.eup %5096  ;;  %v4389_v42 = vadd.f32 -1.0, %v5095_v54  ;;  %5100 = vtanh.f32 %v2785_v2  ;;  %v3661_v45 = vadd.f32 %v6929_v22, %v3660_v24 }
 0x2d1   : > { %v5099_v17 = vpop.eup %5098  ;;  %v3386_v5 = vadd.f32 %v5097_v44, %v3385_v63  ;;  %5102 = vpow2.f32 %v1742_v43 }
 0x2d2   : > { %v2211_v32 = vsel %vm1251_vm13, %v1072_v0, %v4389_v42  ;;  %v3860_v52 = vadd.f32 %v5099_v17, %v3859_v4  ;;  %5104 = vtanh.f32 %v3217_v31 }
 0x2d3   : > { %v2369_v28 = vpack.c.bf16 %v2211_v32, %v2211_v32  ;;  %5106 = vtanh.f32 %v3661_v45 }
 0x2d4   : > { %v1077_v6 = vpop.f32.mrf.mxu2 }
 0x2d5   : > { %v1449_v51 = vmin.f32 %v1077_v6, 0.0  ;;  %v2786_v18 = vpop.f32.mrf.mxu3  ;;  %v3519_v57 = vunpack.c.l.b16 %v2369_v28  ;;  %vm1257_vm15 = vcmp.gt.f32.partialorder %v1077_v6, 0.0 }
 0x2d6   : > { %v5101_v34 = vpop.eup %5100  ;;  %v2787_v8 = vadd.f32 %v6929_v22, %v2786_v18  ;;  %v3219_v35 = vpop.f32.mrf.mxu0 }
 0x2d7   : > { %v5103_v60 = vpop.eup %5102  ;;  %v2956_v41 = vadd.f32 %v5101_v34, %v2955_v30  ;;  %v1748_v20 = vmul.f32 1.442695, %v1449_v51  ;;  %v3220_v12 = vadd.f32 %v6929_v22, %v3219_v35  ;;  %v3663_v33 = vpop.f32.mrf.mxu1  ;;  %v3566_v3 = vpack.c.b16 %v3519_v57, %v3518_v21  ;;  %v5405_v34 = vld [vmem:[%s5604_s27 + $0xd8] sm:$0xff] }
 0x2d8   : > { %v5105_v0 = vpop.eup %5104  ;;  %5108 = vtanh.f32 %v2787_v8  ;;  %v3664_v11 = vadd.f32 %v6929_v22, %v3663_v33  ;;  %v4392_v40 = vadd.f32 -1.0, %v5103_v60  ;;  %v7230_v60 = vld [vmem:[#allocation22_spill] sm:$0xff] }
 0x2d9   : > { %v5107_v10 = vpop.eup %5106  ;;  %v3387_v1 = vadd.f32 %v5105_v0, %v3386_v5  ;;  %5110 = vpow2.f32 %v1748_v20  ;;  %4282 = vmatmul.msk.bf16.gmra.mxu2 %vm546_vm1, %v5404_v50  ;;  %3258 = vmatmul.bf16.gmra.mxu0 %v7228_v36 }
 0x2da   : > { %v3861_v49 = vadd.f32 %v5107_v10, %v3860_v52  ;;  %5112 = vtanh.f32 %v3220_v12  ;;  %2828 = vmatmul.bf16.gmra.mxu3 %v7229_v29  ;;  %3702 = vmatmul.bf16.gmra.mxu1 %v3566_v3  ;;  %v2214_v37 = vsel %vm1254_vm14, %v1075_v27, %v4392_v40 }
 0x2db   : > { %5114 = vtanh.f32 %v3664_v11  ;;  %v2371_v62 = vpack.c.bf16 %v2214_v37, %v2214_v37 }
 0x2dc   : > { %v1080_v46 = vpop.f32.mrf.mxu2 }
 0x2dd   : > { %v1452_v39 = vmin.f32 %v1080_v46, 0.0  ;;  %v2789_v56 = vpop.f32.mrf.mxu3  ;;  %v3520_v43 = vunpack.c.l.b16 %v2371_v62  ;;  %vm1260_vm0 = vcmp.gt.f32.partialorder %v1080_v46, 0.0 }
 0x2de   : > { %v5109_v55 = vpop.eup %5108  ;;  %v2790_v59 = vadd.f32 %v6929_v22, %v2789_v56  ;;  %v3221_v7 = vpop.f32.mrf.mxu0 }
 0x2df   : > { %v5111_v14 = vpop.eup %5110  ;;  %v2957_v63 = vadd.f32 %v5109_v55, %v2956_v41  ;;  %v1754_v9 = vmul.f32 1.442695, %v1452_v39  ;;  %v3222_v19 = vadd.f32 %v6929_v22, %v3221_v7  ;;  %v3665_v4 = vpop.f32.mrf.mxu1 }
 0x2e0   : > { %v5113_v48 = vpop.eup %5112  ;;  %v4395_v13 = vadd.f32 -1.0, %v5111_v14  ;;  %5116 = vtanh.f32 %v2790_v59  ;;  %v3666_v15 = vadd.f32 %v6929_v22, %v3665_v4 }
 0x2e1   : > { %v5115_v47 = vpop.eup %5114  ;;  %v3388_v2 = vadd.f32 %v5113_v48, %v3387_v1  ;;  %5118 = vpow2.f32 %v1754_v9 }
 0x2e2   : > { %v2217_v27 = vsel %vm1257_vm15, %v1077_v6, %v4395_v13  ;;  %v3862_v61 = vadd.f32 %v5115_v47, %v3861_v49  ;;  %5120 = vtanh.f32 %v3222_v19 }
 0x2e3   : > { %v2373_v54 = vpack.c.bf16 %v2217_v27, %v2217_v27  ;;  %5122 = vtanh.f32 %v3666_v15 }
 0x2e4   : > { %v1082_v30 = vpop.f32.mrf.mxu2 }
 0x2e5   : > { %v1455_v31 = vmin.f32 %v1082_v30, 0.0  ;;  %v2791_v24 = vpop.f32.mrf.mxu3  ;;  %v3521_v44 = vunpack.c.l.b16 %v2373_v54  ;;  %vm1263_vm2 = vcmp.gt.f32.partialorder %v1082_v30, 0.0 }
 0x2e6   : > { %v5117_v42 = vpop.eup %5116  ;;  %v2792_v45 = vadd.f32 %v6929_v22, %v2791_v24  ;;  %v3224_v17 = vpop.f32.mrf.mxu0  ;;  %v5406_v24 = vld [vmem:[%s5604_s27 + $0xe0] sm:$0xff] }
 0x2e7   : > { %v5119_v38 = vpop.eup %5118  ;;  %v2958_v5 = vadd.f32 %v5117_v42, %v2957_v63  ;;  %v1760_v32 = vmul.f32 1.442695, %v1455_v31  ;;  %v3225_v52 = vadd.f32 %v6929_v22, %v3224_v17  ;;  %v3668_v28 = vpop.f32.mrf.mxu1  ;;  %v3567_v6 = vpack.c.b16 %v3521_v44, %v3520_v43 }
 0x2e8   : > { %v5121_v21 = vpop.eup %5120  ;;  %5124 = vtanh.f32 %v2792_v45  ;;  %v3669_v51 = vadd.f32 %v6929_v22, %v3668_v28  ;;  %v4398_v8 = vadd.f32 -1.0, %v5119_v38  ;;  %v7231_v45 = vld [vmem:[#allocation23_spill] sm:$0xff] }
 0x2e9   : > { %v5123_v18 = vpop.eup %5122  ;;  %v3389_v57 = vadd.f32 %v5121_v21, %v3388_v2  ;;  %5126 = vpow2.f32 %v1760_v32  ;;  %4283 = vmatmul.msk.bf16.gmra.mxu2 %vm546_vm1, %v5405_v34  ;;  %3263 = vmatmul.bf16.gmra.mxu0 %v6452_v58 }
 0x2ea   : > { %v3863_v35 = vadd.f32 %v5123_v18, %v3862_v61  ;;  %5128 = vtanh.f32 %v3225_v52  ;;  %2833 = vmatmul.bf16.gmra.mxu3 %v7230_v60  ;;  %3707 = vmatmul.bf16.gmra.mxu1 %v3567_v6  ;;  %v2220_v3 = vsel %vm1260_vm0, %v1080_v46, %v4398_v8 }
 0x2eb   : > { %5130 = vtanh.f32 %v3669_v51  ;;  %v2375_v56 = vpack.c.bf16 %v2220_v3, %v2220_v3 }
 0x2ec   : > { %v1085_v41 = vpop.f32.mrf.mxu2 }
 0x2ed   : > { %v1458_v20 = vmin.f32 %v1085_v41, 0.0  ;;  %v2794_v12 = vpop.f32.mrf.mxu3  ;;  %v3522_v14 = vunpack.c.l.b16 %v2375_v56  ;;  %vm1266_vm3 = vcmp.gt.f32.partialorder %v1085_v41, 0.0 }
 0x2ee   : > { %v5125_v33 = vpop.eup %5124  ;;  %v2795_v0 = vadd.f32 %v6929_v22, %v2794_v12  ;;  %v3226_v11 = vpop.f32.mrf.mxu0 }
 0x2ef   : > { %v5127_v10 = vpop.eup %5126  ;;  %v2959_v1 = vadd.f32 %v5125_v33, %v2958_v5  ;;  %v1766_v50 = vmul.f32 1.442695, %v1458_v20  ;;  %v3227_v58 = vadd.f32 %v6929_v22, %v3226_v11  ;;  %v3670_v36 = vpop.f32.mrf.mxu1 }
 0x2f0   : > { %v5129_v40 = vpop.eup %5128  ;;  %v4401_v49 = vadd.f32 -1.0, %v5127_v10  ;;  %5132 = vtanh.f32 %v2795_v0  ;;  %v3671_v29 = vadd.f32 %v6929_v22, %v3670_v36 }
 0x2f1   : > { %v5131_v39 = vpop.eup %5130  ;;  %v3390_v55 = vadd.f32 %v5129_v40, %v3389_v57  ;;  %5134 = vpow2.f32 %v1766_v50 }
 0x2f2   : > { %v2223_v46 = vsel %vm1263_vm2, %v1082_v30, %v4401_v49  ;;  %v3864_v37 = vadd.f32 %v5131_v39, %v3863_v35  ;;  %5136 = vtanh.f32 %v3227_v58 }
 0x2f3   : > { %v2377_v59 = vpack.c.bf16 %v2223_v46, %v2223_v46  ;;  %5138 = vtanh.f32 %v3671_v29 }
 0x2f4   : > { %v1087_v7 = vpop.f32.mrf.mxu2 }
 0x2f5   : > { %v1461_v63 = vmin.f32 %v1087_v7, 0.0  ;;  %v2796_v9 = vpop.f32.mrf.mxu3  ;;  %v3523_v19 = vunpack.c.l.b16 %v2377_v59  ;;  %vm1269_vm4 = vcmp.gt.f32.partialorder %v1087_v7, 0.0 }
 0x2f6   : > { %v5133_v4 = vpop.eup %5132  ;;  %v2797_v48 = vadd.f32 %v6929_v22, %v2796_v9  ;;  %v3229_v13 = vpop.f32.mrf.mxu0 }
 0x2f7   : > { %v5135_v15 = vpop.eup %5134  ;;  %v2960_v47 = vadd.f32 %v5133_v4, %v2959_v1  ;;  %v1772_v62 = vmul.f32 1.442695, %v1461_v63  ;;  %v3230_v2 = vadd.f32 %v6929_v22, %v3229_v13  ;;  %v3673_v27 = vpop.f32.mrf.mxu1  ;;  %v3568_v61 = vpack.c.b16 %v3523_v19, %v3522_v14  ;;  %v5407_v63 = vld [vmem:[%s5604_s27 + $0xe8] sm:$0xff]  ;;  %v7232_v4 = vld [vmem:[#allocation24_spill] sm:$0xff] }
 0x2f8   : > { %v5137_v54 = vpop.eup %5136  ;;  %5140 = vtanh.f32 %v2797_v48  ;;  %v3674_v30 = vadd.f32 %v6929_v22, %v3673_v27  ;;  %v4404_v44 = vadd.f32 -1.0, %v5135_v15 }
 0x2f9   : > { %v5139_v43 = vpop.eup %5138  ;;  %v3391_v31 = vadd.f32 %v5137_v54, %v3390_v55  ;;  %5142 = vpow2.f32 %v1772_v62  ;;  %4284 = vmatmul.msk.bf16.gmra.mxu2 %vm546_vm1, %v5406_v24  ;;  %3268 = vmatmul.bf16.gmra.mxu0 %v6523_v53 }
 0x2fa   : > { %v3865_v42 = vadd.f32 %v5139_v43, %v3864_v37  ;;  %5144 = vtanh.f32 %v3230_v2  ;;  %2838 = vmatmul.bf16.gmra.mxu3 %v7231_v45  ;;  %3712 = vmatmul.bf16.gmra.mxu1 %v3568_v61  ;;  %v2226_v52 = vsel %vm1266_vm3, %v1085_v41, %v4404_v44 }
 0x2fb   : > { %5146 = vtanh.f32 %v3674_v30  ;;  %v2379_v20 = vpack.c.bf16 %v2226_v52, %v2226_v52 }
 0x2fc   : > { %v1090_v17 = vpop.f32.mrf.mxu2 }
 0x2fd   : > { %v1464_v38 = vmin.f32 %v1090_v17, 0.0  ;;  %v2799_v5 = vpop.f32.mrf.mxu3  ;;  %v3524_v11 = vunpack.c.l.b16 %v2379_v20  ;;  %vm1272_vm5 = vcmp.gt.f32.partialorder %v1090_v17, 0.0 }
 0x2fe   : > { %v5141_v32 = vpop.eup %5140  ;;  %v2800_v28 = vadd.f32 %v6929_v22, %v2799_v5  ;;  %v3231_v6 = vpop.f32.mrf.mxu0 }
 0x2ff   : > { %v5143_v21 = vpop.eup %5142  ;;  %v2961_v51 = vadd.f32 %v5141_v32, %v2960_v47  ;;  %v1778_v18 = vmul.f32 1.442695, %v1464_v38  ;;  %v3232_v53 = vadd.f32 %v6929_v22, %v3231_v6  ;;  %v3675_v57 = vpop.f32.mrf.mxu1 }
 0x300   : > { %v5145_v34 = vpop.eup %5144  ;;  %v4407_v8 = vadd.f32 -1.0, %v5143_v21  ;;  %5148 = vtanh.f32 %v2800_v28  ;;  %v3676_v35 = vadd.f32 %v6929_v22, %v3675_v57 }
 0x301   : > { %v5147_v60 = vpop.eup %5146  ;;  %v3392_v12 = vadd.f32 %v5145_v34, %v3391_v31  ;;  %5150 = vpow2.f32 %v1778_v18 }
 0x302   : > { %v2229_v41 = vsel %vm1269_vm4, %v1087_v7, %v4407_v8  ;;  %v3866_v33 = vadd.f32 %v5147_v60, %v3865_v42  ;;  %5152 = vtanh.f32 %v3232_v53 }
 0x303   : > { %v2381_v3 = vpack.c.bf16 %v2229_v41, %v2229_v41  ;;  %5154 = vtanh.f32 %v3676_v35 }
 0x304   : > { %v1092_v0 = vpop.f32.mrf.mxu2 }
 0x305   : > { %v1467_v10 = vmin.f32 %v1092_v0, 0.0  ;;  %v2801_v1 = vpop.f32.mrf.mxu3  ;;  %v3525_v50 = vunpack.c.l.b16 %v2381_v3  ;;  %vm1275_vm6 = vcmp.gt.f32.partialorder %v1092_v0, 0.0 }
 0x306   : > { %v5149_v58 = vpop.eup %5148  ;;  %v2802_v36 = vadd.f32 %v6929_v22, %v2801_v1  ;;  %v3234_v40 = vpop.f32.mrf.mxu0 }
 0x307   : > { %v5151_v49 = vpop.eup %5150  ;;  %v2962_v29 = vadd.f32 %v5149_v58, %v2961_v51  ;;  %v1784_v39 = vmul.f32 1.442695, %v1467_v10  ;;  %v3235_v56 = vadd.f32 %v6929_v22, %v3234_v40  ;;  %v3678_v55 = vpop.f32.mrf.mxu1  ;;  %v3569_v46 = vpack.c.b16 %v3525_v50, %v3524_v11  ;;  %v5408_v11 = vld [vmem:[%s5604_s27 + $0xf0] sm:$0xff] }
 0x308   : > { %v5153_v37 = vpop.eup %5152  ;;  %5156 = vtanh.f32 %v2802_v36  ;;  %v3679_v59 = vadd.f32 %v6929_v22, %v3678_v55  ;;  %v4410_v9 = vadd.f32 -1.0, %v5151_v49 }
 0x309   : > { %v5155_v7 = vpop.eup %5154  ;;  %v3393_v14 = vadd.f32 %v5153_v37, %v3392_v12  ;;  %5158 = vpow2.f32 %v1784_v39  ;;  %4285 = vmatmul.msk.bf16.gmra.mxu2 %vm546_vm1, %v5407_v63  ;;  %3273 = vmatmul.bf16.gmra.mxu0 %v6594_v25 }
 0x30a   : > { %v3867_v19 = vadd.f32 %v5155_v7, %v3866_v33  ;;  %5160 = vtanh.f32 %v3235_v56  ;;  %2843 = vmatmul.bf16.gmra.mxu3 %v7232_v4  ;;  %3717 = vmatmul.bf16.gmra.mxu1 %v3569_v46  ;;  %v2232_v62 = vsel %vm1272_vm5, %v1090_v17, %v4410_v9 }
 0x30b   : > { %5162 = vtanh.f32 %v3679_v59  ;;  %v2383_v45 = vpack.c.bf16 %v2232_v62, %v2232_v62 }
 0x30c   : > { %v1095_v48 = vpop.f32.mrf.mxu2 }
 0x30d   : > { %v1470_v13 = vmin.f32 %v1095_v48, 0.0  ;;  %v2804_v15 = vpop.f32.mrf.mxu3  ;;  %v3526_v28 = vunpack.c.l.b16 %v2383_v45  ;;  %vm1278_vm7 = vcmp.gt.f32.partialorder %v1095_v48, 0.0 }
 0x30e   : > { %v5157_v47 = vpop.eup %5156  ;;  %v2805_v2 = vadd.f32 %v6929_v22, %v2804_v15  ;;  %v3236_v27 = vpop.f32.mrf.mxu0 }
 0x30f   : > { %v5159_v61 = vpop.eup %5158  ;;  %v2963_v54 = vadd.f32 %v5157_v47, %v2962_v29  ;;  %v1790_v30 = vmul.f32 1.442695, %v1470_v13  ;;  %v3237_v25 = vadd.f32 %v6929_v22, %v3236_v27  ;;  %v3680_v43 = vpop.f32.mrf.mxu1 }
 0x310   : > { %v5161_v31 = vpop.eup %5160  ;;  %v4413_v24 = vadd.f32 -1.0, %v5159_v61  ;;  %5164 = vtanh.f32 %v2805_v2  ;;  %v3681_v44 = vadd.f32 %v6929_v22, %v3680_v43 }
 0x311   : > { %v5163_v42 = vpop.eup %5162  ;;  %v3394_v38 = vadd.f32 %v5161_v31, %v3393_v14  ;;  %5166 = vpow2.f32 %v1790_v30 }
 0x312   : > { %v2235_v17 = vsel %vm1275_vm6, %v1092_v0, %v4413_v24  ;;  %v3868_v5 = vadd.f32 %v5163_v42, %v3867_v19  ;;  %5168 = vtanh.f32 %v3237_v25 }
 0x313   : > { %v2385_v32 = vpack.c.bf16 %v2235_v17, %v2235_v17  ;;  %5170 = vtanh.f32 %v3681_v44 }
 0x314   : > { %v1097_v52 = vpop.f32.mrf.mxu2 }
 0x315   : > { %v3527_v6 = vunpack.c.l.b16 %v2385_v32  ;;  %v1473_v21 = vmin.f32 %v1097_v52, 0.0  ;;  %v2806_v51 = vpop.f32.mrf.mxu3  ;;  %vm1281_vm8 = vcmp.gt.f32.partialorder %v1097_v52, 0.0 }
 0x316   : > { %v5165_v18 = vpop.eup %5164  ;;  %v2807_v53 = vadd.f32 %v6929_v22, %v2806_v51  ;;  %v3239_v57 = vpop.f32.mrf.mxu0 }
 0x317   : > { %v5167_v34 = vpop.eup %5166  ;;  %v2964_v8 = vadd.f32 %v5165_v18, %v2963_v54  ;;  %v1796_v35 = vmul.f32 1.442695, %v1473_v21  ;;  %v3240_v60 = vadd.f32 %v6929_v22, %v3239_v57  ;;  %v3683_v20 = vpop.f32.mrf.mxu1  ;;  %v3570_v12 = vpack.c.b16 %v3527_v6, %v3526_v28  ;;  %v7233_v28 = vld [vmem:[#allocation25_spill] sm:$0xff] }
 0x318   : > { %v5169_v41 = vpop.eup %5168  ;;  %5172 = vtanh.f32 %v2807_v53  ;;  %v3684_v33 = vadd.f32 %v6929_v22, %v3683_v20  ;;  %v4416_v10 = vadd.f32 -1.0, %v5167_v34 }
 0x319   : > { %v5171_v3 = vpop.eup %5170  ;;  %v3395_v0 = vadd.f32 %v5169_v41, %v3394_v38  ;;  %5174 = vpow2.f32 %v1796_v35  ;;  %4286 = vmatmul.msk.bf16.gmra.mxu2 %vm546_vm1, %v5408_v11  ;;  %3278 = vmatmul.bf16.gmra.mxu0 %v6603_v23 }
 0x31a   : > { %v3869_v1 = vadd.f32 %v5171_v3, %v3868_v5  ;;  %5176 = vtanh.f32 %v3240_v60  ;;  %2848 = vmatmul.bf16.gmra.mxu3 %v6599_v26  ;;  %3722 = vmatmul.bf16.gmra.mxu1 %v3570_v12  ;;  %v2238_v49 = vsel %vm1278_vm7, %v1095_v48, %v4416_v10  ;;  %v5409_v5 = vld [vmem:[%s5604_s27 + $0xf8] sm:$0xff]  ;;  %s3949_s27 = sshll.u32 %s3945_s24, 4  ;;  %s3950_s27 = int_to_ptr.hbm [resolvable:$true] %s3949_s27 }
 0x31b   : > { %5178 = vtanh.f32 %v3684_v33  ;;  %v2387_v63 = vpack.c.bf16 %v2238_v49, %v2238_v49  ;;  %s5449_s10 = sshra.s32 %s3950_s27, 4  ;;  %s5450_s10 = int_to_ptr.hbm [resolvable:$true] %s5449_s10 }
 0x31c   : > { %v1100_v50 = vpop.f32.mrf.mxu2  ;;  %s5451_s11 = scalar_lea.hbm %s5450_s10, 3  ;;  %p5456_p5 = scmp.lt.s32.totalorder %s5450_s10, %s7195_s6 }
 0x31d   : > { %v1476_v58 = vmin.f32 %v1100_v50, 0.0  ;;  %v2809_v36 = vpop.f32.mrf.mxu3  ;;  %v3528_v15 = vunpack.c.l.b16 %v2387_v63  ;;  %vm1284_vm9 = vcmp.gt.f32.partialorder %v1100_v50, 0.0  ;;  %p5452_p1 = scmp.ne.s32.totalorder %s5450_s10, %s5451_s11  ;;  %p5457_p7 = scmp.lt.s32.totalorder %s5455_s18, %s5451_s11 }
 0x31e   : > { %v5173_v40 = vpop.eup %5172  ;;  %v2810_v29 = vadd.f32 %v6929_v22, %v2809_v36  ;;  %v3241_v39 = vpop.f32.mrf.mxu0 }
 0x31f   : > { %v5175_v56 = vpop.eup %5174  ;;  %v2965_v55 = vadd.f32 %v5173_v40, %v2964_v8  ;;  %v1802_v46 = vmul.f32 1.442695, %v1476_v58  ;;  %v3242_v23 = vadd.f32 %v6929_v22, %v3241_v39  ;;  %v3685_v37 = vpop.f32.mrf.mxu1  ;;  %p5453_p2 = pnand %p5452_p1, %p5579_p4  ;;  %p5458_p8 = por %p5457_p7, %p5456_p5 }
 0x320   : > { %v5177_v59 = vpop.eup %5176  ;;  %v4419_v7 = vadd.f32 -1.0, %v5175_v56  ;;  %5180 = vtanh.f32 %v2810_v29  ;;  %v3686_v26 = vadd.f32 %v6929_v22, %v3685_v37 }
 0x321   : > { %v5179_v14 = vpop.eup %5178  ;;  %v3396_v9 = vadd.f32 %v5177_v59, %v3395_v0  ;;  %5182 = vpow2.f32 %v1802_v46  ;;  %p5454_p3 = pneg %p5453_p2 }
 0x322   : > { %v2241_v19 = vsel %vm1281_vm8, %v1097_v52, %v4419_v7  ;;  %v3870_v4 = vadd.f32 %v5179_v14, %v3869_v1  ;;  %5184 = vtanh.f32 %v3242_v23 }
 0x323   : > { %v2389_v48 = vpack.c.bf16 %v2241_v19, %v2241_v19  ;;  %5186 = vtanh.f32 %v3686_v26  ;;  %p5459_p9 = pnand %p5458_p8, %p5454_p3 }
 0x324   : > { %v1102_v13 = vpop.f32.mrf.mxu2 }
 0x325   : > { %v3529_v47 = vunpack.c.l.b16 %v2389_v48  ;;  %v1479_v62 = vmin.f32 %v1102_v13, 0.0  ;;  %v2811_v2 = vpop.f32.mrf.mxu3 }
 0x326   : > { %v5181_v27 = vpop.eup %5180  ;;  %v2812_v61 = vadd.f32 %v6929_v22, %v2811_v2  ;;  %v3244_v54 = vpop.f32.mrf.mxu0 }
 0x327   : > { %v5183_v30 = vpop.eup %5182  ;;  %v2966_v25 = vadd.f32 %v5181_v27, %v2965_v55  ;;  %v1808_v43 = vmul.f32 1.442695, %v1479_v62  ;;  %v3245_v31 = vadd.f32 %v6929_v22, %v3244_v54  ;;  %v3688_v24 = vpop.f32.mrf.mxu1  ;;  %v3571_v44 = vpack.c.b16 %v3529_v47, %v3528_v15 }
 0x328   : > { %v5185_v42 = vpop.eup %5184  ;;  %5188 = vtanh.f32 %v2812_v61  ;;  %v3689_v45 = vadd.f32 %v6929_v22, %v3688_v24  ;;  %v4422_v32 = vadd.f32 -1.0, %v5183_v30 }
 0x329   : > { %v5187_v38 = vpop.eup %5186  ;;  %v3397_v17 = vadd.f32 %v5185_v42, %v3396_v9  ;;  %5190 = vpow2.f32 %v1808_v43  ;;  %4287 = vmatmul.msk.bf16.gmra.mxu2 %vm546_vm1, %v5409_v5  ;;  %3283 = vmatmul.bf16.gmra.mxu0 %v6648_v16  ;;  %vm1287_vm1 = vcmp.gt.f32.partialorder %v1102_v13, 0.0 }
 0x32a   : > { %v3871_v52 = vadd.f32 %v5187_v38, %v3870_v4  ;;  %5192 = vtanh.f32 %v3245_v31  ;;  %2853 = vmatmul.bf16.gmra.mxu3 %v7233_v28  ;;  %3727 = vmatmul.bf16.gmra.mxu1 %v3571_v44  ;;  %v2244_v53 = vsel %vm1284_vm9, %v1100_v50, %v4422_v32 }
 0x32b   : > { %5194 = vtanh.f32 %v3689_v45  ;;  %v2391_v0 = vpack.c.bf16 %v2244_v53, %v2244_v53 }
 0x32c   : > { %v1105_v6 = vpop.f32.mrf.mxu2 }
 0x32d   : > { %v1482_v21 = vmin.f32 %v1105_v6, 0.0  ;;  %v2814_v51 = vpop.f32.mrf.mxu3  ;;  %v3530_v36 = vunpack.c.l.b16 %v2391_v0  ;;  %vm1290_vm10 = vcmp.gt.f32.partialorder %v1105_v6, 0.0 }
 0x32e   : > { %v5189_v18 = vpop.eup %5188  ;;  %v2815_v57 = vadd.f32 %v6929_v22, %v2814_v51  ;;  %v3246_v34 = vpop.f32.mrf.mxu0 }
 0x32f   : > { %v5191_v8 = vpop.eup %5190  ;;  %v2967_v35 = vadd.f32 %v5189_v18, %v2966_v25  ;;  %v1814_v60 = vmul.f32 1.442695, %v1482_v21  ;;  %v3247_v16 = vadd.f32 %v6929_v22, %v3246_v34  ;;  %v3690_v20 = vpop.f32.mrf.mxu1 }
 0x330   : > { %v5193_v12 = vpop.eup %5192  ;;  %v4425_v41 = vadd.f32 -1.0, %v5191_v8  ;;  %5196 = vtanh.f32 %v2815_v57  ;;  %v3691_v33 = vadd.f32 %v6929_v22, %v3690_v20 }
 0x331   : > { %v5195_v3 = vpop.eup %5194  ;;  %v3398_v11 = vadd.f32 %v5193_v12, %v3397_v17  ;;  %5198 = vpow2.f32 %v1814_v60 }
 0x332   : > { %v2247_v10 = vsel %vm1287_vm1, %v1102_v13, %v4425_v41  ;;  %v3872_v1 = vadd.f32 %v5195_v3, %v3871_v52  ;;  %5200 = vtanh.f32 %v3247_v16 }
 0x333   : > { %v2393_v50 = vpack.c.bf16 %v2247_v10, %v2247_v10  ;;  %5202 = vtanh.f32 %v3691_v33 }
 0x334   : > { %v1107_v58 = vpop.f32.mrf.mxu2 }
 0x335   : > { %v3531_v40 = vunpack.c.l.b16 %v2393_v50  ;;  %v1485_v49 = vmin.f32 %v1107_v58, 0.0  ;;  %v2816_v29 = vpop.f32.mrf.mxu3  ;;  %vm1293_vm11 = vcmp.gt.f32.partialorder %v1107_v58, 0.0 }
 0x336   : > { %v5197_v39 = vpop.eup %5196  ;;  %v2817_v56 = vadd.f32 %v6929_v22, %v2816_v29  ;;  %v3249_v55 = vpop.f32.mrf.mxu0 }
 0x337   : > { %v5199_v46 = vpop.eup %5198  ;;  %v2968_v23 = vadd.f32 %v5197_v39, %v2967_v35  ;;  %v1820_v37 = vmul.f32 1.442695, %v1485_v49  ;;  %v3250_v59 = vadd.f32 %v6929_v22, %v3249_v55  ;;  %v3693_v7 = vpop.f32.mrf.mxu1  ;;  %v3572_v26 = vpack.c.b16 %v3531_v40, %v3530_v36 }
 0x338   : > { %v5201_v14 = vpop.eup %5200  ;;  %5204 = vtanh.f32 %v2817_v56  ;;  %v3694_v63 = vadd.f32 %v6929_v22, %v3693_v7  ;;  %v4428_v4 = vadd.f32 -1.0, %v5199_v46 }
 0x339   : > { %v5203_v9 = vpop.eup %5202  ;;  %v3399_v19 = vadd.f32 %v5201_v14, %v3398_v11  ;;  %5206 = vpow2.f32 %v1820_v37 }
 0x33a   : > { %v3873_v48 = vadd.f32 %v5203_v9, %v3872_v1  ;;  %5208 = vtanh.f32 %v3250_v59  ;;  %3732 = vmatmul.bf16.gmra.mxu1 %v3572_v26  ;;  %v2250_v2 = vsel %vm1290_vm10, %v1105_v6, %v4428_v4 }
 0x33b   : > { %5210 = vtanh.f32 %v3694_v63  ;;  %v2395_v38 = vpack.c.bf16 %v2250_v2, %v2250_v2 }
 0x33c   : > { %v1110_v13 = vpop.f32.mrf.mxu2 }
 0x33d   : > { %v1488_v15 = vmin.f32 %v1110_v13, 0.0  ;;  %v2819_v47 = vpop.f32.mrf.mxu3  ;;  %v3532_v6 = vunpack.c.l.b16 %v2395_v38  ;;  %vm1296_vm12 = vcmp.gt.f32.partialorder %v1110_v13, 0.0 }
 0x33e   : > { %v5205_v62 = vpop.eup %5204  ;;  %v2820_v27 = vadd.f32 %v6929_v22, %v2819_v47  ;;  %v3251_v61 = vpop.f32.mrf.mxu0 }
 0x33f   : > { %v5207_v54 = vpop.eup %5206  ;;  %v2969_v30 = vadd.f32 %v5205_v62, %v2968_v23  ;;  %v1826_v25 = vmul.f32 1.442695, %v1488_v15  ;;  %v3252_v43 = vadd.f32 %v6929_v22, %v3251_v61  ;;  %v3695_v31 = vpop.f32.mrf.mxu1 }
 0x340   : > { %v5209_v24 = vpop.eup %5208  ;;  %v4431_v44 = vadd.f32 -1.0, %v5207_v54  ;;  %5212 = vtanh.f32 %v2820_v27  ;;  %v3696_v42 = vadd.f32 %v6929_v22, %v3695_v31  ;;  %v7019_v27 = vld [vmem:[%s5617_s26] ss:$0 sm:$0xff] }
 0x341   : > { %v5211_v45 = vpop.eup %5210  ;;  %v3400_v17 = vadd.f32 %v5209_v24, %v3399_v19  ;;  %5214 = vpow2.f32 %v1826_v25 }
 0x342   : > { %v2253_v5 = vsel %vm1293_vm11, %v1107_v58, %v4431_v44  ;;  %v3874_v32 = vadd.f32 %v5211_v45, %v3873_v48  ;;  %5216 = vtanh.f32 %v3252_v43 }
 0x343   : > { %v2397_v52 = vpack.c.bf16 %v2253_v5, %v2253_v5  ;;  %5218 = vtanh.f32 %v3696_v42 }
 0x344   : > { %v1112_v28 = vpop.f32.mrf.mxu2 }
 0x345   : > { %v3533_v21 = vunpack.c.l.b16 %v2397_v52  ;;  %v1491_v51 = vmin.f32 %v1112_v28, 0.0  ;;  %v2821_v18 = vpop.f32.mrf.mxu3  ;;  %vm1299_vm13 = vcmp.gt.f32.partialorder %v1112_v28, 0.0 }
 0x346   : > { %v5213_v53 = vpop.eup %5212  ;;  %v2822_v57 = vadd.f32 %v6929_v22, %v2821_v18  ;;  %v3254_v34 = vpop.f32.mrf.mxu0 }
 0x347   : > { %v5215_v8 = vpop.eup %5214  ;;  %v2970_v35 = vadd.f32 %v5213_v53, %v2969_v30  ;;  %v1832_v60 = vmul.f32 1.442695, %v1491_v51  ;;  %v3255_v16 = vadd.f32 %v6929_v22, %v3254_v34  ;;  %v3698_v20 = vpop.f32.mrf.mxu1  ;;  %v3573_v12 = vpack.c.b16 %v3533_v21, %v3532_v6 }
 0x348   : > { %v5217_v41 = vpop.eup %5216  ;;  %5220 = vtanh.f32 %v2822_v57  ;;  %v3699_v33 = vadd.f32 %v6929_v22, %v3698_v20  ;;  %v4434_v11 = vadd.f32 -1.0, %v5215_v8 }
 0x349   : > { %v5219_v3 = vpop.eup %5218  ;;  %v3401_v0 = vadd.f32 %v5217_v41, %v3400_v17  ;;  %5222 = vpow2.f32 %v1832_v60 }
 0x34a   : > { %v3875_v10 = vadd.f32 %v5219_v3, %v3874_v32  ;;  %5224 = vtanh.f32 %v3255_v16  ;;  %3737 = vmatmul.bf16.gmra.mxu1 %v3573_v12  ;;  %v2256_v40 = vsel %vm1296_vm12, %v1110_v13, %v4434_v11  ;;  %vm3922_vm12 = vcmask 1040384  }
 0x34b   : > { %5226 = vtanh.f32 %v3699_v33  ;;  %v2399_v14 = vpack.c.bf16 %v2256_v40, %v2256_v40 }
 0x34c   : > { %v1115_v1 = vpop.f32.mrf.mxu2 }
 0x34d   : > { %v1494_v50 = vmin.f32 %v1115_v1, 0.0  ;;  %v2824_v58 = vpop.f32.mrf.mxu3  ;;  %v3534_v13 = vunpack.c.l.b16 %v2399_v14  ;;  %vm1302_vm14 = vcmp.gt.f32.partialorder %v1115_v1, 0.0 }
 0x34e   : > { %v5221_v36 = vpop.eup %5220  ;;  %v2825_v49 = vadd.f32 %v6929_v22, %v2824_v58  ;;  %v3256_v29 = vpop.f32.mrf.mxu0 }
 0x34f   : > { %v5223_v39 = vpop.eup %5222  ;;  %v2971_v56 = vadd.f32 %v5221_v36, %v2970_v35  ;;  %v1838_v55 = vmul.f32 1.442695, %v1494_v50  ;;  %v3257_v46 = vadd.f32 %v6929_v22, %v3256_v29  ;;  %v3700_v23 = vpop.f32.mrf.mxu1 }
 0x350   : > { %v5225_v37 = vpop.eup %5224  ;;  %v4437_v59 = vadd.f32 -1.0, %v5223_v39  ;;  %5228 = vtanh.f32 %v2825_v49  ;;  %v3701_v7 = vadd.f32 %v6929_v22, %v3700_v23 }
 0x351   : > { %v5227_v26 = vpop.eup %5226  ;;  %v3402_v63 = vadd.f32 %v5225_v37, %v3401_v0  ;;  %5230 = vpow2.f32 %v1838_v55 }
 0x352   : > { %v2259_v9 = vsel %vm1299_vm13, %v1112_v28, %v4437_v59  ;;  %v3876_v19 = vadd.f32 %v5227_v26, %v3875_v10  ;;  %5232 = vtanh.f32 %v3257_v46  ;;  %vm3924_vm13 = vcmask 1041408  }
 0x353   : > { %v2401_v4 = vpack.c.bf16 %v2259_v9, %v2259_v9  ;;  %5234 = vtanh.f32 %v3701_v7 }
 0x354   : > { %v1117_v48 = vpop.f32.mrf.mxu2 }
 0x355   : > { %v3535_v15 = vunpack.c.l.b16 %v2401_v4  ;;  %v1497_v47 = vmin.f32 %v1117_v48, 0.0  ;;  %v2826_v62 = vpop.f32.mrf.mxu3  ;;  %vm1305_vm15 = vcmp.gt.f32.partialorder %v1117_v48, 0.0 }
 0x356   : > { %v5229_v2 = vpop.eup %5228  ;;  %v2827_v22 = vadd.f32 %v7019_v27, %v2826_v62  ;;  %v3259_v61 = vpop.f32.mrf.mxu0 }
 0x357   : > { %v5231_v54 = vpop.eup %5230  ;;  %v2972_v30 = vadd.f32 %v5229_v2, %v2971_v56  ;;  %v1844_v25 = vmul.f32 1.442695, %v1497_v47  ;;  %v3260_v43 = vadd.f32 %v7019_v27, %v3259_v61  ;;  %v3703_v31 = vpop.f32.mrf.mxu1  ;;  %v3574_v24 = vpack.c.b16 %v3535_v15, %v3534_v13 }
 0x358   : > { %v5233_v44 = vpop.eup %5232  ;;  %5236 = vtanh.f32 %v2827_v22  ;;  %v3704_v42 = vadd.f32 %v7019_v27, %v3703_v31  ;;  %v4440_v17 = vadd.f32 -1.0, %v5231_v54 }
 0x359   : > { %v5235_v45 = vpop.eup %5234  ;;  %v3403_v38 = vadd.f32 %v5233_v44, %v3402_v63  ;;  %5238 = vpow2.f32 %v1844_v25 }
 0x35a   : > { %v3877_v5 = vadd.f32 %v5235_v45, %v3876_v19  ;;  %5240 = vtanh.f32 %v3260_v43  ;;  %3742 = vmatmul.bf16.gmra.mxu1 %v3574_v24  ;;  %v2262_v21 = vsel %vm1302_vm14, %v1115_v1, %v4440_v17 }
 0x35b   : > { %5242 = vtanh.f32 %v3704_v42  ;;  %v2403_v12 = vpack.c.bf16 %v2262_v21, %v2262_v21 }
 0x35c   : > { %v1120_v32 = vpop.f32.mrf.mxu2 }
 0x35d   : > { %v1500_v52 = vmin.f32 %v1120_v32, 0.0  ;;  %v2829_v28 = vpop.f32.mrf.mxu3  ;;  %v3536_v10 = vunpack.c.l.b16 %v2403_v12  ;;  %vm1308_vm0 = vcmp.gt.f32.partialorder %v1120_v32, 0.0 }
 0x35e   : > { %v5237_v6 = vpop.eup %5236  ;;  %v2830_v51 = vadd.f32 %v7019_v27, %v2829_v28  ;;  %v7025_v18 = vpop.f32.mrf.mxu0 }
 0x35f   : > { %v5239_v53 = vpop.eup %5238  ;;  %v2973_v57 = vadd.f32 %v5237_v6, %v2972_v30  ;;  %v1850_v34 = vmul.f32 1.442695, %v1500_v52  ;;  %v3705_v8 = vpop.f32.mrf.mxu1 }
 0x360   : > { %v5241_v35 = vpop.eup %5240  ;;  %v4443_v60 = vadd.f32 -1.0, %v5239_v53  ;;  %5244 = vtanh.f32 %v2830_v51  ;;  %v3706_v16 = vadd.f32 %v7019_v27, %v3705_v8 }
 0x361   : > { %v5243_v20 = vpop.eup %5242  ;;  %v7028_v41 = vadd.f32 %v5241_v35, %v3403_v38  ;;  %5246 = vpow2.f32 %v1850_v34 }
 0x362   : > { %v2265_v33 = vsel %vm1305_vm15, %v1117_v48, %v4443_v60  ;;  %v3878_v3 = vadd.f32 %v5243_v20, %v3877_v5  ;;  %5248 = vtanh.f32 %v3706_v16 }
 0x363   : > { %v2405_v0 = vpack.c.bf16 %v2265_v33, %v2265_v33 }
 0x364   : > { %v1122_v11 = vpop.f32.mrf.mxu2 }
 0x365   : > { %v3537_v1 = vunpack.c.l.b16 %v2405_v0  ;;  %v1503_v50 = vmin.f32 %v1122_v11, 0.0  ;;  %v7030_v58 = vpop.f32.mrf.mxu3  ;;  %vm1311_vm2 = vcmp.gt.f32.partialorder %v1122_v11, 0.0 }
 0x366   : > { %v5245_v36 = vpop.eup %5244  ;;  %v7032_v40 = vpop.f32.mrf.mxu0 }
 0x367   : > { %v5247_v49 = vpop.eup %5246  ;;  %v7034_v29 = vadd.f32 %v5245_v36, %v2973_v57  ;;  %v1856_v39 = vmul.f32 1.442695, %v1503_v50  ;;  %v3708_v56 = vpop.f32.mrf.mxu1  ;;  %v3575_v55 = vpack.c.b16 %v3537_v1, %v3536_v10 }
 0x368   : > { %v3709_v46 = vadd.f32 %v7019_v27, %v3708_v56  ;;  %v5249_v23 = vpop.eup %5248  ;;  %v4446_v37 = vadd.f32 -1.0, %v5247_v49 }
 0x369   : > { %5250 = vpow2.f32 %v1856_v39  ;;  %v3879_v59 = vadd.f32 %v5249_v23, %v3878_v3 }
 0x36a   : > { %3747 = vmatmul.bf16.gmra.mxu1 %v3575_v55  ;;  %5252 = vtanh.f32 %v3709_v46  ;;  %v2268_v63 = vsel %vm1308_vm0, %v1120_v32, %v4446_v37 }
 0x36b   : > { %v2407_v62 = vpack.c.bf16 %v2268_v63, %v2268_v63 }
 0x36c   : > { %v1125_v7 = vpop.f32.mrf.mxu2 }
 0x36d   : > { %v1506_v26 = vmin.f32 %v1125_v7, 0.0  ;;  %v7037_v14 = vpop.f32.mrf.mxu3  ;;  %v3538_v30 = vunpack.c.l.b16 %v2407_v62  ;;  %vm1314_vm3 = vcmp.gt.f32.partialorder %v1125_v7, 0.0 }
 0x36e   : > { %v7039_v9 = vpop.f32.mrf.mxu0 }
 0x36f   : > { %v5251_v19 = vpop.eup %5250  ;;  %v1862_v4 = vmul.f32 1.442695, %v1506_v26  ;;  %v3710_v48 = vpop.f32.mrf.mxu1 }
 0x370   : > { %v4449_v13 = vadd.f32 -1.0, %v5251_v19  ;;  %v3711_v15 = vadd.f32 %v7019_v27, %v3710_v48  ;;  %v5253_v47 = vpop.eup %5252 }
 0x371   : > { %5254 = vpow2.f32 %v1862_v4  ;;  %v3880_v22 = vadd.f32 %v5253_v47, %v3879_v59 }
 0x372   : > { %v2271_v2 = vsel %vm1311_vm2, %v1122_v11, %v4449_v13  ;;  %5256 = vtanh.f32 %v3711_v15 }
 0x373   : > { %v2409_v61 = vpack.c.bf16 %v2271_v2, %v2271_v2 }
 0x374   : > { %v1127_v54 = vpop.f32.mrf.mxu2 }
 0x375   : > { %v3539_v25 = vunpack.c.l.b16 %v2409_v61  ;;  %v1509_v43 = vmin.f32 %v1127_v54, 0.0  ;;  %v7042_v31 = vpop.f32.mrf.mxu3  ;;  %vm1317_vm4 = vcmp.gt.f32.partialorder %v1127_v54, 0.0 }
 0x376   : > { %v7044_v24 = vpop.f32.mrf.mxu0 }
 0x377   : > { %v5255_v44 = vpop.eup %5254  ;;  %v1868_v42 = vmul.f32 1.442695, %v1509_v43  ;;  %v3713_v45 = vpop.f32.mrf.mxu1  ;;  %v3576_v38 = vpack.c.b16 %v3539_v25, %v3538_v30  ;;  %v3262_v25 = vadd.f32 %v7019_v27, %v7025_v18 }
 0x378   : > { %v3714_v17 = vadd.f32 %v7019_v27, %v3713_v45  ;;  %v5257_v5 = vpop.eup %5256  ;;  %v4452_v32 = vadd.f32 -1.0, %v5255_v44 }
 0x379   : > { %5258 = vpow2.f32 %v1868_v42  ;;  %v3881_v52 = vadd.f32 %v5257_v5, %v3880_v22 }
 0x37a   : > { %3752 = vmatmul.bf16.gmra.mxu1 %v3576_v38  ;;  %5260 = vtanh.f32 %v3714_v17  ;;  %v2274_v51 = vsel %vm1314_vm3, %v1125_v7, %v4452_v32  ;;  %v2832_v17 = vadd.f32 %v7019_v27, %v7030_v58  ;;  %v3267_v58 = vadd.f32 %v7019_v27, %v7039_v9 }
 0x37b   : > { %v2411_v20 = vpack.c.bf16 %v2274_v51, %v2274_v51  ;;  %v3265_v51 = vadd.f32 %v7019_v27, %v7032_v40  ;;  %v3270_v40 = vadd.f32 %v7019_v27, %v7044_v24 }
 0x37c   : > { %v1130_v28 = vpop.f32.mrf.mxu2 }
 0x37d   : > { %v1512_v6 = vmin.f32 %v1130_v28, 0.0  ;;  %v7047_v21 = vpop.f32.mrf.mxu3  ;;  %v3540_v11 = vunpack.c.l.b16 %v2411_v20  ;;  %vm1320_vm5 = vcmp.gt.f32.partialorder %v1130_v28, 0.0 }
 0x37e   : > { %v7049_v53 = vpop.f32.mrf.mxu0 }
 0x37f   : > { %v5259_v57 = vpop.eup %5258  ;;  %v1874_v34 = vmul.f32 1.442695, %v1512_v6  ;;  %v3715_v8 = vpop.f32.mrf.mxu1 }
 0x380   : > { %v4455_v35 = vadd.f32 -1.0, %v5259_v57  ;;  %v3716_v60 = vadd.f32 %v7019_v27, %v3715_v8  ;;  %v5261_v16 = vpop.eup %5260 }
 0x381   : > { %5262 = vpow2.f32 %v1874_v34  ;;  %v3882_v33 = vadd.f32 %v5261_v16, %v3881_v52  ;;  %v2835_v34 = vadd.f32 %v7019_v27, %v7037_v14 }
 0x382   : > { %v2277_v12 = vsel %vm1317_vm4, %v1127_v54, %v4455_v35  ;;  %5264 = vtanh.f32 %v3716_v60  ;;  %v2837_v60 = vadd.f32 %v7019_v27, %v7042_v31 }
 0x383   : > { %v2413_v3 = vpack.c.bf16 %v2277_v12, %v2277_v12  ;;  %v2840_v12 = vadd.f32 %v7019_v27, %v7047_v21 }
 0x384   : > { %v1132_v0 = vpop.f32.mrf.mxu2 }
 0x385   : > { %v3541_v10 = vunpack.c.l.b16 %v2413_v3  ;;  %v1515_v1 = vmin.f32 %v1132_v0, 0.0  ;;  %v7052_v50 = vpop.f32.mrf.mxu3  ;;  %vm1323_vm6 = vcmp.gt.f32.partialorder %v1132_v0, 0.0 }
 0x386   : > { %v7054_v36 = vpop.f32.mrf.mxu0 }
 0x387   : > { %v5263_v49 = vpop.eup %5262  ;;  %v1880_v39 = vmul.f32 1.442695, %v1515_v1  ;;  %v3718_v56 = vpop.f32.mrf.mxu1  ;;  %v3577_v55 = vpack.c.b16 %v3541_v10, %v3540_v11  ;;  %v3272_v10 = vadd.f32 %v7019_v27, %v7049_v53 }
 0x388   : > { %v3719_v46 = vadd.f32 %v7019_v27, %v3718_v56  ;;  %v5265_v23 = vpop.eup %5264  ;;  %v4458_v37 = vadd.f32 -1.0, %v5263_v49  ;;  %v2842_v56 = vadd.f32 %v7019_v27, %v7052_v50 }
 0x389   : > { %5266 = vpow2.f32 %v1880_v39  ;;  %v3883_v59 = vadd.f32 %v5265_v23, %v3882_v33 }
 0x38a   : > { %3757 = vmatmul.bf16.gmra.mxu1 %v3577_v55  ;;  %5268 = vtanh.f32 %v3719_v46  ;;  %v2280_v19 = vsel %vm1320_vm5, %v1130_v28, %v4458_v37  ;;  %v3275_v46 = vadd.f32 %v7019_v27, %v7054_v36 }
 0x38b   : > { %v2415_v22 = vpack.c.bf16 %v2280_v19, %v2280_v19 }
 0x38c   : > { %v1135_v7 = vpop.f32.mrf.mxu2 }
 0x38d   : > { %v1518_v26 = vmin.f32 %v1135_v7, 0.0  ;;  %v7057_v63 = vpop.f32.mrf.mxu3  ;;  %v3542_v44 = vunpack.c.l.b16 %v2415_v22  ;;  %vm1326_vm7 = vcmp.gt.f32.partialorder %v1135_v7, 0.0 }
 0x38e   : > { %v7059_v4 = vpop.f32.mrf.mxu0  ;;  %v2845_v53 = vadd.f32 %v7019_v27, %v7057_v63 }
 0x38f   : > { %v5267_v48 = vpop.eup %5266  ;;  %v1886_v13 = vmul.f32 1.442695, %v1518_v26  ;;  %v3720_v15 = vpop.f32.mrf.mxu1  ;;  %v3277_v50 = vadd.f32 %v7019_v27, %v7059_v4 }
 0x390   : > { %v4461_v47 = vadd.f32 -1.0, %v5267_v48  ;;  %v3721_v62 = vadd.f32 %v7019_v27, %v3720_v15  ;;  %v5269_v2 = vpop.eup %5268 }
 0x391   : > { %5270 = vpow2.f32 %v1886_v13  ;;  %v3884_v54 = vadd.f32 %v5269_v2, %v3883_v59 }
 0x392   : > { %v2283_v61 = vsel %vm1323_vm6, %v1132_v0, %v4461_v47  ;;  %5272 = vtanh.f32 %v3721_v62 }
 0x393   : > { %v2417_v30 = vpack.c.bf16 %v2283_v61, %v2283_v61  ;;  %5274 = vtanh.f32 %v3262_v25 }
 0x394   : > { %v1137_v43 = vpop.f32.mrf.mxu2 }
 0x395   : > { %v3543_v42 = vunpack.c.l.b16 %v2417_v30  ;;  %v1521_v45 = vmin.f32 %v1137_v43, 0.0  ;;  %v7064_v38 = vpop.f32.mrf.mxu3  ;;  %vm1329_vm8 = vcmp.gt.f32.partialorder %v1137_v43, 0.0 }
 0x396   : > { %v7068_v5 = vpop.f32.mrf.mxu0 }
 0x397   : > { %v5271_v32 = vpop.eup %5270  ;;  %v1892_v52 = vmul.f32 1.442695, %v1521_v45  ;;  %v3723_v28 = vpop.f32.mrf.mxu1  ;;  %v3578_v6 = vpack.c.b16 %v3543_v42, %v3542_v44 }
 0x398   : > { %v3724_v18 = vadd.f32 %v7019_v27, %v3723_v28  ;;  %v5273_v57 = vpop.eup %5272  ;;  %v4464_v8 = vadd.f32 -1.0, %v5271_v32  ;;  %v2847_v32 = vadd.f32 %v7019_v27, %v7064_v38 }
 0x399   : > { %5276 = vpow2.f32 %v1892_v52  ;;  %v3885_v35 = vadd.f32 %v5273_v57, %v3884_v54  ;;  %v5275_v9 = vpop.eup %5274 }
 0x39a   : > { %5278 = vtanh.f32 %v2832_v17  ;;  %3762 = vmatmul.bf16.gmra.mxu1 %v3578_v6  ;;  %v2286_v33 = vsel %vm1326_vm7, %v1135_v7, %v4464_v8  ;;  %v3405_v19 = vadd.f32 %v5275_v9, %v7028_v41  ;;  %v3280_v41 = vadd.f32 %v7019_v27, %v7068_v5 }
 0x39b   : > { %5280 = vtanh.f32 %v3724_v18  ;;  %v2419_v55 = vpack.c.bf16 %v2286_v33, %v2286_v33 }
 0x39c   : > { %5282 = vtanh.f32 %v3265_v51  ;;  %v7081_v16 = vpop.f32.mrf.mxu2 }
 0x39d   : > { %5284 = vtanh.f32 %v2835_v34  ;;  %v1524_v14 = vmin.f32 %v7081_v16, 0.0  ;;  %v7084_v20 = vpop.f32.mrf.mxu3  ;;  %v3544_v36 = vunpack.c.l.b16 %v2419_v55  ;;  %vm1332_vm9 = vcmp.gt.f32.partialorder %v7081_v16, 0.0 }
 0x39e   : > { %5286 = vtanh.f32 %v3267_v58  ;;  %v3281_v31 = vpop.f32.mrf.mxu0  ;;  %v2850_v57 = vadd.f32 %v7019_v27, %v7084_v20 }
 0x39f   : > { %v5277_v3 = vpop.eup %5276  ;;  %5288 = vtanh.f32 %v2837_v60  ;;  %v1898_v0 = vmul.f32 1.442695, %v1524_v14  ;;  %v3725_v11 = vpop.f32.mrf.mxu1  ;;  %v3282_v44 = vadd.f32 %v7019_v27, %v3281_v31 }
 0x3a0   : > { %v5279_v24 = vpop.eup %5278  ;;  %5290 = vtanh.f32 %v3270_v40  ;;  %v4467_v1 = vadd.f32 -1.0, %v5277_v3  ;;  %v3726_v49 = vadd.f32 %v7019_v27, %v3725_v11 }
 0x3a1   : > { %v5281_v39 = vpop.eup %5280  ;;  %5292 = vpow2.f32 %v1898_v0  ;;  %v2975_v63 = vadd.f32 %v5279_v24, %v7034_v29 }
 0x3a2   : > { %v5283_v21 = vpop.eup %5282  ;;  %5294 = vtanh.f32 %v2840_v12  ;;  %v2289_v23 = vsel %vm1329_vm8, %v1137_v43, %v4467_v1  ;;  %v3886_v37 = vadd.f32 %v5281_v39, %v3885_v35 }
 0x3a3   : > { %v5285_v59 = vpop.eup %5284  ;;  %v2421_v7 = vpack.c.bf16 %v2289_v23, %v2289_v23  ;;  %5296 = vtanh.f32 %v3726_v49  ;;  %v3406_v54 = vadd.f32 %v5283_v21, %v3405_v19 }
 0x3a4   : > { %v5287_v26 = vpop.eup %5286  ;;  %5298 = vtanh.f32 %v3272_v10  ;;  %v7100_v48 = vpop.f32.mrf.mxu2  ;;  %v2976_v17 = vadd.f32 %v5285_v59, %v2975_v63 }
 0x3a5   : > { %v5289_v13 = vpop.eup %5288  ;;  %5300 = vtanh.f32 %v2842_v56  ;;  %v3545_v15 = vunpack.c.l.b16 %v2421_v7  ;;  %v1527_v47 = vmin.f32 %v7100_v48, 0.0  ;;  %v2851_v62 = vpop.f32.mrf.mxu3  ;;  %v3407_v29 = vadd.f32 %v5287_v26, %v3406_v54 }
 0x3a6   : > { %v5291_v2 = vpop.eup %5290  ;;  %5302 = vtanh.f32 %v3275_v46  ;;  %v3284_v22 = vpop.f32.mrf.mxu0  ;;  %v2977_v58 = vadd.f32 %v5289_v13, %v2976_v17  ;;  %v2852_v8 = vadd.f32 %v7019_v27, %v2851_v62  ;;  %vm1335_vm1 = vcmp.gt.f32.partialorder %v7100_v48, 0.0 }
 0x3a7   : > { %v5293_v61 = vpop.eup %5292  ;;  %5304 = vtanh.f32 %v2845_v53  ;;  %v1904_v4 = vmul.f32 1.442695, %v1527_v47  ;;  %v3728_v30 = vpop.f32.mrf.mxu1  ;;  %v3579_v25 = vpack.c.b16 %v3545_v15, %v3544_v36  ;;  %v3285_v6 = vadd.f32 %v7019_v27, %v3284_v22 }
 0x3a8   : > { %v5295_v43 = vpop.eup %5294  ;;  %5306 = vtanh.f32 %v3277_v50  ;;  %v3729_v42 = vadd.f32 %v7019_v27, %v3728_v30  ;;  %v4470_v52 = vadd.f32 -1.0, %v5293_v61  ;;  %v3408_v18 = vadd.f32 %v5291_v2, %v3407_v29 }
 0x3a9   : > { %v5297_v45 = vpop.eup %5296  ;;  %5308 = vpow2.f32 %v1904_v4  ;;  %v2978_v12 = vadd.f32 %v5295_v43, %v2977_v58 }
 0x3aa   : > { %v5299_v5 = vpop.eup %5298  ;;  %5310 = vtanh.f32 %v3280_v41  ;;  %v3887_v28 = vadd.f32 %v5297_v45, %v3886_v37  ;;  %3767 = vmatmul.bf16.gmra.mxu1 %v3579_v25  ;;  %v2292_v20 = vsel %vm1332_vm9, %v7081_v16, %v4470_v52 }
 0x3ab   : > { %v5301_v51 = vpop.eup %5300  ;;  %5312 = vtanh.f32 %v3729_v42  ;;  %v3409_v60 = vadd.f32 %v5299_v5, %v3408_v18  ;;  %v2423_v21 = vpack.c.bf16 %v2292_v20, %v2292_v20 }
 0x3ac   : > { %v5303_v34 = vpop.eup %5302  ;;  %5314 = vtanh.f32 %v3282_v44  ;;  %v7114_v38 = vpop.f32.mrf.mxu2  ;;  %v2979_v46 = vadd.f32 %v5301_v51, %v2978_v12 }
 0x3ad   : > { %v5305_v35 = vpop.eup %5304  ;;  %5316 = vtanh.f32 %v2847_v32  ;;  %v1530_v40 = vmin.f32 %v7114_v38, 0.0  ;;  %v2854_v14 = vpop.f32.mrf.mxu3  ;;  %v3410_v3 = vadd.f32 %v5303_v34, %v3409_v60  ;;  %v3546_v36 = vunpack.c.l.b16 %v2423_v21 }
 0x3ae   : > { %v5307_v9 = vpop.eup %5306  ;;  %5318 = vtanh.f32 %v3285_v6  ;;  %v3286_v33 = vpop.f32.mrf.mxu0  ;;  %v2855_v49 = vadd.f32 %v7019_v27, %v2854_v14  ;;  %v2980_v19 = vadd.f32 %v5305_v35, %v2979_v46  ;;  %vm1338_vm10 = vcmp.gt.f32.partialorder %v7114_v38, 0.0 }
 0x3af   : > { %v5309_v31 = vpop.eup %5308  ;;  %5320 = vtanh.f32 %v2850_v57  ;;  %v1910_v0 = vmul.f32 1.442695, %v1530_v40  ;;  %v3287_v11 = vadd.f32 %v7019_v27, %v3286_v33  ;;  %v3730_v24 = vpop.f32.mrf.mxu1  ;;  %v3411_v55 = vadd.f32 %v5307_v9, %v3410_v3 }
 0x3b0   : > { %v5311_v10 = vpop.eup %5310  ;;  %v4473_v1 = vadd.f32 -1.0, %v5309_v31  ;;  %5322 = vtanh.f32 %v2852_v8  ;;  %v3731_v39 = vadd.f32 %v7019_v27, %v3730_v24 }
 0x3b1   : > { %v5313_v56 = vpop.eup %5312  ;;  %5324 = vpow2.f32 %v1910_v0  ;;  %v3412_v53 = vadd.f32 %v5311_v10, %v3411_v55 }
 0x3b2   : > { %v5315_v16 = vpop.eup %5314  ;;  %v2295_v23 = vsel %vm1335_vm1, %v7100_v48, %v4473_v1  ;;  %v3888_v37 = vadd.f32 %v5313_v56, %v3887_v28  ;;  %5326 = vtanh.f32 %v3287_v11 }
 0x3b3   : > { %v5317_v59 = vpop.eup %5316  ;;  %v2425_v7 = vpack.c.bf16 %v2295_v23, %v2295_v23  ;;  %5328 = vtanh.f32 %v3731_v39  ;;  %v3413_v15 = vadd.f32 %v5315_v16, %v3412_v53 }
 0x3b4   : > { %v5319_v26 = vpop.eup %5318  ;;  %5330 = vtanh.f32 %v2855_v49  ;;  %v1147_v50 = vpop.f32.mrf.mxu2  ;;  %v2981_v22 = vadd.f32 %v5317_v59, %v2980_v19 }
 0x3b5   : > { %v5321_v13 = vpop.eup %5320  ;;  %v3547_v47 = vunpack.c.l.b16 %v2425_v7  ;;  %v1533_v62 = vmin.f32 %v1147_v50, 0.0  ;;  %v2856_v2 = vpop.f32.mrf.mxu3  ;;  %v3414_v61 = vadd.f32 %v5319_v26, %v3413_v15  ;;  %vm1341_vm11 = vcmp.gt.f32.partialorder %v1147_v50, 0.0 }
 0x3b6   : > { %v5323_v63 = vpop.eup %5322  ;;  %v2857_v41 = vadd.f32 %v7019_v27, %v2856_v2  ;;  %v2982_v42 = vadd.f32 %v5321_v13, %v2981_v22 }
 0x3b7   : > { %v5325_v48 = vpop.eup %5324  ;;  %v1916_v54 = vmul.f32 1.442695, %v1533_v62  ;;  %v3733_v4 = vpop.f32.mrf.mxu1  ;;  %v3580_v30 = vpack.c.b16 %v3547_v47, %v3546_v36 }
 0x3b8   : > { %v5327_v25 = vpop.eup %5326  ;;  %5332 = vtanh.f32 %v2857_v41  ;;  %v3734_v43 = vadd.f32 %v7019_v27, %v3733_v4  ;;  %v4476_v29 = vadd.f32 -1.0, %v5325_v48  ;;  %v2983_v5 = vadd.f32 %v5323_v63, %v2982_v42 }
 0x3b9   : > { %v5329_v44 = vpop.eup %5328  ;;  %v3415_v45 = vadd.f32 %v5327_v25, %v3414_v61  ;;  %5334 = vpow2.f32 %v1916_v54 }
 0x3ba   : > { %v5331_v17 = vpop.eup %5330  ;;  %v3889_v32 = vadd.f32 %v5329_v44, %v3888_v37  ;;  %5336 = vtanh.f32 %v3734_v43  ;;  %3772 = vmatmul.bf16.gmra.mxu1 %v3580_v30  ;;  %v2298_v18 = vsel %vm1338_vm10, %v7114_v38, %v4476_v29 }
 0x3bb   : > { %v3416_v52 = vrot.slane %v3415_v45, 4  ;;  %v2984_v28 = vadd.f32 %v5331_v17, %v2983_v5  ;;  %v2427_v14 = vpack.c.bf16 %v2298_v18, %v2298_v18 }
 0x3bd   : > { %v3417_v6 = vadd.f32 %v3416_v52, %v3415_v45  ;;  %v3548_v11 = vunpack.c.l.b16 %v2427_v14 }
 0x3be   : > { %v5333_v51 = vpop.eup %5332 }
 0x3bf   : > { %v5335_v57 = vpop.eup %5334  ;;  %v3418_v34 = vrot.slane %v3417_v6, 2  ;;  %v2985_v58 = vadd.f32 %v5333_v51, %v2984_v28  ;;  %v3735_v8 = vpop.f32.mrf.mxu1 }
 0x3c0   : > { %v5337_v35 = vpop.eup %5336  ;;  %v4479_v60 = vadd.f32 -1.0, %v5335_v57  ;;  %v3736_v40 = vadd.f32 %v7019_v27, %v3735_v8 }
 0x3c1   : > { %v3419_v9 = vadd.f32 %v3418_v34, %v3417_v6  ;;  %v2986_v12 = vrot.slane %v2985_v58, 4  ;;  %v3890_v20 = vadd.f32 %v5337_v35, %v3889_v32 }
 0x3c2   : > { %v2301_v33 = vsel %vm1341_vm11, %v1147_v50, %v4479_v60  ;;  %5338 = vtanh.f32 %v3736_v40 }
 0x3c3   : > { %v3420_v31 = vrot.slane %v3419_v9, 1  ;;  %v2429_v3 = vpack.c.bf16 %v2301_v33, %v2301_v33  ;;  %v2987_v0 = vadd.f32 %v2986_v12, %v2985_v58 }
 0x3c5   : > { %v3549_v38 = vunpack.c.l.b16 %v2429_v3  ;;  %v2988_v24 = vrot.slane %v2987_v0, 2  ;;  %v3421_v10 = vadd.f32 %v3420_v31, %v3419_v9 }
 0x3c7   : > { %v2989_v1 = vadd.f32 %v2988_v24, %v2987_v0  ;;  %v3738_v49 = vpop.f32.mrf.mxu1  ;;  %v3581_v39 = vpack.c.b16 %v3549_v38, %v3548_v11  ;;  %v3920_v23 = vrot.slane %v3421_v10, 7 }
 0x3c8   : > { %v5339_v56 = vpop.eup %5338  ;;  %v3739_v55 = vadd.f32 %v7019_v27, %v3738_v49 }
 0x3c9   : > { %v2990_v21 = vrot.slane %v2989_v1, 1  ;;  %v3891_v16 = vadd.f32 %v5339_v56, %v3890_v20 }
 0x3ca   : > { %5340 = vtanh.f32 %v3739_v55  ;;  %3777 = vmatmul.bf16.gmra.mxu1 %v3581_v39 }
 0x3cb   : > { %v2991_v46 = vadd.f32 %v2990_v21, %v2989_v1 }
 0x3cd   : > { %v7130_v37 = vsel %vm3922_vm12, %v2991_v46, %v3920_v23 }
 0x3cf   : > { %v3740_v59 = vpop.f32.mrf.mxu1 }
 0x3d0   : > { %v5341_v53 = vpop.eup %5340  ;;  %v3741_v7 = vadd.f32 %v7019_v27, %v3740_v59 }
 0x3d1   : > { %v3892_v26 = vadd.f32 %v5341_v53, %v3891_v16 }
 0x3d2   : > { %5342 = vtanh.f32 %v3741_v7 }
 0x3d7   : > { %v3743_v19 = vpop.f32.mrf.mxu1 }
 0x3d8   : > { %v5343_v50 = vpop.eup %5342  ;;  %v3744_v13 = vadd.f32 %v7019_v27, %v3743_v19 }
 0x3d9   : > { %v3893_v36 = vadd.f32 %v5343_v50, %v3892_v26 }
 0x3da   : > { %5344 = vtanh.f32 %v3744_v13 }
 0x3df   : > { %v3745_v15 = vpop.f32.mrf.mxu1 }
 0x3e0   : > { %v5345_v47 = vpop.eup %5344  ;;  %v3746_v62 = vadd.f32 %v7019_v27, %v3745_v15 }
 0x3e1   : > { %v3894_v2 = vadd.f32 %v5345_v47, %v3893_v36 }
 0x3e2   : > { %5346 = vtanh.f32 %v3746_v62 }
 0x3e7   : > { %v3748_v63 = vpop.f32.mrf.mxu1 }
 0x3e8   : > { %v5347_v41 = vpop.eup %5346  ;;  %v3749_v48 = vadd.f32 %v7019_v27, %v3748_v63 }
 0x3e9   : > { %v3895_v22 = vadd.f32 %v5347_v41, %v3894_v2  ;;  %v3928_v41 = vlaneseq }
 0x3ea   : > { %5348 = vtanh.f32 %v3749_v48  ;;  %v3916_v48 = vld [vmem:[%s5619_s2] sm:$0x7] }
 0x3eb   : > { %vm3930_vm14 = vcmp.lt.s32.totalorder %v3928_v41, 384 }
 0x3ef   : > { %v3750_v61 = vpop.f32.mrf.mxu1 }
 0x3f0   : > { %v5349_v54 = vpop.eup %5348  ;;  %v3751_v4 = vadd.f32 %v7019_v27, %v3750_v61 }
 0x3f1   : > { %v3896_v30 = vadd.f32 %v5349_v54, %v3895_v22 }
 0x3f2   : > { %5350 = vtanh.f32 %v3751_v4 }
 0x3f7   : > { %v3753_v25 = vpop.f32.mrf.mxu1 }
 0x3f8   : > { %v5351_v43 = vpop.eup %5350  ;;  %v3754_v44 = vadd.f32 %v7019_v27, %v3753_v25 }
 0x3f9   : > { %v3897_v42 = vadd.f32 %v5351_v43, %v3896_v30 }
 0x3fa   : > { %5352 = vtanh.f32 %v3754_v44 }
 0x3ff   : > { %v3755_v45 = vpop.f32.mrf.mxu1 }
 0x400   : > { %v5353_v17 = vpop.eup %5352  ;;  %v3756_v57 = vadd.f32 %v7019_v27, %v3755_v45 }
 0x401   : > { %v3898_v29 = vadd.f32 %v5353_v17, %v3897_v42 }
 0x402   : > { %5354 = vtanh.f32 %v3756_v57 }
 0x407   : > { %v3758_v32 = vpop.f32.mrf.mxu1 }
 0x408   : > { %v3759_v34 = vadd.f32 %v7019_v27, %v3758_v32  ;;  %v5355_v40 = vpop.eup %5354 }
 0x409   : > { %v3899_v20 = vadd.f32 %v5355_v40, %v3898_v29 }
 0x40a   : > { %5356 = vtanh.f32 %v3759_v34 }
 0x40f   : > { %v3760_v5 = vpop.f32.mrf.mxu1 }
 0x410   : > { %v3761_v58 = vadd.f32 %v7019_v27, %v3760_v5  ;;  %v5357_v9 = vpop.eup %5356 }
 0x411   : > { %v3900_v3 = vadd.f32 %v5357_v9, %v3899_v20 }
 0x412   : > { %5358 = vtanh.f32 %v3761_v58 }
 0x417   : > { %v3763_v52 = vpop.f32.mrf.mxu1 }
 0x418   : > { %v3764_v8 = vadd.f32 %v7019_v27, %v3763_v52  ;;  %v5359_v33 = vpop.eup %5358 }
 0x419   : > { %v3901_v24 = vadd.f32 %v5359_v33, %v3900_v3 }
 0x41a   : > { %5360 = vtanh.f32 %v3764_v8 }
 0x41f   : > { %v3765_v28 = vpop.f32.mrf.mxu1 }
 0x420   : > { %v3766_v60 = vadd.f32 %v7019_v27, %v3765_v28  ;;  %v5361_v11 = vpop.eup %5360 }
 0x421   : > { %v3902_v49 = vadd.f32 %v5361_v11, %v3901_v24 }
 0x422   : > { %5362 = vtanh.f32 %v3766_v60 }
 0x427   : > { %v3768_v6 = vpop.f32.mrf.mxu1 }
 0x428   : > { %v3769_v14 = vadd.f32 %v7019_v27, %v3768_v6  ;;  %v5363_v10 = vpop.eup %5362 }
 0x429   : > { %v3903_v56 = vadd.f32 %v5363_v10, %v3902_v49 }
 0x42a   : > { %5364 = vtanh.f32 %v3769_v14 }
 0x42f   : > { %v3770_v51 = vpop.f32.mrf.mxu1 }
 0x430   : > { %v3771_v12 = vadd.f32 %v7019_v27, %v3770_v51  ;;  %v5365_v39 = vpop.eup %5364 }
 0x431   : > { %v3904_v21 = vadd.f32 %v5365_v39, %v3903_v56 }
 0x432   : > { %5366 = vtanh.f32 %v3771_v12 }
 0x437   : > { %v3773_v18 = vpop.f32.mrf.mxu1 }
 0x438   : > { %v3774_v31 = vadd.f32 %v7019_v27, %v3773_v18  ;;  %v5367_v55 = vpop.eup %5366 }
 0x439   : > { %v3905_v59 = vadd.f32 %v5367_v55, %v3904_v21 }
 0x43a   : > { %5368 = vtanh.f32 %v3774_v31 }
 0x43f   : > { %v3775_v35 = vpop.f32.mrf.mxu1 }
 0x440   : > { %v3776_v38 = vadd.f32 %v7019_v27, %v3775_v35  ;;  %v5369_v46 = vpop.eup %5368 }
 0x441   : > { %v3906_v7 = vadd.f32 %v5369_v46, %v3905_v59 }
 0x442   : > { %5370 = vtanh.f32 %v3776_v38 }
 0x447   : > { %v3778_v0 = vpop.f32.mrf.mxu1 }
 0x448   : > { %v3779_v1 = vadd.f32 %v7019_v27, %v3778_v0  ;;  %v5371_v53 = vpop.eup %5370 }
 0x449   : > { %v3907_v19 = vadd.f32 %v5371_v53, %v3906_v7 }
 0x44a   : > { %5372 = vtanh.f32 %v3779_v1 }
 0x44f   : > { %v3780_v16 = vpop.f32.mrf.mxu1 }
 0x450   : > { %v3781_v23 = vadd.f32 %v7019_v27, %v3780_v16  ;;  %v5373_v26 = vpop.eup %5372 }
 0x451   : > { %v3908_v50 = vadd.f32 %v5373_v26, %v3907_v19 }
 0x452   : > { %5374 = vtanh.f32 %v3781_v23 }
 0x458   : > { %v5375_v13 = vpop.eup %5374 }
 0x459   : > { %v3909_v36 = vadd.f32 %v5375_v13, %v3908_v50 }
 0x45b   : > { %v3910_v15 = vrot.slane %v3909_v36, 4 }
 0x45d   : > { %v3911_v47 = vadd.f32 %v3910_v15, %v3909_v36 }
 0x45f   : > { %v3912_v62 = vrot.slane %v3911_v47, 2 }
 0x461   : > { %v3913_v27 = vadd.f32 %v3912_v62, %v3911_v47 }
 0x463   : > { %v3914_v2 = vrot.slane %v3913_v27, 1 }
 0x465   : > { %v3915_v63 = vadd.f32 %v3914_v2, %v3913_v27 }
 0x467   : > { %v3921_v22 = vrot.slane %v3915_v63, 6 }
 0x469   : > { %v3925_v61 = vsel %vm3924_vm13, %v7130_v37, %v3921_v22 }
 0x46a   : > { %v3927_v54 = vadd.f32 %v3925_v61, %v3916_v48 }
 0x46c   : > { %3932 = vst.msk [vmem:[%s5619_s2] sm:$0x7] %vm3930_vm14, %v3927_v54 }
 0x46d   : > { %5462 = shalt.err (!%p5459_p9)
}
 0x46e   : > { %4565 = dma.vmem_to_hbm [thread:$0]  (%p5579_p4), %s3948_s1, 48, %s3950_s27, %s3934_s8  }
 0x46f PF: > { %p4571_p10 = scmp.ge.s32.totalorder %s5499_s7, 2  ;;  %s3961_s2 = sand.u32 1, %s5487_s29  }
 0x470   : > { %s3962_s26 = scalar_lea.sflag [#allocation6], %s3961_s2 }
 0x471   : > { %p4568_p11 = pnand %p4571_p10, %p5584_p6 }
 0x473   : > { %p4569_p12 = pneg %p4568_p11 }
 0x475   : > { %5482 = dma.done.wait (%p4569_p12), %s3962_s26, 48  }
 0x476   : > { %5484 = vsyncadd (%p4569_p12), %s3962_s26, 4294967248  ;;  %p29_p13 = scmp.ge.s32.totalorder %s5570_s9, 4   ;;  %s7235_s29 = smov %s5491_s30 }
 0x477   : > { %s7236_s30 = smov %s5495_s0  ;;  %s7237_s0 = smov %s5591_s16 }
 0x478   : > { %s7238_s7 = smov %s5570_s9  ;;  %31 = sbr.rel (!%p29_p13) target bundleno = 11 (0xb), region = 84 }
 0x47d   :  { %3968 = vsyncpa [#allocation6], 1 }
 0x47e   :  { %3970 = vsyncpa [#allocation6 + $0x1], 1 }

</bundles_post_ra>
